<compile_context>
chip_gen: v5e
topology: v5e:2x2
jax: 0.10.0
libtpu: 0.0.40
codegen_flags: <defaults>
</compile_context>

<pallas_src>
import functools

import jax
import jax.numpy as jnp
from jax import lax
from jax.experimental import pallas as pl
from jax.experimental.pallas import tpu as pltpu


def _round_up(x, m):
    return (x + m - 1) // m * m


def _pick_tile_h(H, requested):
    """Largest divisor of H that is <= requested (falls back towards 1)."""
    t = max(1, min(requested, H))
    while H % t != 0:
        t -= 1
    return t


# ----------------------------------------------------------------------------
# Pallas kernel: one (batch, row-tile) output block per grid step.
# ----------------------------------------------------------------------------
def _bottleneck_kernel(xc_ref, xt_ref, xb_ref,        # activations (bf16, W-padded)
                       w1_ref, w2_ref, w3_ref,        # folded conv weights (bf16)
                       b1_ref, b2_ref, b3_ref,        # folded BN biases (f32)
                       o_ref, *, img_w, lp):
    TH = xc_ref.shape[1]          # rows in this tile
    Wo = o_ref.shape[2]           # aligned output width (>= img_w)

    tidx = pl.program_id(1)
    n_t = pl.num_programs(1)

    x_c = xc_ref[0]                                               # (TH, Wp, Cin_p) bf16
    x_ext = jnp.concatenate([xt_ref[0], x_c, xb_ref[0]], axis=0)  # (TH+2, Wp, Cin_p)

    # ---- conv1 (1x1, BN scale folded into weights) + bias + relu -------------
    t1 = jnp.einsum('hwc,cd->hwd', x_ext, w1_ref[...],
                    preferred_element_type=jnp.float32)           # (TH+2, Wp, Cmid_p)
    t1 = jnp.maximum(t1 + b1_ref[...], 0.0)

    # conv2 zero-padding semantics in the t1 domain (relu(0@w1 + b1) != 0):
    # one fused predicate -> out-of-image columns always, halo rows only at the
    # image top/bottom edges.
    row = lax.broadcasted_iota(jnp.int32, t1.shape, 0)
    col = lax.broadcasted_iota(jnp.int32, t1.shape, 1)
    pad_mask = jnp.logical_or(
        jnp.logical_or(col < lp, col >= lp + img_w),
        jnp.logical_or(jnp.logical_and(row == 0, tidx == 0),
                       jnp.logical_and(row == TH + 1, tidx == n_t - 1)))
    t1b = jnp.where(pad_mask, 0.0, t1).astype(jnp.bfloat16)

    # ---- conv2 (3x3, pad=1): 3 accumulated matmuls of K = 3*Cmid_p -----------
    # One column-shifted slice per kx (only kx=0,2 are sublane-unaligned); the
    # 3 ky taps are free leading-dim row slices concatenated along K.
    acc = None
    for kx in range(3):
        t1s = t1b[:, lp - 1 + kx: lp - 1 + kx + Wo, :]            # (TH+2, Wo, Cmid_p)
        slab = jnp.concatenate([t1s[0:TH], t1s[1:TH + 1], t1s[2:TH + 2]],
                               axis=-1)                           # (TH, Wo, 3*Cmid_p)
        part = jnp.einsum('hwc,cd->hwd', slab, w2_ref[kx],
                          preferred_element_type=jnp.float32)     # (TH, Wo, Cmid_p)
        acc = part if acc is None else acc + part
    t2 = jnp.maximum(acc + b2_ref[...], 0.0).astype(jnp.bfloat16)

    # ---- conv3 (1x1) + bias + identity residual (f32) + relu -----------------
    t3 = jnp.einsum('hwc,cd->hwd', t2, w3_ref[...],
                    preferred_element_type=jnp.float32)           # (TH, Wo, Cout_p)
    res = x_c[:, lp:lp + Wo, :].astype(jnp.float32)               # Cin_p == Cout_p
    o_ref[0] = jnp.maximum(t3 + b3_ref[...] + res, 0.0).astype(o_ref.dtype)


# ----------------------------------------------------------------------------
# Wrapper: BN folding, bf16 cast, lane/sublane padding, spatial tiling.
# ----------------------------------------------------------------------------
def bottleneck_pallas(x_nhwc, params, *, tile_h=32):
    """x_nhwc: (N, H, W, Cin), any float dtype.  Returns (N, H, W, Cout) bf16.

    Activations are kept NHWC + bf16 across the pallas_call boundary (no
    layout transposes); BN is folded into the conv weights (eval mode).
    """
    w1, w2, w3, s1, b1, s2, b2, s3, b3 = params
    N, H, W, Cin = x_nhwc.shape
    Cmid = w1.shape[1]
    Cout = w3.shape[1]
    # TODO(synk): stride>1 / downsample branch not implemented.
    assert Cout == Cin, "identity residual requires in_ch == block_ch * expansion"

    tile_h = _pick_tile_h(H, tile_h)
    n_t = H // tile_h

    LANE, SUB = 128, 8
    Cin_p = _round_up(Cin, LANE)
    Cmid_p = _round_up(Cmid, LANE)
    Cout_p = _round_up(Cout, LANE)
    LP = 8                          # left zero pad -> aligned residual slice
    Wo = _round_up(W, SUB)          # aligned output width (junk cols sliced off)
    Wp = Wo + 2 * LP                # image cols at [LP, LP+W); >=1 zero col each side

    # Fold BN scale (eval-mode running stats) into conv weights; bf16 operands.
    w1f = (w1 * s1[0][None, :]).astype(jnp.bfloat16)             # (Cin, Cmid)
    w2f = (w2 * s2[0][None, None, :]).astype(jnp.bfloat16)       # (9, Cmid, Cmid)
    w3f = (w3 * s3[0][None, :]).astype(jnp.bfloat16)             # (Cmid, Cout)

    # Pad channel (lane) dims to multiples of 128; padded channels stay zero.
    w1k = jnp.zeros((Cin_p, Cmid_p), jnp.bfloat16).at[:Cin, :Cmid].set(w1f)
    # conv2 weights laid out per-kx: [kx, ky*Cmid_p + cin, cout]
    w2k = (jnp.zeros((3, 3, Cmid_p, Cmid_p), jnp.bfloat16)
           .at[:, :, :Cmid, :Cmid].set(w2f.reshape(3, 3, Cmid, Cmid)))   # [ky,kx,ci,co]
    w2k = jnp.transpose(w2k, (1, 0, 2, 3)).reshape(3, 3 * Cmid_p, Cmid_p)
    w3k = jnp.zeros((Cmid_p, Cout_p), jnp.bfloat16).at[:Cmid, :Cout].set(w3f)
    b1k = jnp.zeros((1, Cmid_p), jnp.float32).at[:, :Cmid].set(b1)
    b2k = jnp.zeros((1, Cmid_p), jnp.float32).at[:, :Cmid].set(b2)
    b3k = jnp.zeros((1, Cout_p), jnp.float32).at[:, :Cout].set(b3)

    # bf16 activations, zero-padded in W (halo + alignment) and channels.
    x_p = jnp.pad(x_nhwc.astype(jnp.bfloat16),
                  ((0, 0), (0, 0), (LP, Wp - LP - W), (0, Cin_p - Cin)))

    kern = functools.partial(_bottleneck_kernel, img_w=W, lp=LP)

    # VMEM budget: double-buffered blocks + in-kernel intermediates (+headroom).
    vmem_est = 2 * (tile_h * Wp * Cin_p * 2 + 2 * Wp * Cin_p * 2
                    + (Cin_p * Cmid_p + 9 * Cmid_p * Cmid_p + Cmid_p * Cout_p) * 2
                    + tile_h * Wo * Cout_p * 2)
    vmem_est += ((tile_h + 2) * Wp * (Cin_p * 2 + Cmid_p * 6)
                 + tile_h * Wo * (3 * Cmid_p * 2 + Cmid_p * 6 + Cout_p * 10))
    vmem_limit = int(min(64 * 2**20, max(32 * 2**20, 2 * vmem_est)))

    flops = 2 * N * H * W * (Cin * Cmid + 9 * Cmid * Cmid + Cmid * Cout)
    bytes_accessed = int(x_p.size * 2 + N * H * Wo * Cout_p * 2
                         + (w1k.size + w2k.size + w3k.size) * 2)

    const = lambda shape: pl.BlockSpec(shape, lambda n, t: (0,) * len(shape))

    out_p = pl.pallas_call(
        kern,
        out_shape=jax.ShapeDtypeStruct((N, H, Wo, Cout_p), jnp.bfloat16),
        grid_spec=pltpu.PrefetchScalarGridSpec(
            num_scalar_prefetch=0,
            grid=(N, n_t),
            in_specs=[
                # center row-tile of x
                pl.BlockSpec((1, tile_h, Wp, Cin_p), lambda n, t: (n, t, 0, 0)),
                # one halo row above (clamped at the top; zeroed in-kernel)
                pl.BlockSpec((1, 1, Wp, Cin_p),
                             lambda n, t: (n, jnp.maximum(t * tile_h - 1, 0), 0, 0)),
                # one halo row below (clamped at the bottom; zeroed in-kernel)
                pl.BlockSpec((1, 1, Wp, Cin_p),
                             lambda n, t: (n, jnp.minimum(t * tile_h + tile_h, H - 1), 0, 0)),
                const((Cin_p, Cmid_p)),              # w1
                const((3, 3 * Cmid_p, Cmid_p)),      # w2 (per-kx, ky-major K)
                const((Cmid_p, Cout_p)),             # w3
                const((1, Cmid_p)), const((1, Cmid_p)), const((1, Cout_p)),
            ],
            out_specs=pl.BlockSpec((1, tile_h, Wo, Cout_p), lambda n, t: (n, t, 0, 0)),
        ),
        compiler_params=pltpu.CompilerParams(
            dimension_semantics=("parallel", "parallel"),
            vmem_limit_bytes=vmem_limit),
        cost_estimate=pl.CostEstimate(flops=flops, transcendentals=0,
                                      bytes_accessed=bytes_accessed),
    )(x_p, x_p, x_p, w1k, w2k, w3k, b1k, b2k, b3k)

    # In a fused ResNet you would keep the padded (Wo, Cout_p) layout between
    # blocks; slice to the logical shape only at the network boundary.
    if Wo != W or Cout_p != Cout:
        out_p = out_p[:, :, :W, :Cout]
    return out_p


# ----------------------------------------------------------------------------
# Deterministic parameter construction + pure-JAX reference.
# ----------------------------------------------------------------------------
def make_params(key, in_ch, block_ch, eps=1e-5):
    expansion = 4
    out_ch = block_ch * expansion
    ks = jax.random.split(key, 15)

    def bn_fold(kg, kb, km, kv, c):
        gamma = 1.0 + 0.1 * jax.random.normal(kg, (c,), jnp.float32)
        beta = 0.1 * jax.random.normal(kb, (c,), jnp.float32)
        mean = 0.1 * jax.random.normal(km, (c,), jnp.float32)
        var = 1.0 + 0.5 * jax.random.uniform(kv, (c,), jnp.float32)
        scale = gamma / jnp.sqrt(var + eps)
        bias = beta - mean * scale
        return scale.reshape(1, c), bias.reshape(1, c)

    # conv weights in matmul layout:
    #   w1: (Cin, Cmid)   w2: (9, Cmid, Cmid) tap-major (ky*3+kx)   w3: (Cmid, Cout)
    w1 = 0.3 * jax.random.normal(ks[0], (in_ch, block_ch), jnp.float32)
    w2 = 0.2 * jax.random.normal(ks[1], (9, block_ch, block_ch), jnp.float32)
    w3 = 0.3 * jax.random.normal(ks[2], (block_ch, out_ch), jnp.float32)
    s1, b1 = bn_fold(ks[3], ks[4], ks[5], ks[6], block_ch)
    s2, b2 = bn_fold(ks[7], ks[8], ks[9], ks[10], block_ch)
    s3, b3 = bn_fold(ks[11], ks[12], ks[13], ks[14], out_ch)
    return (w1, w2, w3, s1, b1, s2, b2, s3, b3)


def bottleneck_ref(x_nhwc, params):
    """Pure-JAX reference (lax.conv, same bf16 weight/activation rounding)."""
    w1, w2, w3, s1, b1, s2, b2, s3, b3 = params
    Cin, Cmid = w1.shape
    Cout = w3.shape[1]
    w1f = (w1 * s1[0][None, :]).astype(jnp.bfloat16)
    w2f = (w2 * s2[0][None, None, :]).astype(jnp.bfloat16)
    w3f = (w3 * s3[0][None, :]).astype(jnp.bfloat16)

    x = x_nhwc.astype(jnp.bfloat16)
    dn = lax.conv_dimension_numbers(x.shape, (1, 1, 1, 1), ('NHWC', 'HWIO', 'NHWC'))

    def conv(inp, w_hwio, pad):
        return lax.conv_general_dilated(inp.astype(jnp.bfloat16), w_hwio, (1, 1), pad,
                                        dimension_numbers=dn,
                                        preferred_element_type=jnp.float32)

    t = jnp.maximum(conv(x, w1f.reshape(1, 1, Cin, Cmid), 'VALID') + b1, 0.0)
    t = jnp.maximum(conv(t, w2f.reshape(3, 3, Cmid, Cmid), 'SAME') + b2, 0.0)
    t = conv(t, w3f.reshape(1, 1, Cmid, Cout), 'VALID') + b3
    out = jnp.maximum(t + x.astype(jnp.float32), 0.0)
    return out.astype(jnp.bfloat16)


if __name__ == "__main__":
    key = jax.random.PRNGKey(0)
    k_x, k_p = jax.random.split(key)

    N, block_ch, H, W = 2, 4, 16, 16
    in_ch = block_ch * 4  # 16: identity residual path (downsample=None, stride=1)

    # Activations are NHWC (channels-last) end-to-end -> no boundary transposes.
    x = jax.random.normal(k_x, (N, H, W, in_ch), jnp.float32)
    params = make_params(k_p, in_ch, block_ch)

    out = jax.block_until_ready(bottleneck_pallas(x, params))
    ref = jax.block_until_ready(bottleneck_ref(x, params))

    assert out.shape == (N, H, W, in_ch), out.shape
    assert out.dtype == jnp.bfloat16, out.dtype
    err = float(jnp.max(jnp.abs(out.astype(jnp.float32) - ref.astype(jnp.float32))))
    # bf16 operands + bf16 output: allow a few bf16 ulps of sum-order/rounding skew.
    assert err < 8e-2, err
    print("KERNEL_OK")
</pallas_src>

<mosaic_0001>
module attributes {stable_mosaic.version = 11 : i64} {
  func.func @_bottleneck_kernel(%arg0: i32, %arg1: i32, %arg2: memref<1x16x32x128xbf16, #tpu.memory_space<vmem>>, %arg3: memref<1x1x32x128xbf16, #tpu.memory_space<vmem>>, %arg4: memref<1x1x32x128xbf16, #tpu.memory_space<vmem>>, %arg5: memref<128x128xbf16, #tpu.memory_space<vmem>>, %arg6: memref<3x384x128xbf16, #tpu.memory_space<vmem>>, %arg7: memref<128x128xbf16, #tpu.memory_space<vmem>>, %arg8: memref<1x128xf32, #tpu.memory_space<vmem>>, %arg9: memref<1x128xf32, #tpu.memory_space<vmem>>, %arg10: memref<1x128xf32, #tpu.memory_space<vmem>>, %arg11: memref<1x16x16x128xbf16, #tpu.memory_space<vmem>>) attributes {dimension_semantics = [#tpu.dimension_semantics<parallel>, #tpu.dimension_semantics<parallel>], iteration_bounds = array<i64: 2, 1>, scalar_prefetch = 0 : i64, scratch_operands = 0 : i64, tpu.core_type = #tpu.core_type<tc>, window_params = [{transform_indices = @transform_0, window_bounds = array<i64: 1, 16, 32, 128>}, {transform_indices = @transform_1, window_bounds = array<i64: 1, 1, 32, 128>}, {transform_indices = @transform_2, window_bounds = array<i64: 1, 1, 32, 128>}, {pipeline_mode = #tpu.pipeline_mode<synchronous>, transform_indices = @transform_3, window_bounds = array<i64: 128, 128>}, {pipeline_mode = #tpu.pipeline_mode<synchronous>, transform_indices = @transform_4, window_bounds = array<i64: 3, 384, 128>}, {pipeline_mode = #tpu.pipeline_mode<synchronous>, transform_indices = @transform_5, window_bounds = array<i64: 128, 128>}, {pipeline_mode = #tpu.pipeline_mode<synchronous>, transform_indices = @transform_6, window_bounds = array<i64: 1, 128>}, {pipeline_mode = #tpu.pipeline_mode<synchronous>, transform_indices = @transform_7, window_bounds = array<i64: 1, 128>}, {pipeline_mode = #tpu.pipeline_mode<synchronous>, transform_indices = @transform_8, window_bounds = array<i64: 1, 128>}, {transform_indices = @transform_9, window_bounds = array<i64: 1, 16, 16, 128>}]} {
    %c0 = arith.constant 0 : index
    %c0_0 = arith.constant 0 : index
    %c0_1 = arith.constant 0 : index
    %c0_2 = arith.constant 0 : index
    %0 = vector.load %arg2[%c0, %c0_0, %c0_1, %c0_2] : memref<1x16x32x128xbf16, #tpu.memory_space<vmem>>, vector<1x16x32x128xbf16>
    %1 = vector.shape_cast %0 : vector<1x16x32x128xbf16> to vector<16x32x128xbf16>
    %c0_3 = arith.constant 0 : index
    %c0_4 = arith.constant 0 : index
    %c0_5 = arith.constant 0 : index
    %c0_6 = arith.constant 0 : index
    %2 = vector.load %arg3[%c0_3, %c0_4, %c0_5, %c0_6] : memref<1x1x32x128xbf16, #tpu.memory_space<vmem>>, vector<1x1x32x128xbf16>
    %3 = vector.shape_cast %2 : vector<1x1x32x128xbf16> to vector<1x32x128xbf16>
    %c0_7 = arith.constant 0 : index
    %c0_8 = arith.constant 0 : index
    %c0_9 = arith.constant 0 : index
    %c0_10 = arith.constant 0 : index
    %4 = vector.load %arg4[%c0_7, %c0_8, %c0_9, %c0_10] : memref<1x1x32x128xbf16, #tpu.memory_space<vmem>>, vector<1x1x32x128xbf16>
    %5 = vector.shape_cast %4 : vector<1x1x32x128xbf16> to vector<1x32x128xbf16>
    %6 = tpu.concatenate %3, %1, %5 in 0 : vector<1x32x128xbf16>, vector<16x32x128xbf16>, vector<1x32x128xbf16> -> vector<18x32x128xbf16>
    %c0_11 = arith.constant 0 : index
    %c0_12 = arith.constant 0 : index
    %7 = vector.load %arg5[%c0_11, %c0_12] : memref<128x128xbf16, #tpu.memory_space<vmem>>, vector<128x128xbf16>
    "tpu.trace_start"() <{level = 10 : i32, message = "hwc,cd->hwd"}> : () -> ()
    %cst = arith.constant dense<0.000000e+00> : vector<18x32x128xf32>
    %8 = tpu.matmul %6, %7, %cst {dimension_numbers = #tpu.dot_dimension_numbers<[2], [0], [0, 1], [1], [0, 0, 0, 1, 1, 1], [], []>} : vector<18x32x128xbf16>, vector<128x128xbf16>, vector<18x32x128xf32> -> vector<18x32x128xf32>
    "tpu.trace_stop"() : () -> ()
    %c0_13 = arith.constant 0 : index
    %c0_14 = arith.constant 0 : index
    %9 = vector.load %arg8[%c0_13, %c0_14] : memref<1x128xf32, #tpu.memory_space<vmem>>, vector<1x128xf32>
    %10 = vector.shape_cast %9 : vector<1x128xf32> to vector<1x1x128xf32>
    %11 = vector.broadcast %10 : vector<1x1x128xf32> to vector<18x32x128xf32>
    %12 = arith.addf %8, %11 : vector<18x32x128xf32>
    %cst_15 = arith.constant 0.000000e+00 : f32
    %13 = vector.broadcast %cst_15 : f32 to vector<18x32x128xf32>
    %14 = arith.maximumf %12, %13 : vector<18x32x128xf32>
    %15 = tpu.iota {dimensions = array<i32: 0>} : vector<18x32x128xi32>
    %16 = tpu.iota {dimensions = array<i32: 1>} : vector<18x32x128xi32>
    %c8_i32 = arith.constant 8 : i32
    %17 = vector.broadcast %c8_i32 : i32 to vector<18x32x128xi32>
    %18 = arith.cmpi slt, %16, %17 : vector<18x32x128xi32>
    %c24_i32 = arith.constant 24 : i32
    %19 = vector.broadcast %c24_i32 : i32 to vector<18x32x128xi32>
    %20 = arith.cmpi sge, %16, %19 : vector<18x32x128xi32>
    %21 = arith.ori %18, %20 : vector<18x32x128xi1>
    %c0_i32 = arith.constant 0 : i32
    %22 = vector.broadcast %c0_i32 : i32 to vector<18x32x128xi32>
    %23 = arith.cmpi eq, %15, %22 : vector<18x32x128xi32>
    %c0_i32_16 = arith.constant 0 : i32
    %24 = arith.cmpi eq, %arg1, %c0_i32_16 : i32
    %25 = vector.broadcast %24 : i1 to vector<18x32x128xi1>
    %26 = arith.andi %23, %25 : vector<18x32x128xi1>
    %c17_i32 = arith.constant 17 : i32
    %27 = vector.broadcast %c17_i32 : i32 to vector<18x32x128xi32>
    %28 = arith.cmpi eq, %15, %27 : vector<18x32x128xi32>
    %c0_i32_17 = arith.constant 0 : i32
    %29 = arith.cmpi eq, %arg1, %c0_i32_17 : i32
    %30 = vector.broadcast %29 : i1 to vector<18x32x128xi1>
    %31 = arith.andi %28, %30 : vector<18x32x128xi1>
    %32 = arith.ori %26, %31 : vector<18x32x128xi1>
    %33 = arith.ori %21, %32 : vector<18x32x128xi1>
    %cst_18 = arith.constant 0.000000e+00 : f32
    %34 = vector.broadcast %cst_18 : f32 to vector<18x32x128xf32>
    %35 = arith.select %33, %34, %14 : vector<18x32x128xi1>, vector<18x32x128xf32>
    %36 = arith.truncf %35 : vector<18x32x128xf32> to vector<18x32x128xbf16>
    %37 = vector.extract_strided_slice %36 {offsets = [0, 7, 0], sizes = [18, 16, 128], strides = [1, 1, 1]} : vector<18x32x128xbf16> to vector<18x16x128xbf16>
    %38 = vector.extract_strided_slice %37 {offsets = [0, 0, 0], sizes = [16, 16, 128], strides = [1, 1, 1]} : vector<18x16x128xbf16> to vector<16x16x128xbf16>
    %39 = vector.extract_strided_slice %37 {offsets = [1, 0, 0], sizes = [16, 16, 128], strides = [1, 1, 1]} : vector<18x16x128xbf16> to vector<16x16x128xbf16>
    %40 = vector.extract_strided_slice %37 {offsets = [2, 0, 0], sizes = [16, 16, 128], strides = [1, 1, 1]} : vector<18x16x128xbf16> to vector<16x16x128xbf16>
    %41 = tpu.concatenate %38, %39, %40 in 2 : vector<16x16x128xbf16>, vector<16x16x128xbf16>, vector<16x16x128xbf16> -> vector<16x16x384xbf16>
    %c0_19 = arith.constant 0 : index
    %c0_20 = arith.constant 0 : index
    %c0_21 = arith.constant 0 : index
    %42 = vector.load %arg6[%c0_19, %c0_20, %c0_21] : memref<3x384x128xbf16, #tpu.memory_space<vmem>>, vector<1x384x128xbf16>
    %43 = vector.shape_cast %42 : vector<1x384x128xbf16> to vector<384x128xbf16>
    "tpu.trace_start"() <{level = 10 : i32, message = "hwc,cd->hwd"}> : () -> ()
    %cst_22 = arith.constant dense<0.000000e+00> : vector<16x16x128xf32>
    %44 = tpu.matmul %41, %43, %cst_22 {dimension_numbers = #tpu.dot_dimension_numbers<[2], [0], [0, 1], [1], [0, 0, 0, 1, 1, 1], [], []>} : vector<16x16x384xbf16>, vector<384x128xbf16>, vector<16x16x128xf32> -> vector<16x16x128xf32>
    "tpu.trace_stop"() : () -> ()
    %45 = vector.extract_strided_slice %36 {offsets = [0, 8, 0], sizes = [18, 16, 128], strides = [1, 1, 1]} : vector<18x32x128xbf16> to vector<18x16x128xbf16>
    %46 = vector.extract_strided_slice %45 {offsets = [0, 0, 0], sizes = [16, 16, 128], strides = [1, 1, 1]} : vector<18x16x128xbf16> to vector<16x16x128xbf16>
    %47 = vector.extract_strided_slice %45 {offsets = [1, 0, 0], sizes = [16, 16, 128], strides = [1, 1, 1]} : vector<18x16x128xbf16> to vector<16x16x128xbf16>
    %48 = vector.extract_strided_slice %45 {offsets = [2, 0, 0], sizes = [16, 16, 128], strides = [1, 1, 1]} : vector<18x16x128xbf16> to vector<16x16x128xbf16>
    %49 = tpu.concatenate %46, %47, %48 in 2 : vector<16x16x128xbf16>, vector<16x16x128xbf16>, vector<16x16x128xbf16> -> vector<16x16x384xbf16>
    %c1 = arith.constant 1 : index
    %c0_23 = arith.constant 0 : index
    %c0_24 = arith.constant 0 : index
    %50 = vector.load %arg6[%c1, %c0_23, %c0_24] : memref<3x384x128xbf16, #tpu.memory_space<vmem>>, vector<1x384x128xbf16>
    %51 = vector.shape_cast %50 : vector<1x384x128xbf16> to vector<384x128xbf16>
    "tpu.trace_start"() <{level = 10 : i32, message = "hwc,cd->hwd"}> : () -> ()
    %cst_25 = arith.constant dense<0.000000e+00> : vector<16x16x128xf32>
    %52 = tpu.matmul %49, %51, %cst_25 {dimension_numbers = #tpu.dot_dimension_numbers<[2], [0], [0, 1], [1], [0, 0, 0, 1, 1, 1], [], []>} : vector<16x16x384xbf16>, vector<384x128xbf16>, vector<16x16x128xf32> -> vector<16x16x128xf32>
    "tpu.trace_stop"() : () -> ()
    %53 = arith.addf %44, %52 : vector<16x16x128xf32>
    %54 = vector.extract_strided_slice %36 {offsets = [0, 9, 0], sizes = [18, 16, 128], strides = [1, 1, 1]} : vector<18x32x128xbf16> to vector<18x16x128xbf16>
    %55 = vector.extract_strided_slice %54 {offsets = [0, 0, 0], sizes = [16, 16, 128], strides = [1, 1, 1]} : vector<18x16x128xbf16> to vector<16x16x128xbf16>
    %56 = vector.extract_strided_slice %54 {offsets = [1, 0, 0], sizes = [16, 16, 128], strides = [1, 1, 1]} : vector<18x16x128xbf16> to vector<16x16x128xbf16>
    %57 = vector.extract_strided_slice %54 {offsets = [2, 0, 0], sizes = [16, 16, 128], strides = [1, 1, 1]} : vector<18x16x128xbf16> to vector<16x16x128xbf16>
    %58 = tpu.concatenate %55, %56, %57 in 2 : vector<16x16x128xbf16>, vector<16x16x128xbf16>, vector<16x16x128xbf16> -> vector<16x16x384xbf16>
    %c2 = arith.constant 2 : index
    %c0_26 = arith.constant 0 : index
    %c0_27 = arith.constant 0 : index
    %59 = vector.load %arg6[%c2, %c0_26, %c0_27] : memref<3x384x128xbf16, #tpu.memory_space<vmem>>, vector<1x384x128xbf16>
    %60 = vector.shape_cast %59 : vector<1x384x128xbf16> to vector<384x128xbf16>
    "tpu.trace_start"() <{level = 10 : i32, message = "hwc,cd->hwd"}> : () -> ()
    %cst_28 = arith.constant dense<0.000000e+00> : vector<16x16x128xf32>
    %61 = tpu.matmul %58, %60, %cst_28 {dimension_numbers = #tpu.dot_dimension_numbers<[2], [0], [0, 1], [1], [0, 0, 0, 1, 1, 1], [], []>} : vector<16x16x384xbf16>, vector<384x128xbf16>, vector<16x16x128xf32> -> vector<16x16x128xf32>
    "tpu.trace_stop"() : () -> ()
    %62 = arith.addf %53, %61 : vector<16x16x128xf32>
    %c0_29 = arith.constant 0 : index
    %c0_30 = arith.constant 0 : index
    %63 = vector.load %arg9[%c0_29, %c0_30] : memref<1x128xf32, #tpu.memory_space<vmem>>, vector<1x128xf32>
    %64 = vector.shape_cast %63 : vector<1x128xf32> to vector<1x1x128xf32>
    %65 = vector.broadcast %64 : vector<1x1x128xf32> to vector<16x16x128xf32>
    %66 = arith.addf %62, %65 : vector<16x16x128xf32>
    %cst_31 = arith.constant 0.000000e+00 : f32
    %67 = vector.broadcast %cst_31 : f32 to vector<16x16x128xf32>
    %68 = arith.maximumf %66, %67 : vector<16x16x128xf32>
    %69 = arith.truncf %68 : vector<16x16x128xf32> to vector<16x16x128xbf16>
    %c0_32 = arith.constant 0 : index
    %c0_33 = arith.constant 0 : index
    %70 = vector.load %arg7[%c0_32, %c0_33] : memref<128x128xbf16, #tpu.memory_space<vmem>>, vector<128x128xbf16>
    "tpu.trace_start"() <{level = 10 : i32, message = "hwc,cd->hwd"}> : () -> ()
    %cst_34 = arith.constant dense<0.000000e+00> : vector<16x16x128xf32>
    %71 = tpu.matmul %69, %70, %cst_34 {dimension_numbers = #tpu.dot_dimension_numbers<[2], [0], [0, 1], [1], [0, 0, 0, 1, 1, 1], [], []>} : vector<16x16x128xbf16>, vector<128x128xbf16>, vector<16x16x128xf32> -> vector<16x16x128xf32>
    "tpu.trace_stop"() : () -> ()
    %72 = vector.extract_strided_slice %1 {offsets = [0, 8, 0], sizes = [16, 16, 128], strides = [1, 1, 1]} : vector<16x32x128xbf16> to vector<16x16x128xbf16>
    %73 = arith.extf %72 : vector<16x16x128xbf16> to vector<16x16x128xf32>
    %c0_35 = arith.constant 0 : index
    %c0_36 = arith.constant 0 : index
    %74 = vector.load %arg10[%c0_35, %c0_36] : memref<1x128xf32, #tpu.memory_space<vmem>>, vector<1x128xf32>
    %75 = vector.shape_cast %74 : vector<1x128xf32> to vector<1x1x128xf32>
    %76 = vector.broadcast %75 : vector<1x1x128xf32> to vector<16x16x128xf32>
    %77 = arith.addf %71, %76 : vector<16x16x128xf32>
    %78 = arith.addf %77, %73 : vector<16x16x128xf32>
    %cst_37 = arith.constant 0.000000e+00 : f32
    %79 = vector.broadcast %cst_37 : f32 to vector<16x16x128xf32>
    %80 = arith.maximumf %78, %79 : vector<16x16x128xf32>
    %81 = arith.truncf %80 : vector<16x16x128xf32> to vector<16x16x128xbf16>
    %c0_38 = arith.constant 0 : index
    %c0_39 = arith.constant 0 : index
    %c0_40 = arith.constant 0 : index
    %c0_41 = arith.constant 0 : index
    %82 = vector.load %arg11[%c0_38, %c0_39, %c0_40, %c0_41] : memref<1x16x16x128xbf16, #tpu.memory_space<vmem>>, vector<1x16x16x128xbf16>
    %83 = vector.shape_cast %82 : vector<1x16x16x128xbf16> to vector<16x16x128xbf16>
    %84 = vector.shape_cast %81 : vector<16x16x128xbf16> to vector<1x16x16x128xbf16>
    tpu.vector_store %arg11[%c0_38, %c0_39, %c0_40, %c0_41], %84 {strides = array<i32>} : memref<1x16x16x128xbf16, #tpu.memory_space<vmem>>, vector<1x16x16x128xbf16>,
    return
  }
  func.func @transform_0(%arg0: i32, %arg1: i32) -> (i32, i32, i32, i32) {
    %c0_i32 = arith.constant 0 : i32
    %c0_i32_0 = arith.constant 0 : i32
    %c0_i32_1 = arith.constant 0 : i32
    return %arg0, %arg1, %c0_i32, %c0_i32_0 : i32, i32, i32, i32
  }
  func.func @transform_1(%arg0: i32, %arg1: i32) -> (i32, i32, i32, i32) {
    %c16_i32 = arith.constant 16 : i32
    %0 = arith.muli %arg1, %c16_i32 : i32
    %c1_i32 = arith.constant 1 : i32
    %1 = arith.subi %0, %c1_i32 : i32
    %c0_i32 = arith.constant 0 : i32
    %2 = arith.maxsi %1, %c0_i32 : i32
    %c0_i32_0 = arith.constant 0 : i32
    %c0_i32_1 = arith.constant 0 : i32
    %c0_i32_2 = arith.constant 0 : i32
    return %arg0, %2, %c0_i32_0, %c0_i32_1 : i32, i32, i32, i32
  }
  func.func @transform_2(%arg0: i32, %arg1: i32) -> (i32, i32, i32, i32) {
    %c16_i32 = arith.constant 16 : i32
    %0 = arith.muli %arg1, %c16_i32 : i32
    %c16_i32_0 = arith.constant 16 : i32
    %1 = arith.addi %0, %c16_i32_0 : i32
    %c15_i32 = arith.constant 15 : i32
    %2 = arith.minsi %1, %c15_i32 : i32
    %c0_i32 = arith.constant 0 : i32
    %c0_i32_1 = arith.constant 0 : i32
    %c0_i32_2 = arith.constant 0 : i32
    return %arg0, %2, %c0_i32, %c0_i32_1 : i32, i32, i32, i32
  }
  func.func @transform_3(%arg0: i32, %arg1: i32) -> (i32, i32) {
    %c0_i32 = arith.constant 0 : i32
    %c0_i32_0 = arith.constant 0 : i32
    %c0_i32_1 = arith.constant 0 : i32
    return %c0_i32, %c0_i32_0 : i32, i32
  }
  func.func @transform_4(%arg0: i32, %arg1: i32) -> (i32, i32, i32) {
    %c0_i32 = arith.constant 0 : i32
    %c0_i32_0 = arith.constant 0 : i32
    %c0_i32_1 = arith.constant 0 : i32
    %c0_i32_2 = arith.constant 0 : i32
    return %c0_i32, %c0_i32_0, %c0_i32_1 : i32, i32, i32
  }
  func.func @transform_5(%arg0: i32, %arg1: i32) -> (i32, i32) {
    %c0_i32 = arith.constant 0 : i32
    %c0_i32_0 = arith.constant 0 : i32
    %c0_i32_1 = arith.constant 0 : i32
    return %c0_i32, %c0_i32_0 : i32, i32
  }
  func.func @transform_6(%arg0: i32, %arg1: i32) -> (i32, i32) {
    %c0_i32 = arith.constant 0 : i32
    %c0_i32_0 = arith.constant 0 : i32
    %c0_i32_1 = arith.constant 0 : i32
    return %c0_i32, %c0_i32_0 : i32, i32
  }
  func.func @transform_7(%arg0: i32, %arg1: i32) -> (i32, i32) {
    %c0_i32 = arith.constant 0 : i32
    %c0_i32_0 = arith.constant 0 : i32
    %c0_i32_1 = arith.constant 0 : i32
    return %c0_i32, %c0_i32_0 : i32, i32
  }
  func.func @transform_8(%arg0: i32, %arg1: i32) -> (i32, i32) {
    %c0_i32 = arith.constant 0 : i32
    %c0_i32_0 = arith.constant 0 : i32
    %c0_i32_1 = arith.constant 0 : i32
    return %c0_i32, %c0_i32_0 : i32, i32
  }
  func.func @transform_9(%arg0: i32, %arg1: i32) -> (i32, i32, i32, i32) {
    %c0_i32 = arith.constant 0 : i32
    %c0_i32_0 = arith.constant 0 : i32
    %c0_i32_1 = arith.constant 0 : i32
    return %arg0, %arg1, %c0_i32, %c0_i32_0 : i32, i32, i32, i32
  }
}

</mosaic_0001>

<bundles_post_ra>
// kernel: tpu_custom_call.1
= control target key start
LH: loop header
LB: loop body
LE: loop exit
PB: predicated region body
PF: predicated region fallthrough
CT: control target
= control target key end

     0   :  { %s6454_s0 = inlined_call_operand.hbm [shape: bf16[2,16,32,128], index: 0, kind: input, shape index: {}]   ;;  %s6455_s1 = inlined_call_operand.hbm [shape: bf16[2,16,32,128], index: 1, kind: input, shape index: {}]   ;;  %s6456_s2 = inlined_call_operand.hbm [shape: bf16[2,16,32,128], index: 2, kind: input, shape index: {}]   ;;  %s6457_s3 = inlined_call_operand.hbm [shape: bf16[128,128], index: 3, kind: input, shape index: {}]   ;;  %s6458_s4 = inlined_call_operand.hbm [shape: bf16[3,384,128], index: 4, kind: input, shape index: {}]   ;;  %s6459_s5 = inlined_call_operand.hbm [shape: bf16[128,128], index: 5, kind: input, shape index: {}]   ;;  %s6460_s6 = inlined_call_operand.vmem [shape: f32[1,128], index: 6, kind: input, shape index: {}]   ;;  %s6461_s7 = inlined_call_operand.vmem [shape: f32[1,128], index: 7, kind: input, shape index: {}]   ;;  %s6462_s8 = inlined_call_operand.vmem [shape: f32[1,128], index: 8, kind: input, shape index: {}]   ;;  %s6463_s9 = inlined_call_operand.hbm [shape: bf16[2,16,16,128], index: 9, kind: output, shape index: {}]  }
   0x1   :  { %6513 = sst [smem:[#allocation67_spill]] %s6455_s1 }
   0x2   :  { %6514 = sst [smem:[#allocation68_spill]] %s6457_s3 }
   0x3   :  { %6515 = sst [smem:[#allocation69_spill]] %s6463_s9 }
   0x4   :  { %14 = vsyncpa [#allocation3], 0 }
   0x5   :  { %16 = vsyncpa [#allocation3 + $0x1], 0 }
   0x6   :  { %17 = vsyncpa [#allocation6], 0 }
   0x7   :  { %19 = vsyncpa [#allocation6 + $0x1], 0 }
   0x8   :  { %20 = vsyncpa [#allocation9], 0 }
   0x9   :  { %21 = vsyncpa [#allocation12], 0 }
   0xa   :  { %22 = vsyncpa [#allocation4], 0 }
   0xb   :  { %24 = vsyncpa [#allocation4 + $0x1], 0  ;;  %s5449_s30 = smov 0   ;;  %s5451_s10 = smov 0  }
   0xc   :  { %s5453_s11 = smov 0   ;;  %s5455_s12 = smov 0  }
   0xd   :  { %s5457_s13 = smov 0   ;;  %s5459_s14 = smov 0  }
   0xe LB: > { %6516 = sst [smem:[#allocation19_spill]] %s5369_s30  ;;  %s5480_s15 = sadd.s32 4294967295, %s5389_s14   ;;  %s5389_s14 = sphi %s5459_s14, %s30_s14   ;;  %s5385_s13 = sphi %s5457_s13, %s6626_s13   ;;  %s5381_s12 = sphi %s5455_s12, %s6625_s12   ;;  %s5377_s11 = sphi %s5453_s11, %s6624_s11   ;;  %s5373_s10 = sphi %s5451_s10, %s6628_s10   ;;  %s5369_s30 = sphi %s5449_s30, %s6627_s30  }
   0xf   : > { %6517 = sst [smem:[#allocation20_spill]] %s5377_s11  ;;  %s4238_s16 = sadd.s32 4294967294, %s5389_s14  }
  0x10   : > { %6518 = sst [smem:[#allocation21_spill]] %s5381_s12  ;;  %p64_p0 = scmp.ne.s32.totalorder %s5373_s10, %s5369_s30 }
  0x11   : > { %6519 = sst [smem:[#allocation22_spill]] %s5385_s13  ;;  %p65_p1 = scmp.eq.s32.totalorder %s5480_s15, 0 }
  0x12   : > { %6520 = sst [smem:[#allocation23_spill]] %s5389_s14  ;;  %p288_p2 = scmp.eq.s32.totalorder %s5480_s15, 1 }
  0x13   : > { %p294_p3 = scmp.eq.s32.totalorder %s4238_s16, 1  ;;  %p5489_p4 = por %p65_p1, %p64_p0 }
  0x14   : > { %p4239_p5 = scmp.ge.s32.totalorder %s5389_s14, 1  ;;  %p301_p7 = scmp.lt.s32.totalorder %s5389_s14, 3 }
  0x15   : > { %p5494_p6 = por %p294_p3, %p64_p0  ;;  %s6524_s3 = sld [smem:[#allocation68_spill]] }
  0x16   : > { %p5502_p8 = pnand %p4239_p5, %p301_p7  ;;  %s5391_s23 = smov [#allocation8]  }
  0x17   : > { %s6522_s18 = scalar_select %p5494_p6, 1, 0 }
  0x18   : > { %p5023_p9 = pneg %p5502_p8  ;;  %s314_s24 = sshll.u32 %s5391_s23, 4  ;;  %s315_s24 = int_to_ptr.vmem [resolvable:$true] %s314_s24 }
  0x19   : > { %6523 = sst [smem:[#allocation24_spill]] %s6522_s18  ;;  %s6464_s26 = smov 64  }
  0x1a   : > { %p5510_p10 = pnand %p5023_p9, %p65_p1  ;;  %s6466_s27 = smov 4  }
  0x1b   : > { %s312_s21 = sshll.u32 %s6524_s3, 4  ;;  %s42_s28 = sadd.s32 1, %s5385_s13  ;;  %s313_s21 = int_to_ptr.hbm [resolvable:$true] %s312_s21 }
  0x1c   : > { %5026 = dma.hbm_to_vmem [thread:$0]  (!%p5510_p10), %s313_s21, 1024, %s315_s24, [#allocation9], %s6464_s26, %s6464_s26, %s6466_s27  }
  0x1d   : > { %p44_p12 = scmp.ge.s32.totalorder %s42_s28, 2  ;;  %s51_s29 = sadd.s32 1, %s5377_s11 }
  0x1e   : > { %p58_p13 = scmp.ne.s32.totalorder %s5377_s11, %s5373_s10  ;;  %p59_p0 = scmp.eq.s32.totalorder %s5389_s14, 0 }
  0x1f   : > { %s6630_s28 = smov (%p44_p12, %s42_s28), 0  ;;  %p5050_p7 = scmp.lt.s32.totalorder %s5389_s14, 2 }
  0x20   : > { %6527 = sst [smem:[#allocation25_spill]] %s6630_s28  ;;  %p60_p3 = por %p59_p0, %p58_p13 }
  0x21   : > { %p5529_p5 = por %p288_p2, %p58_p13  ;;  %s46_s19 = ssub.s32 %s5385_s13, %s6630_s28 }
  0x22   : > { %p49_p9 = scmp.eq.s32.totalorder %s46_s19, 0  ;;  %s5537_s20 = sand.u32 1, %s5377_s11  }
  0x23   : > { %s6528_s16 = scalar_select %p5529_p5, 1, 0 }
  0x24   : > { %s5540_s21 = sshll.u32 %s5385_s13, 8  ;;  %p5542_p11 = pnand %p5050_p7, %p60_p3 }
  0x25   : > { %6529 = sst [smem:[#allocation26_spill]] %s6528_s16  ;;  %s390_s26 = sand.u32 1, %s5389_s14  }
  0x26   : > { %s5547_s24 = scalar_select %p49_p9, %s5377_s11, %s51_s29  }
  0x27   : > { %s4247_s27 = sshll.u32 %s5537_s20, 4  ;;  %s6532_s1 = sld [smem:[#allocation67_spill]] }
  0x28   : > { %6531 = sst [smem:[#allocation27_spill]] %s5547_s24  ;;  %s394_s30 = scalar_lea.vmem [#allocation5], %s4247_s27 }
  0x29   : > { %s408_s16 = sshll.u32 %s394_s30, 4  ;;  %s5555_s13 = scalar_lea.sflag [#allocation6], %s390_s26  ;;  %s409_s16 = int_to_ptr.vmem [resolvable:$true] %s408_s16 }
  0x2a   : > { %s6533_s9 = smov 4   ;;  %s6534_s12 = smov 64  }
  0x2b   : > { %s326_s3 = sshll.u32 %s6458_s4, 4  ;;  %s422_s18 = scalar_lea.vmem [#allocation7], %s4247_s27  ;;  %s327_s3 = int_to_ptr.hbm [resolvable:$true] %s326_s3 }
  0x2c   : > { %s5394_s30 = smov [#allocation10]   ;;  %s340_s14 = sshll.u32 %s6459_s5, 4  ;;  %s341_s14 = int_to_ptr.hbm [resolvable:$true] %s340_s14 }
  0x2d   : > { %s405_s28 = scalar_lea.hbm %s6532_s1, %s5540_s21  ;;  %s328_s1 = sshll.u32 %s5394_s30, 4  ;;  %s329_s1 = int_to_ptr.vmem [resolvable:$true] %s328_s1 }
  0x2e   : > { %s406_s19 = sshll.u32 %s405_s28, 4  ;;  %s436_s28 = sshll.u32 %s422_s18, 4  ;;  %s407_s19 = int_to_ptr.hbm [resolvable:$true] %s406_s19  ;;  %s437_s28 = int_to_ptr.vmem [resolvable:$true] %s436_s28 }
  0x2f   : > { %5039 = dma.hbm_to_vmem [thread:$0]  (!%p5542_p11), %s407_s19, 256, %s409_s16, %s5555_s13, %s6534_s12, %s6534_s12, %s6533_s9  }
  0x30   : > { %5029 = dma.hbm_to_vmem [thread:$0]  (!%p5510_p10), %s327_s3, 9216, %s329_s1, [#allocation9], %s6534_s12, %s6534_s12, %s6533_s9  }
  0x31   : > { %s5395_s16 = smov [#allocation11]   ;;  %s4244_s24 = sshll.u32 %s5537_s20, 8 }
  0x32   : > { %s342_s27 = sshll.u32 %s5395_s16, 4  ;;  %s377_s29 = scalar_lea.hbm %s6454_s0, %s5540_s21  ;;  %s343_s27 = int_to_ptr.vmem [resolvable:$true] %s342_s27 }
  0x33   : > { %5032 = dma.hbm_to_vmem [thread:$0]  (!%p5510_p10), %s341_s14, 1024, %s343_s27, [#allocation12], %s6534_s12, %s6534_s12, %s6533_s9  }
  0x34   : > { %s369_s18 = scalar_lea.vmem [#allocation2], %s4244_s24  ;;  %s378_s26 = sshll.u32 %s377_s29, 4  ;;  %s379_s26 = int_to_ptr.hbm [resolvable:$true] %s378_s26 }
  0x35   : > { %s380_s30 = sshll.u32 %s369_s18, 4  ;;  %s4765_s1 = sadd.s32 240, %s5540_s21  ;;  %s381_s30 = int_to_ptr.vmem [resolvable:$true] %s380_s30 }
  0x36   : > { %s366_s3 = scalar_lea.sflag [#allocation3], %s5537_s20  ;;  %s433_s14 = scalar_lea.hbm %s6456_s2, %s4765_s1 }
  0x37   : > { %5036 = dma.hbm_to_vmem [thread:$0]  (!%p5542_p11), %s379_s26, 4096, %s381_s30, %s366_s3, %s6534_s12, %s6534_s12, %s6533_s9  }
  0x38   : > { %s434_s27 = sshll.u32 %s433_s14, 4  ;;  %448 = sbr.rel (%p5502_p8) target bundleno = 1588 (0x634), region = 56  ;;  %s435_s27 = int_to_ptr.hbm [resolvable:$true] %s434_s27 }
  0x39   : > { %5042 = dma.hbm_to_vmem [thread:$0]  (!%p5542_p11), %s435_s27, 256, %s437_s28, %s5555_s13, %s6534_s12, %s6534_s12, %s6533_s9  }
  0x3d   : > { %s5603_s20 = sand.u32 1, %s5373_s10  }
  0x3e   : > { %s4254_s21 = sshll.u32 %s5603_s20, 8  ;;  %s451_s24 = scalar_lea.sflag [#allocation3], %s5603_s20 }
  0x3f   : > { %s5607_s11 = scalar_lea.vmem [#allocation2], %s4254_s21 }
  0x40   : > { %5348 = dma.done.wait (%p5489_p4), %s451_s24, 4096  }
  0x41   : > { %5350 = vsyncadd (%p5489_p4), %s451_s24, 4294963200  ;;  %s460_s9 = sand.u32 1, %s5480_s15   ;;  %s4255_s12 = sshll.u32 %s5603_s20, 4 }
  0x42   : > { %s461_s13 = scalar_lea.sflag [#allocation6], %s460_s9  ;;  %s5615_s22 = scalar_lea.vmem [#allocation5], %s4255_s12 }
  0x43   : > { %5352 = dma.done.wait (%p5489_p4), %s461_s13, 512  }
  0x44   : > { %5354 = vsyncadd (%p5489_p4), %s461_s13, 4294966784  ;;  %s5621_s23 = scalar_lea.vmem [#allocation7], %s4255_s12 }
  0x45   : > { %5356 = dma.done.wait (%p65_p1), [#allocation9], 10240  }
  0x46   : > { %5358 = vsyncadd (%p65_p1), [#allocation9], 4294957056 }
  0x47   : > { %5360 = dma.done.wait (%p65_p1), [#allocation12], 1024  }
  0x48   : > { %5362 = vsyncadd (%p65_p1), [#allocation12], 4294966272  ;;  %v4809_v0 = vld [vmem:[#allocation8 + $0x38] sm:$0xff]  ;;  %v4808_v1 = vld [vmem:[#allocation8 + $0x30] sm:$0xff]  ;;  %v5396_v32 = vmov 0.0|0.0   ;;  %s4260_s1 = sshll.u32 %s5603_s20, 7 }
  0x49   : > { %901 = vmatpush.bf16.msra.mxu0 %v4809_v0  ;;  %4987 = vmatpush.bf16.msra.mxu1 %v4809_v0  ;;  %v4807_v2 = vld [vmem:[#allocation8 + $0x28] sm:$0xff]  ;;  %v4806_v3 = vld [vmem:[#allocation8 + $0x20] sm:$0xff]  ;;  %v4805_v4 = vld [vmem:[#allocation8 + $0x18] sm:$0xff]  ;;  %v5642_v33 = vunpack.c.l.b16 %v5396_v32  ;;  %vm2023_vm0 = vsmask.f32 4352  ;;  %s6329_s3 = scalar_lea.vmem [#allocation13], %s4260_s1 }
  0x4a   : > { %4988 = vmatpush.bf16.msra.mxu2 %v4809_v0  ;;  %v4804_v5 = vld [vmem:[#allocation8 + $0x10] sm:$0xff]  ;;  %v4803_v6 = vld [vmem:[#allocation8 + $0x8] sm:$0xff]  ;;  %v4802_v7 = vld [vmem:[#allocation8] sm:$0xff]  ;;  %vm2862_vm1 = vsmask.f32 7424  ;;  %s6616_s25 = sld [smem:[#allocation21_spill]] }
  0x4b   : > { %v4798_v8 = vld [vmem:[%s5615_s22] sm:$0xff]  ;;  %v4799_v9 = vld [vmem:[%s5615_s22 + $0x8] sm:$0xff]  ;;  %v5647_v36 = vpack.c.b16 %v5642_v33, %v5642_v33  ;;  %s6617_s21 = sld [smem:[#allocation69_spill]]  ;;  %s4069_s12 = sshll.u32 %s6329_s3, 4  ;;  %s4070_s12 = int_to_ptr.vmem [resolvable:$true] %s4069_s12 }
  0x4c   : > { %v4766_v10 = vld [vmem:[%s5607_s11] sm:$0xff]  ;;  %v4767_v11 = vld [vmem:[%s5607_s11 + $0x8] sm:$0xff]  ;;  %v4768_v12 = vld [vmem:[%s5607_s11 + $0x10] sm:$0xff] }
  0x4d   : > { %902 = vmatpush.bf16.msra.mxu0 %v4808_v1  ;;  %4989 = vmatpush.bf16.msra.mxu1 %v4808_v1  ;;  %v4769_v13 = vld [vmem:[%s5607_s11 + $0x18] sm:$0xff]  ;;  %v4770_v14 = vld [vmem:[%s5607_s11 + $0x20] sm:$0xff]  ;;  %v4840_v17 = vld [vmem:[#allocation10 + $0xf0] sm:$0xff] }
  0x4e   : > { %4990 = vmatpush.bf16.msra.mxu2 %v4808_v1  ;;  %v4797_v15 = vld [vmem:[%s5607_s11 + $0xf8] sm:$0xff]  ;;  %v4771_v18 = vld [vmem:[%s5607_s11 + $0x28] sm:$0xff]  ;;  %v4838_v20 = vld [vmem:[#allocation10 + $0xe0] sm:$0xff] }
  0x4f   : > { %v4841_v16 = vld [vmem:[#allocation10 + $0xf8] sm:$0xff]  ;;  %v4839_v19 = vld [vmem:[#allocation10 + $0xe8] sm:$0xff]  ;;  %v4800_v21 = vld [vmem:[%s5621_s23] sm:$0xff] }
  0x50   : > { %v4837_v22 = vld [vmem:[#allocation10 + $0xd8] sm:$0xff]  ;;  %v4836_v24 = vld [vmem:[#allocation10 + $0xd0] sm:$0xff]  ;;  %v4835_v28 = vld [vmem:[#allocation10 + $0xc8] sm:$0xff]  ;;  %s4890_s16 = sshll.u32 %s6616_s25, 7 }
  0x51   : > { %903 = vmatpush.bf16.msra.mxu0 %v4807_v2  ;;  %4991 = vmatpush.bf16.msra.mxu1 %v4807_v2  ;;  %v4849_v23 = vld [vmem:[#allocation10 + $0x138] sm:$0xff]  ;;  %v4848_v25 = vld [vmem:[#allocation10 + $0x130] sm:$0xff]  ;;  %v4847_v29 = vld [vmem:[#allocation10 + $0x128] sm:$0xff]  ;;  %s4068_s24 = scalar_lea.hbm %s6617_s21, %s4890_s16  ;;  %s5315_s28 = scalar_lea.hbm %s6617_s21, 256 }
  0x52   : > { %4992 = vmatpush.bf16.msra.mxu2 %v4807_v2  ;;  %v4772_v26 = vld [vmem:[%s5607_s11 + $0x30] sm:$0xff]  ;;  %v4834_v30 = vld [vmem:[#allocation10 + $0xc0] sm:$0xff]  ;;  %v4801_v35 = vld [vmem:[%s5621_s23 + $0x8] sm:$0xff]  ;;  %s4071_s13 = sshll.u32 %s4068_s24, 4  ;;  %s4072_s13 = int_to_ptr.hbm [resolvable:$true] %s4071_s13 }
  0x53   : > { %v4846_v31 = vld [vmem:[#allocation10 + $0x120] sm:$0xff]  ;;  %v4845_v37 = vld [vmem:[#allocation10 + $0x118] sm:$0xff]  ;;  %v4844_v38 = vld [vmem:[#allocation10 + $0x110] sm:$0xff]  ;;  %s5309_s22 = sshra.s32 %s4072_s13, 4  ;;  %s5310_s22 = int_to_ptr.hbm [resolvable:$true] %s5309_s22 }
  0x54   : > { %v4773_v39 = vld [vmem:[%s5607_s11 + $0x38] sm:$0xff]  ;;  %v4843_v41 = vld [vmem:[#allocation10 + $0x108] sm:$0xff]  ;;  %v4842_v42 = vld [vmem:[#allocation10 + $0x100] sm:$0xff]  ;;  %s5311_s23 = scalar_lea.hbm %s5310_s22, 128  ;;  %p5316_p8 = scmp.lt.s32.totalorder %s5310_s22, %s6617_s21 }
  0x55   : > { %904 = vmatpush.bf16.msra.mxu0 %v4806_v3  ;;  %4993 = vmatpush.bf16.msra.mxu1 %v4806_v3  ;;  %v4857_v44 = vld [vmem:[#allocation10 + $0x178] sm:$0xff]  ;;  %v4856_v45 = vld [vmem:[#allocation10 + $0x170] sm:$0xff]  ;;  %v4774_v46 = vld [vmem:[%s5607_s11 + $0x40] sm:$0xff]  ;;  %p5312_p1 = scmp.ne.s32.totalorder %s5310_s22, %s5311_s23  ;;  %p5317_p10 = scmp.lt.s32.totalorder %s5315_s28, %s5311_s23 }
  0x56   : > { %4994 = vmatpush.bf16.msra.mxu2 %v4806_v3  ;;  %1934 = vmatpush.bf16.msra.mxu3 %v4857_v44  ;;  %v4855_v48 = vld [vmem:[#allocation10 + $0x168] sm:$0xff]  ;;  %v5655_v49 = vld [vmem:[%s6460_s6] ss:$0 sm:$0xff]  ;;  %v4853_v53 = vld [vmem:[#allocation10 + $0x158] sm:$0xff] }
  0x57   : > { %v4854_v50 = vld [vmem:[#allocation10 + $0x160] sm:$0xff]  ;;  %v4852_v56 = vld [vmem:[#allocation10 + $0x150] sm:$0xff]  ;;  %v4775_v58 = vld [vmem:[%s5607_s11 + $0x48] sm:$0xff]  ;;  %p5313_p2 = pnand %p5312_p1, %p5529_p5  ;;  %p5318_p11 = por %p5317_p10, %p5316_p8 }
  0x58   : > { %v4851_v61 = vld [vmem:[#allocation10 + $0x148] sm:$0xff]  ;;  %v4850_v1 = vld [vmem:[#allocation10 + $0x140] sm:$0xff] }
  0x59   : > { %905 = vmatpush.bf16.msra.mxu0 %v4805_v4  ;;  %4995 = vmatpush.bf16.msra.mxu1 %v4805_v4  ;;  %v4778_v44 = vld [vmem:[%s5607_s11 + $0x60] sm:$0xff]  ;;  %p5314_p4 = pneg %p5313_p2 }
  0x5a   : > { %4996 = vmatpush.bf16.msra.mxu2 %v4805_v4  ;;  %1935 = vmatpush.bf16.msra.mxu3 %v4856_v45 }
  0x5b   : > { %p5319_p12 = pnand %p5318_p11, %p5314_p4 }
  0x5d   : > { %906 = vmatpush.bf16.msra.mxu0 %v4804_v5  ;;  %4997 = vmatpush.bf16.msra.mxu1 %v4804_v5 }
  0x5e   : > { %4998 = vmatpush.bf16.msra.mxu2 %v4804_v5  ;;  %1936 = vmatpush.bf16.msra.mxu3 %v4855_v48 }
  0x61   : > { %907 = vmatpush.bf16.msra.mxu0 %v4803_v6  ;;  %4999 = vmatpush.bf16.msra.mxu1 %v4803_v6 }
  0x62   : > { %5000 = vmatpush.bf16.msra.mxu2 %v4803_v6  ;;  %1937 = vmatpush.bf16.msra.mxu3 %v4854_v50 }
  0x65   : > { %908 = vmatpush.bf16.msra.mxu0 %v4802_v7  ;;  %5001 = vmatpush.bf16.msra.mxu1 %v4802_v7 }
  0x66   : > { %5002 = vmatpush.bf16.msra.mxu2 %v4802_v7  ;;  %1938 = vmatpush.bf16.msra.mxu3 %v4853_v53 }
  0x68   : > { %909 = vmatmul.bf16.vlgmr.msra.gmra.mxu0 %v4798_v8  ;;  %1074 = vmatmul.bf16.vlgmr.msra.gmra.mxu1 %v4797_v15 }
  0x69   : > { %1756 = vmatpush.bf16.msrb.mxu1 %v4841_v16  ;;  %1084 = vmatmul.bf16.vlgmr.msra.gmra.mxu2 %v4801_v35 }
  0x6a   : > { %1845 = vmatpush.bf16.msrb.mxu2 %v4849_v23  ;;  %1939 = vmatpush.bf16.msra.mxu3 %v4852_v56  ;;  %v4779_v56 = vld [vmem:[%s5607_s11 + $0x68] sm:$0xff] }
  0x6d   : > { %1757 = vmatpush.bf16.msrb.mxu1 %v4840_v17 }
  0x6e   : > { %1846 = vmatpush.bf16.msrb.mxu2 %v4848_v25  ;;  %1940 = vmatpush.bf16.msra.mxu3 %v4851_v61 }
  0x71   : > { %1758 = vmatpush.bf16.msrb.mxu1 %v4839_v19 }
  0x72   : > { %1847 = vmatpush.bf16.msrb.mxu2 %v4847_v29  ;;  %1941 = vmatpush.bf16.msra.mxu3 %v4850_v1 }
  0x75   : > { %1759 = vmatpush.bf16.msrb.mxu1 %v4838_v20 }
  0x76   : > { %1848 = vmatpush.bf16.msrb.mxu2 %v4846_v31 }
  0x78   : > { %914 = vmatmul.bf16.gmra.mxu0 %v4799_v9  ;;  %1079 = vmatmul.bf16.gmra.mxu1 %v4800_v21 }
  0x79   : > { %1760 = vmatpush.bf16.msrb.mxu1 %v4837_v22 }
  0x7a   : > { %1849 = vmatpush.bf16.msrb.mxu2 %v4845_v37 }
  0x7d   : > { %1761 = vmatpush.bf16.msrb.mxu1 %v4836_v24  ;;  %v4777_v24 = vld [vmem:[%s5607_s11 + $0x58] sm:$0xff] }
  0x7e   : > { %1850 = vmatpush.bf16.msrb.mxu2 %v4844_v38 }
  0x81   : > { %1762 = vmatpush.bf16.msrb.mxu1 %v4835_v28 }
  0x82   : > { %1851 = vmatpush.bf16.msrb.mxu2 %v4843_v41 }
  0x85   : > { %1763 = vmatpush.bf16.msrb.mxu1 %v4834_v30 }
  0x86   : > { %1852 = vmatpush.bf16.msrb.mxu2 %v4842_v42 }
  0x88   : > { %919 = vmatmul.bf16.gmra.mxu0 %v4766_v10  ;;  %1764 = vmatmul.bf16.vlgmr.msrb.gmra.mxu1 %v5647_v36 }
  0x98   : > { %924 = vmatmul.bf16.gmra.mxu0 %v4767_v11 }
  0xa8   : > { %929 = vmatmul.bf16.gmra.mxu0 %v4768_v12 }
  0xb8   : > { %934 = vmatmul.bf16.gmra.mxu0 %v4769_v13 }
  0xc8   : > { %939 = vmatmul.bf16.gmra.mxu0 %v4770_v14  ;;  %v4776_v14 = vld [vmem:[%s5607_s11 + $0x50] sm:$0xff] }
  0xd8   : > { %944 = vmatmul.bf16.gmra.mxu0 %v4771_v18 }
  0xe5   : > { %v910_v27 = vpop.f32.mrf.mxu0 }
  0xe8   : > { %949 = vmatmul.bf16.gmra.mxu0 %v4772_v26 }
  0xed   : > { %v912_v34 = vpop.f32.mrf.mxu0 }
  0xf5   : > { %v915_v40 = vpop.f32.mrf.mxu0 }
  0xf8   : > { %954 = vmatmul.bf16.gmra.mxu0 %v4773_v39 }
  0xfd   : > { %v917_v43 = vpop.f32.mrf.mxu0 }
 0x105   : > { %v920_v47 = vpop.f32.mrf.mxu0 }
 0x108   : > { %959 = vmatmul.bf16.gmra.mxu0 %v4774_v46 }
 0x10d   : > { %v922_v51 = vpop.f32.mrf.mxu0 }
 0x10e   : > { %v923_v52 = vadd.f32 %v5655_v49, %v922_v51 }
 0x110   : > { %v1095_v54 = vmax.f32 %v923_v52, 0.0  ;;  %v5683_v52 = vpop.f32.mrf.mxu1 }
 0x112   : > { %v1268_v55 = vpack.c.bf16 %v1095_v54, %v1095_v54 }
 0x114   : > { %v1387_v57 = vunpack.c.l.b16 %v1268_v55 }
 0x115   : > { %v925_v59 = vpop.f32.mrf.mxu0 }
 0x116   : > { %v926_v60 = vadd.f32 %v5655_v49, %v925_v59  ;;  %v1433_v62 = vpack.c.b16 %v1387_v57, %v5642_v33 }
 0x118   : > { %v1096_v63 = vmax.f32 %v926_v60, 0.0  ;;  %964 = vmatmul.bf16.gmra.mxu0 %v4775_v58  ;;  %v2042_v2 = vshrl.u32 %v1433_v62, 16  ;;  %v2045_v3 = vshll.u32 %v1433_v62, 16  ;;  %v1077_v59 = vpop.f32.mrf.mxu1 }
 0x11a   : > { %v1269_v0 = vpack.c.bf16 %v1096_v63, %v1096_v63  ;;  %v2044_v8 = vrot.slane %v2042_v2, 3  ;;  %v2047_v9 = vrot.slane %v2045_v3, 4 }
 0x11c   : > { %v1388_v4 = vunpack.c.l.b16 %v1269_v0  ;;  %v2048_v15 = vor.u32 %v2047_v9, %v2044_v8 }
 0x11d   : > { %v927_v5 = vpop.f32.mrf.mxu0 }
 0x11e   : > { %v1434_v6 = vpack.c.b16 %v1388_v4, %v1388_v4  ;;  %v5661_v7 = vpack.c.b16 %v1388_v4, %v1387_v57 }
 0x120   : > { %6535 = vst [vmem:[#allocation28_spill] sm:$0xff] %v5661_v7  ;;  %v2050_v10 = vshrl.u32 %v1434_v6, 16  ;;  %v2053_v11 = vshll.u32 %v1434_v6, 16  ;;  %1769 = vmatmul.bf16.gmra.mxu1 %v5661_v7  ;;  %1853 = vmatmul.bf16.vlgmr.msrb.gmra.mxu2 %v5661_v7  ;;  %v1080_v5 = vpop.f32.mrf.mxu1 }
 0x122   : > { %v2052_v12 = vrot.slane %v2050_v10, 3  ;;  %v2055_v13 = vrot.slane %v2053_v11, 4 }
 0x124   : > { %v2056_v16 = vor.u32 %v2055_v13, %v2052_v12  ;;  %v4780_v13 = vld [vmem:[%s5607_s11 + $0x70] sm:$0xff] }
 0x125   : > { %v930_v17 = vpop.f32.mrf.mxu0 }
 0x126   : > { %v5667_v18 = vsel %vm2023_vm0, %v2048_v15, %v2056_v16 }
 0x128   : > { %969 = vmatmul.bf16.gmra.mxu0 %v4776_v14  ;;  %v1082_v17 = vpop.f32.mrf.mxu1 }
 0x12d   : > { %v932_v19 = vpop.f32.mrf.mxu0 }
 0x12e   : > { %v933_v20 = vadd.f32 %v5655_v49, %v932_v19 }
 0x130   : > { %v1099_v21 = vmax.f32 %v933_v20, 0.0  ;;  %v1765_v17 = vpop.f32.mrf.mxu1 }
 0x132   : > { %v1272_v22 = vpack.c.bf16 %v1099_v21, %v1099_v21 }
 0x134   : > { %v1390_v23 = vunpack.c.l.b16 %v1272_v22 }
 0x135   : > { %v935_v25 = vpop.f32.mrf.mxu0 }
 0x136   : > { %v936_v26 = vadd.f32 %v5655_v49, %v935_v25  ;;  %v1435_v27 = vpack.c.b16 %v1390_v23, %v5642_v33 }
 0x138   : > { %v1100_v28 = vmax.f32 %v936_v26, 0.0  ;;  %974 = vmatmul.bf16.gmra.mxu0 %v4777_v24  ;;  %v2059_v30 = vshrl.u32 %v1435_v27, 16  ;;  %v2062_v31 = vshll.u32 %v1435_v27, 16  ;;  %v1085_v24 = vpop.f32.mrf.mxu2  ;;  %v4781_v26 = vld [vmem:[%s5607_s11 + $0x78] sm:$0xff] }
 0x13a   : > { %v1273_v29 = vpack.c.bf16 %v1100_v28, %v1100_v28  ;;  %v2061_v38 = vrot.slane %v2059_v30, 3  ;;  %v2064_v39 = vrot.slane %v2062_v31, 4 }
 0x13c   : > { %v1391_v32 = vunpack.c.l.b16 %v1273_v29  ;;  %v2065_v45 = vor.u32 %v2064_v39, %v2061_v38 }
 0x13d   : > { %v937_v34 = vpop.f32.mrf.mxu0 }
 0x13e   : > { %v1436_v35 = vpack.c.b16 %v1391_v32, %v1391_v32  ;;  %v5673_v37 = vpack.c.b16 %v1391_v32, %v1390_v23 }
 0x140   : > { %6536 = vst [vmem:[#allocation29_spill] sm:$0xff] %v5673_v37  ;;  %v2067_v40 = vshrl.u32 %v1436_v35, 16  ;;  %v2070_v41 = vshll.u32 %v1436_v35, 16  ;;  %1774 = vmatmul.bf16.gmra.mxu1 %v5673_v37  ;;  %1858 = vmatmul.bf16.gmra.mxu2 %v5673_v37  ;;  %v1087_v32 = vpop.f32.mrf.mxu2 }
 0x141   : > { %1942 = vmatmul.bf16.vlgmr.msra.gmra.mxu3 %v5673_v37  ;;  %v4785_v32 = vld [vmem:[%s5607_s11 + $0x98] sm:$0xff] }
 0x142   : > { %v2069_v42 = vrot.slane %v2067_v40, 3  ;;  %v2072_v43 = vrot.slane %v2070_v41, 4 }
 0x144   : > { %v2073_v46 = vor.u32 %v2072_v43, %v2069_v42 }
 0x145   : > { %v940_v47 = vpop.f32.mrf.mxu0 }
 0x146   : > { %v5680_v48 = vsel %vm2023_vm0, %v2065_v45, %v2073_v46 }
 0x148   : > { %979 = vmatmul.bf16.gmra.mxu0 %v4778_v44 }
 0x14d   : > { %v942_v50 = vpop.f32.mrf.mxu0 }
 0x14e   : > { %v943_v51 = vadd.f32 %v5655_v49, %v942_v50  ;;  %v4782_v50 = vld [vmem:[%s5607_s11 + $0x80] sm:$0xff] }
 0x150   : > { %v1103_v53 = vmax.f32 %v943_v51, 0.0 }
 0x152   : > { %v1276_v54 = vpack.c.bf16 %v1103_v53, %v1103_v53 }
 0x154   : > { %v1393_v55 = vunpack.c.l.b16 %v1276_v54 }
 0x155   : > { %v945_v57 = vpop.f32.mrf.mxu0 }
 0x156   : > { %v946_v58 = vadd.f32 %v5655_v49, %v945_v57  ;;  %v1437_v60 = vpack.c.b16 %v1393_v55, %v5642_v33 }
 0x158   : > { %v1104_v61 = vmax.f32 %v946_v58, 0.0  ;;  %984 = vmatmul.bf16.gmra.mxu0 %v4779_v56  ;;  %v2076_v63 = vshrl.u32 %v1437_v60, 16  ;;  %v2079_v0 = vshll.u32 %v1437_v60, 16 }
 0x15a   : > { %v1277_v62 = vpack.c.bf16 %v1104_v61, %v1104_v61  ;;  %v2078_v6 = vrot.slane %v2076_v63, 3  ;;  %v2081_v8 = vrot.slane %v2079_v0, 4  ;;  %v4783_v61 = vld [vmem:[%s5607_s11 + $0x88] sm:$0xff] }
 0x15c   : > { %v1394_v1 = vunpack.c.l.b16 %v1277_v62  ;;  %v2082_v14 = vor.u32 %v2081_v8, %v2078_v6 }
 0x15d   : > { %v947_v2 = vpop.f32.mrf.mxu0 }
 0x15e   : > { %v1438_v3 = vpack.c.b16 %v1394_v1, %v1394_v1  ;;  %v5688_v4 = vpack.c.b16 %v1394_v1, %v1393_v55 }
 0x160   : > { %6537 = vst [vmem:[#allocation30_spill] sm:$0xff] %v5688_v4  ;;  %v2084_v9 = vshrl.u32 %v1438_v3, 16  ;;  %v2087_v10 = vshll.u32 %v1438_v3, 16  ;;  %1779 = vmatmul.bf16.gmra.mxu1 %v5688_v4  ;;  %1863 = vmatmul.bf16.gmra.mxu2 %v5688_v4 }
 0x161   : > { %1947 = vmatmul.bf16.gmra.mxu3 %v5688_v4 }
 0x162   : > { %v2086_v11 = vrot.slane %v2084_v9, 3  ;;  %v2089_v12 = vrot.slane %v2087_v10, 4 }
 0x164   : > { %v2090_v15 = vor.u32 %v2089_v12, %v2086_v11 }
 0x165   : > { %v950_v16 = vpop.f32.mrf.mxu0 }
 0x166   : > { %v5695_v19 = vsel %vm2023_vm0, %v2082_v14, %v2090_v15 }
 0x168   : > { %989 = vmatmul.bf16.gmra.mxu0 %v4780_v13 }
 0x16d   : > { %v952_v20 = vpop.f32.mrf.mxu0 }
 0x16e   : > { %v953_v21 = vadd.f32 %v5655_v49, %v952_v20 }
 0x170   : > { %v1107_v22 = vmax.f32 %v953_v21, 0.0 }
 0x172   : > { %v1280_v23 = vpack.c.bf16 %v1107_v22, %v1107_v22  ;;  %v4784_v22 = vld [vmem:[%s5607_s11 + $0x90] sm:$0xff] }
 0x174   : > { %v1396_v25 = vunpack.c.l.b16 %v1280_v23 }
 0x175   : > { %v955_v27 = vpop.f32.mrf.mxu0 }
 0x176   : > { %v956_v28 = vadd.f32 %v5655_v49, %v955_v27  ;;  %v1439_v29 = vpack.c.b16 %v1396_v25, %v5642_v33 }
 0x178   : > { %v1108_v30 = vmax.f32 %v956_v28, 0.0  ;;  %994 = vmatmul.bf16.gmra.mxu0 %v4781_v26  ;;  %v2093_v34 = vshrl.u32 %v1439_v29, 16  ;;  %v2096_v35 = vshll.u32 %v1439_v29, 16 }
 0x17a   : > { %v1281_v31 = vpack.c.bf16 %v1108_v30, %v1108_v30  ;;  %v2095_v42 = vrot.slane %v2093_v34, 3  ;;  %v2098_v43 = vrot.slane %v2096_v35, 4 }
 0x17c   : > { %v1397_v38 = vunpack.c.l.b16 %v1281_v31  ;;  %v2099_v51 = vor.u32 %v2098_v43, %v2095_v42 }
 0x17d   : > { %v957_v39 = vpop.f32.mrf.mxu0 }
 0x17e   : > { %v1440_v40 = vpack.c.b16 %v1397_v38, %v1397_v38  ;;  %v5701_v41 = vpack.c.b16 %v1397_v38, %v1396_v25 }
 0x180   : > { %6538 = vst [vmem:[#allocation31_spill] sm:$0xff] %v5701_v41  ;;  %v2101_v44 = vshrl.u32 %v1440_v40, 16  ;;  %v2104_v45 = vshll.u32 %v1440_v40, 16  ;;  %1784 = vmatmul.bf16.gmra.mxu1 %v5701_v41  ;;  %1868 = vmatmul.bf16.gmra.mxu2 %v5701_v41  ;;  %v5727_v40 = vpop.f32.mrf.mxu1 }
 0x181   : > { %1952 = vmatmul.bf16.gmra.mxu3 %v5701_v41 }
 0x182   : > { %v2103_v46 = vrot.slane %v2101_v44, 3  ;;  %v2106_v47 = vrot.slane %v2104_v45, 4 }
 0x184   : > { %v2107_v53 = vor.u32 %v2106_v47, %v2103_v46 }
 0x185   : > { %v960_v54 = vpop.f32.mrf.mxu0 }
 0x186   : > { %v5708_v55 = vsel %vm2023_vm0, %v2099_v51, %v2107_v53 }
 0x188   : > { %999 = vmatmul.bf16.gmra.mxu0 %v4782_v50 }
 0x18d   : > { %v962_v56 = vpop.f32.mrf.mxu0 }
 0x18e   : > { %v963_v57 = vadd.f32 %v5655_v49, %v962_v56 }
 0x190   : > { %v1111_v58 = vmax.f32 %v963_v57, 0.0 }
 0x192   : > { %v1284_v59 = vpack.c.bf16 %v1111_v58, %v1111_v58 }
 0x194   : > { %v1399_v60 = vunpack.c.l.b16 %v1284_v59 }
 0x195   : > { %v965_v62 = vpop.f32.mrf.mxu0 }
 0x196   : > { %v966_v63 = vadd.f32 %v5655_v49, %v965_v62  ;;  %v1441_v0 = vpack.c.b16 %v1399_v60, %v5642_v33 }
 0x198   : > { %v1112_v1 = vmax.f32 %v966_v63, 0.0  ;;  %1004 = vmatmul.bf16.gmra.mxu0 %v4783_v61  ;;  %v2110_v3 = vshrl.u32 %v1441_v0, 16  ;;  %v2113_v5 = vshll.u32 %v1441_v0, 16  ;;  %v4786_v0 = vld [vmem:[%s5607_s11 + $0xa0] sm:$0xff] }
 0x19a   : > { %v1285_v2 = vpack.c.bf16 %v1112_v1, %v1112_v1  ;;  %v2112_v11 = vrot.slane %v2110_v3, 3  ;;  %v2115_v12 = vrot.slane %v2113_v5, 4 }
 0x19c   : > { %v1400_v6 = vunpack.c.l.b16 %v1285_v2  ;;  %v2116_v23 = vor.u32 %v2115_v12, %v2112_v11 }
 0x19d   : > { %v967_v8 = vpop.f32.mrf.mxu0 }
 0x19e   : > { %v1442_v9 = vpack.c.b16 %v1400_v6, %v1400_v6  ;;  %v5714_v10 = vpack.c.b16 %v1400_v6, %v1399_v60  ;;  %v1770_v60 = vpop.f32.mrf.mxu1 }
 0x1a0   : > { %6539 = vst [vmem:[#allocation32_spill] sm:$0xff] %v5714_v10  ;;  %v2118_v13 = vshrl.u32 %v1442_v9, 16  ;;  %v2121_v14 = vshll.u32 %v1442_v9, 16  ;;  %1789 = vmatmul.bf16.gmra.mxu1 %v5714_v10  ;;  %1873 = vmatmul.bf16.gmra.mxu2 %v5714_v10 }
 0x1a1   : > { %1957 = vmatmul.bf16.gmra.mxu3 %v5714_v10  ;;  %v4889_v10 = vld [vmem:[#allocation11 + $0x38] sm:$0xff] }
 0x1a2   : > { %v2120_v15 = vrot.slane %v2118_v13, 3  ;;  %v2123_v16 = vrot.slane %v2121_v14, 4  ;;  %v4787_v14 = vld [vmem:[%s5607_s11 + $0xa8] sm:$0xff]  ;;  %3836 = vmatpush.bf16.msrb.mxu0 %v4889_v10 }
 0x1a3   : > { %v1854_v20 = vpop.f32.mrf.mxu2 }
 0x1a4   : > { %v1855_v21 = vadd.f32 %v1854_v20, %v1765_v17  ;;  %v2124_v24 = vor.u32 %v2123_v16, %v2120_v15 }
 0x1a5   : > { %v970_v25 = vpop.f32.mrf.mxu0 }
 0x1a6   : > { %v5721_v26 = vsel %vm2023_vm0, %v2116_v23, %v2124_v24 }
 0x1a8   : > { %1009 = vmatmul.bf16.gmra.mxu0 %v4784_v22  ;;  %v5746_v22 = vpop.f32.mrf.mxu1 }
 0x1ab   : > { %v5729_v43 = vpop.f32.mrf.mxu2 }
 0x1ad   : > { %v972_v27 = vpop.f32.mrf.mxu0 }
 0x1ae   : > { %v973_v28 = vadd.f32 %v5655_v49, %v972_v27 }
 0x1b0   : > { %v1115_v29 = vmax.f32 %v973_v28, 0.0 }
 0x1b2   : > { %v1288_v30 = vpack.c.bf16 %v1115_v29, %v1115_v29 }
 0x1b4   : > { %v1402_v31 = vunpack.c.l.b16 %v1288_v30 }
 0x1b5   : > { %v975_v34 = vpop.f32.mrf.mxu0 }
 0x1b6   : > { %v976_v35 = vadd.f32 %v5655_v49, %v975_v34  ;;  %v1443_v38 = vpack.c.b16 %v1402_v31, %v5642_v33 }
 0x1b8   : > { %v1116_v39 = vmax.f32 %v976_v35, 0.0  ;;  %1014 = vmatmul.bf16.gmra.mxu0 %v4785_v32  ;;  %v2127_v44 = vshrl.u32 %v1443_v38, 16  ;;  %v2130_v45 = vshll.u32 %v1443_v38, 16 }
 0x1ba   : > { %v1289_v42 = vpack.c.bf16 %v1116_v39, %v1116_v39  ;;  %v2129_v53 = vrot.slane %v2127_v44, 3  ;;  %v2132_v54 = vrot.slane %v2130_v45, 4 }
 0x1bc   : > { %v1403_v46 = vunpack.c.l.b16 %v1289_v42  ;;  %v2133_v1 = vor.u32 %v2132_v54, %v2129_v53 }
 0x1bd   : > { %v977_v47 = vpop.f32.mrf.mxu0  ;;  %v1775_v44 = vpop.f32.mrf.mxu1 }
 0x1be   : > { %v1444_v50 = vpack.c.b16 %v1403_v46, %v1403_v46  ;;  %v5731_v51 = vpack.c.b16 %v1403_v46, %v1402_v31 }
 0x1c0   : > { %6540 = vst [vmem:[#allocation33_spill] sm:$0xff] %v5731_v51  ;;  %v2135_v56 = vshrl.u32 %v1444_v50, 16  ;;  %v2138_v57 = vshll.u32 %v1444_v50, 16  ;;  %1794 = vmatmul.bf16.gmra.mxu1 %v5731_v51  ;;  %1878 = vmatmul.bf16.gmra.mxu2 %v5731_v51  ;;  %v4788_v50 = vld [vmem:[%s5607_s11 + $0xb0] sm:$0xff] }
 0x1c1   : > { %1962 = vmatmul.bf16.gmra.mxu3 %v5731_v51  ;;  %v4829_v51 = vld [vmem:[#allocation10 + $0x98] sm:$0xff] }
 0x1c2   : > { %v2137_v58 = vrot.slane %v2135_v56, 3  ;;  %v2140_v59 = vrot.slane %v2138_v57, 4 }
 0x1c3   : > { %v1859_v61 = vpop.f32.mrf.mxu2 }
 0x1c4   : > { %v1860_v62 = vadd.f32 %v1859_v61, %v1770_v60  ;;  %v1943_v63 = vpop.f32.mrf.mxu3  ;;  %v2141_v2 = vor.u32 %v2140_v59, %v2137_v58 }
 0x1c5   : > { %v5737_v3 = vadd.f32 %v1943_v63, %v1855_v21  ;;  %v980_v5 = vpop.f32.mrf.mxu0 }
 0x1c6   : > { %v5740_v6 = vsel %vm2023_vm0, %v2133_v1, %v2141_v2  ;;  %v4789_v1 = vld [vmem:[%s5607_s11 + $0xb8] sm:$0xff] }
 0x1c8   : > { %1019 = vmatmul.bf16.gmra.mxu0 %v4786_v0 }
 0x1cb   : > { %v5748_v23 = vpop.f32.mrf.mxu2 }
 0x1cc   : > { %v5750_v24 = vpop.f32.mrf.mxu3 }
 0x1cd   : > { %v982_v8 = vpop.f32.mrf.mxu0 }
 0x1ce   : > { %v983_v9 = vadd.f32 %v5655_v49, %v982_v8 }
 0x1d0   : > { %v1119_v11 = vmax.f32 %v983_v9, 0.0 }
 0x1d2   : > { %v1292_v12 = vpack.c.bf16 %v1119_v11, %v1119_v11  ;;  %v5767_v11 = vpop.f32.mrf.mxu1 }
 0x1d4   : > { %v1405_v13 = vunpack.c.l.b16 %v1292_v12 }
 0x1d5   : > { %v985_v15 = vpop.f32.mrf.mxu0 }
 0x1d6   : > { %v986_v16 = vadd.f32 %v5655_v49, %v985_v15  ;;  %v1445_v17 = vpack.c.b16 %v1405_v13, %v5642_v33 }
 0x1d8   : > { %v1120_v20 = vmax.f32 %v986_v16, 0.0  ;;  %1024 = vmatmul.bf16.gmra.mxu0 %v4787_v14  ;;  %v2144_v25 = vshrl.u32 %v1445_v17, 16  ;;  %v2147_v27 = vshll.u32 %v1445_v17, 16 }
 0x1da   : > { %v1293_v21 = vpack.c.bf16 %v1120_v20, %v1120_v20  ;;  %v2146_v32 = vrot.slane %v2144_v25, 3  ;;  %v2149_v34 = vrot.slane %v2147_v27, 4 }
 0x1dc   : > { %v1406_v28 = vunpack.c.l.b16 %v1293_v21  ;;  %v2150_v53 = vor.u32 %v2149_v34, %v2146_v32  ;;  %v4825_v34 = vld [vmem:[#allocation10 + $0x78] sm:$0xff] }
 0x1dd   : > { %v987_v29 = vpop.f32.mrf.mxu0  ;;  %2581 = vmatpush.bf16.msra.mxu2 %v4825_v34 }
 0x1de   : > { %v1446_v30 = vpack.c.b16 %v1406_v28, %v1406_v28  ;;  %v5752_v31 = vpack.c.b16 %v1406_v28, %v1405_v13 }
 0x1e0   : > { %6541 = vst [vmem:[#allocation34_spill] sm:$0xff] %v5752_v31  ;;  %v2152_v35 = vshrl.u32 %v1446_v30, 16  ;;  %v2155_v38 = vshll.u32 %v1446_v30, 16  ;;  %1799 = vmatmul.bf16.gmra.mxu1 %v5752_v31  ;;  %1883 = vmatmul.bf16.gmra.mxu2 %v5752_v31 }
 0x1e1   : > { %1967 = vmatmul.bf16.gmra.mxu3 %v5752_v31 }
 0x1e2   : > { %v2154_v39 = vrot.slane %v2152_v35, 3  ;;  %v2157_v42 = vrot.slane %v2155_v38, 4  ;;  %v4833_v35 = vld [vmem:[#allocation10 + $0xb8] sm:$0xff] }
 0x1e3   : > { %v1864_v45 = vpop.f32.mrf.mxu2  ;;  %v4817_v38 = vld [vmem:[#allocation10 + $0x38] sm:$0xff]  ;;  %2670 = vmatpush.bf16.msrb.mxu3 %v4833_v35 }
 0x1e4   : > { %v1865_v46 = vadd.f32 %v1864_v45, %v1775_v44  ;;  %v1948_v47 = vpop.f32.mrf.mxu3  ;;  %v2158_v54 = vor.u32 %v2157_v42, %v2154_v39  ;;  %v1780_v39 = vpop.f32.mrf.mxu1  ;;  %2492 = vmatpush.bf16.msra.mxu1 %v4817_v38 }
 0x1e5   : > { %v5758_v56 = vadd.f32 %v1948_v47, %v1860_v62  ;;  %v990_v57 = vpop.f32.mrf.mxu0  ;;  %v4790_v47 = vld [vmem:[%s5607_s11 + $0xc0] sm:$0xff] }
 0x1e6   : > { %v5761_v58 = vsel %vm2023_vm0, %v2150_v53, %v2158_v54 }
 0x1e8   : > { %1029 = vmatmul.bf16.gmra.mxu0 %v4788_v50 }
 0x1eb   : > { %v5769_v12 = vpop.f32.mrf.mxu2 }
 0x1ec   : > { %v5771_v13 = vpop.f32.mrf.mxu3 }
 0x1ed   : > { %v992_v59 = vpop.f32.mrf.mxu0 }
 0x1ee   : > { %v993_v60 = vadd.f32 %v5655_v49, %v992_v59 }
 0x1f0   : > { %v1123_v61 = vmax.f32 %v993_v60, 0.0 }
 0x1f2   : > { %v1296_v63 = vpack.c.bf16 %v1123_v61, %v1123_v61 }
 0x1f4   : > { %v1408_v0 = vunpack.c.l.b16 %v1296_v63 }
 0x1f5   : > { %v995_v2 = vpop.f32.mrf.mxu0 }
 0x1f6   : > { %v996_v5 = vadd.f32 %v5655_v49, %v995_v2  ;;  %v1447_v8 = vpack.c.b16 %v1408_v0, %v5642_v33  ;;  %v4791_v2 = vld [vmem:[%s5607_s11 + $0xc8] sm:$0xff] }
 0x1f8   : > { %v1124_v9 = vmax.f32 %v996_v5, 0.0  ;;  %1034 = vmatmul.bf16.gmra.mxu0 %v4789_v1  ;;  %v2161_v14 = vshrl.u32 %v1447_v8, 16  ;;  %v2164_v15 = vshll.u32 %v1447_v8, 16 }
 0x1fa   : > { %v1297_v62 = vpack.c.bf16 %v1124_v9, %v1124_v9  ;;  %v2163_v25 = vrot.slane %v2161_v14, 3  ;;  %v2166_v27 = vrot.slane %v2164_v15, 4  ;;  %v5788_v14 = vpop.f32.mrf.mxu1 }
 0x1fc   : > { %v1409_v16 = vunpack.c.l.b16 %v1297_v62  ;;  %v2167_v50 = vor.u32 %v2166_v27, %v2163_v25 }
 0x1fd   : > { %v997_v17 = vpop.f32.mrf.mxu0 }
 0x1fe   : > { %v1448_v20 = vpack.c.b16 %v1409_v16, %v1409_v16  ;;  %v5773_v21 = vpack.c.b16 %v1409_v16, %v1408_v0 }
 0x200   : > { %6542 = vst [vmem:[#allocation35_spill] sm:$0xff] %v5773_v21  ;;  %v2169_v28 = vshrl.u32 %v1448_v20, 16  ;;  %v2172_v29 = vshll.u32 %v1448_v20, 16  ;;  %1804 = vmatmul.bf16.gmra.mxu1 %v5773_v21  ;;  %1888 = vmatmul.bf16.gmra.mxu2 %v5773_v21 }
 0x201   : > { %1972 = vmatmul.bf16.gmra.mxu3 %v5773_v21 }
 0x202   : > { %v2171_v30 = vrot.slane %v2169_v28, 3  ;;  %v2174_v32 = vrot.slane %v2172_v29, 4 }
 0x203   : > { %v1869_v42 = vpop.f32.mrf.mxu2 }
 0x204   : > { %v1870_v44 = vadd.f32 %v1869_v42, %v1780_v39  ;;  %v1953_v45 = vpop.f32.mrf.mxu3  ;;  %v2175_v53 = vor.u32 %v2174_v32, %v2171_v30  ;;  %v4824_v42 = vld [vmem:[#allocation10 + $0x70] sm:$0xff] }
 0x205   : > { %v5779_v54 = vadd.f32 %v1953_v45, %v1865_v46  ;;  %v1000_v57 = vpop.f32.mrf.mxu0  ;;  %v4832_v45 = vld [vmem:[#allocation10 + $0xb0] sm:$0xff]  ;;  %2582 = vmatpush.bf16.msra.mxu2 %v4824_v42 }
 0x206   : > { %v5782_v59 = vsel %vm2023_vm0, %v2167_v50, %v2175_v53  ;;  %v1785_v50 = vpop.f32.mrf.mxu1  ;;  %2671 = vmatpush.bf16.msrb.mxu3 %v4832_v45 }
 0x208   : > { %1039 = vmatmul.bf16.gmra.mxu0 %v4790_v47  ;;  %v4816_v47 = vld [vmem:[#allocation10 + $0x30] sm:$0xff] }
 0x209   : > { %2493 = vmatpush.bf16.msra.mxu1 %v4816_v47 }
 0x20b   : > { %v5790_v15 = vpop.f32.mrf.mxu2 }
 0x20c   : > { %v5792_v16 = vpop.f32.mrf.mxu3 }
 0x20d   : > { %v1002_v60 = vpop.f32.mrf.mxu0 }
 0x20e   : > { %v1003_v61 = vadd.f32 %v5655_v49, %v1002_v60 }
 0x210   : > { %v1127_v63 = vmax.f32 %v1003_v61, 0.0  ;;  %v4792_v61 = vld [vmem:[%s5607_s11 + $0xd0] sm:$0xff] }
 0x212   : > { %v1300_v0 = vpack.c.bf16 %v1127_v63, %v1127_v63 }
 0x214   : > { %v1411_v1 = vunpack.c.l.b16 %v1300_v0 }
 0x215   : > { %v1005_v5 = vpop.f32.mrf.mxu0 }
 0x216   : > { %v1006_v8 = vadd.f32 %v5655_v49, %v1005_v5  ;;  %v1449_v9 = vpack.c.b16 %v1411_v1, %v5642_v33 }
 0x218   : > { %v1128_v46 = vmax.f32 %v1006_v8, 0.0  ;;  %1044 = vmatmul.bf16.gmra.mxu0 %v4791_v2  ;;  %v2178_v17 = vshrl.u32 %v1449_v9, 16  ;;  %v2181_v20 = vshll.u32 %v1449_v9, 16 }
 0x21a   : > { %v1301_v62 = vpack.c.bf16 %v1128_v46, %v1128_v46  ;;  %v2180_v30 = vrot.slane %v2178_v17, 3  ;;  %v2183_v32 = vrot.slane %v2181_v20, 4  ;;  %v4793_v20 = vld [vmem:[%s5607_s11 + $0xd8] sm:$0xff] }
 0x21c   : > { %v1412_v25 = vunpack.c.l.b16 %v1301_v62  ;;  %v2184_v63 = vor.u32 %v2183_v32, %v2180_v30  ;;  %v5809_v32 = vpop.f32.mrf.mxu1 }
 0x21d   : > { %v1007_v27 = vpop.f32.mrf.mxu0 }
 0x21e   : > { %v1450_v28 = vpack.c.b16 %v1412_v25, %v1412_v25  ;;  %v5794_v29 = vpack.c.b16 %v1412_v25, %v1411_v1 }
 0x220   : > { %6543 = vst [vmem:[#allocation36_spill] sm:$0xff] %v5794_v29  ;;  %v2186_v34 = vshrl.u32 %v1450_v28, 16  ;;  %v2189_v35 = vshll.u32 %v1450_v28, 16  ;;  %1809 = vmatmul.bf16.gmra.mxu1 %v5794_v29  ;;  %1893 = vmatmul.bf16.gmra.mxu2 %v5794_v29 }
 0x221   : > { %1977 = vmatmul.bf16.gmra.mxu3 %v5794_v29 }
 0x222   : > { %v2188_v38 = vrot.slane %v2186_v34, 3  ;;  %v2191_v39 = vrot.slane %v2189_v35, 4 }
 0x223   : > { %v1874_v53 = vpop.f32.mrf.mxu2 }
 0x224   : > { %v1875_v57 = vadd.f32 %v1874_v53, %v1785_v50  ;;  %v1958_v60 = vpop.f32.mrf.mxu3  ;;  %v2192_v0 = vor.u32 %v2191_v39, %v2188_v38 }
 0x225   : > { %v5800_v1 = vadd.f32 %v1958_v60, %v1870_v44  ;;  %v1010_v2 = vpop.f32.mrf.mxu0 }
 0x226   : > { %v5803_v5 = vsel %vm2023_vm0, %v2184_v63, %v2192_v0 }
 0x228   : > { %1049 = vmatmul.bf16.gmra.mxu0 %v4792_v61 }
 0x22b   : > { %v5811_v34 = vpop.f32.mrf.mxu2 }
 0x22c   : > { %v5813_v35 = vpop.f32.mrf.mxu3 }
 0x22d   : > { %v1012_v8 = vpop.f32.mrf.mxu0 }
 0x22e   : > { %v1013_v9 = vadd.f32 %v5655_v49, %v1012_v8  ;;  %v4823_v8 = vld [vmem:[#allocation10 + $0x68] sm:$0xff] }
 0x22f   : > { %2583 = vmatpush.bf16.msra.mxu2 %v4823_v8 }
 0x230   : > { %v1131_v46 = vmax.f32 %v1013_v9, 0.0  ;;  %v4831_v9 = vld [vmem:[#allocation10 + $0xa8] sm:$0xff] }
 0x231   : > { %2672 = vmatpush.bf16.msrb.mxu3 %v4831_v9 }
 0x232   : > { %v1304_v62 = vpack.c.bf16 %v1131_v46, %v1131_v46  ;;  %v4815_v46 = vld [vmem:[#allocation10 + $0x28] sm:$0xff] }
 0x233   : > { %2494 = vmatpush.bf16.msra.mxu1 %v4815_v46 }
 0x234   : > { %v1414_v17 = vunpack.c.l.b16 %v1304_v62  ;;  %v1790_v62 = vpop.f32.mrf.mxu1 }
 0x235   : > { %v1015_v25 = vpop.f32.mrf.mxu0 }
 0x236   : > { %v1016_v27 = vadd.f32 %v5655_v49, %v1015_v25  ;;  %v1451_v28 = vpack.c.b16 %v1414_v17, %v5642_v33 }
 0x238   : > { %v1132_v44 = vmax.f32 %v1016_v27, 0.0  ;;  %1054 = vmatmul.bf16.gmra.mxu0 %v4793_v20  ;;  %v2195_v38 = vshrl.u32 %v1451_v28, 16  ;;  %v2198_v39 = vshll.u32 %v1451_v28, 16  ;;  %v4794_v27 = vld [vmem:[%s5607_s11 + $0xe0] sm:$0xff] }
 0x23a   : > { %v1305_v30 = vpack.c.bf16 %v1132_v44, %v1132_v44  ;;  %v2197_v53 = vrot.slane %v2195_v38, 3  ;;  %v2200_v60 = vrot.slane %v2198_v39, 4 }
 0x23c   : > { %v1415_v42 = vunpack.c.l.b16 %v1305_v30  ;;  %v2201_v28 = vor.u32 %v2200_v60, %v2197_v53 }
 0x23d   : > { %v1017_v45 = vpop.f32.mrf.mxu0 }
 0x23e   : > { %v1452_v47 = vpack.c.b16 %v1415_v42, %v1415_v42  ;;  %v5815_v50 = vpack.c.b16 %v1415_v42, %v1414_v17 }
 0x240   : > { %6544 = vst [vmem:[#allocation37_spill] sm:$0xff] %v5815_v50  ;;  %v2203_v61 = vshrl.u32 %v1452_v47, 16  ;;  %v2206_v63 = vshll.u32 %v1452_v47, 16  ;;  %1814 = vmatmul.bf16.gmra.mxu1 %v5815_v50  ;;  %1898 = vmatmul.bf16.gmra.mxu2 %v5815_v50 }
 0x241   : > { %1982 = vmatmul.bf16.gmra.mxu3 %v5815_v50 }
 0x242   : > { %v2205_v0 = vrot.slane %v2203_v61, 3  ;;  %v2208_v2 = vrot.slane %v2206_v63, 4 }
 0x243   : > { %v1879_v20 = vpop.f32.mrf.mxu2 }
 0x244   : > { %v1880_v17 = vadd.f32 %v1879_v20, %v1790_v62  ;;  %v1963_v25 = vpop.f32.mrf.mxu3  ;;  %v2209_v44 = vor.u32 %v2208_v2, %v2205_v0  ;;  %v4795_v62 = vld [vmem:[%s5607_s11 + $0xe8] sm:$0xff]  ;;  %v5830_v0 = vpop.f32.mrf.mxu1 }
 0x245   : > { %v5821_v30 = vadd.f32 %v1963_v25, %v1875_v57  ;;  %v1020_v38 = vpop.f32.mrf.mxu0 }
 0x246   : > { %v5824_v39 = vsel %vm2023_vm0, %v2201_v28, %v2209_v44 }
 0x248   : > { %1059 = vmatmul.bf16.gmra.mxu0 %v4794_v27 }
 0x24b   : > { %v5832_v2 = vpop.f32.mrf.mxu2 }
 0x24c   : > { %v5834_v9 = vpop.f32.mrf.mxu3 }
 0x24d   : > { %v1022_v42 = vpop.f32.mrf.mxu0 }
 0x24e   : > { %v1023_v45 = vadd.f32 %v5655_v49, %v1022_v42 }
 0x250   : > { %v1135_v47 = vmax.f32 %v1023_v45, 0.0 }
 0x252   : > { %v1308_v61 = vpack.c.bf16 %v1135_v47, %v1135_v47 }
 0x254   : > { %v1417_v63 = vunpack.c.l.b16 %v1308_v61 }
 0x255   : > { %v1025_v20 = vpop.f32.mrf.mxu0 }
 0x256   : > { %v1026_v8 = vadd.f32 %v5655_v49, %v1025_v20  ;;  %v1453_v53 = vpack.c.b16 %v1417_v63, %v5642_v33 }
 0x258   : > { %v1136_v57 = vmax.f32 %v1026_v8, 0.0  ;;  %1064 = vmatmul.bf16.gmra.mxu0 %v4795_v62  ;;  %v2212_v46 = vshrl.u32 %v1453_v53, 16  ;;  %v2215_v25 = vshll.u32 %v1453_v53, 16  ;;  %v4822_v8 = vld [vmem:[#allocation10 + $0x60] sm:$0xff] }
 0x259   : > { %v4830_v53 = vld [vmem:[#allocation10 + $0xa0] sm:$0xff]  ;;  %2584 = vmatpush.bf16.msra.mxu2 %v4822_v8 }
 0x25a   : > { %v1309_v60 = vpack.c.bf16 %v1136_v57, %v1136_v57  ;;  %v2214_v42 = vrot.slane %v2212_v46, 3  ;;  %v2217_v45 = vrot.slane %v2215_v25, 4  ;;  %v4814_v57 = vld [vmem:[#allocation10 + $0x20] sm:$0xff]  ;;  %v4796_v46 = vld [vmem:[%s5607_s11 + $0xf0] sm:$0xff]  ;;  %2673 = vmatpush.bf16.msrb.mxu3 %v4830_v53 }
 0x25b   : > { %2495 = vmatpush.bf16.msra.mxu1 %v4814_v57 }
 0x25c   : > { %v1418_v27 = vunpack.c.l.b16 %v1309_v60  ;;  %v1795_v60 = vpop.f32.mrf.mxu1  ;;  %v2218_v25 = vor.u32 %v2217_v45, %v2214_v42 }
 0x25d   : > { %v1027_v28 = vpop.f32.mrf.mxu0 }
 0x25e   : > { %v1454_v44 = vpack.c.b16 %v1418_v27, %v1418_v27  ;;  %v5836_v38 = vpack.c.b16 %v1418_v27, %v1417_v63  ;;  %2674 = vmatpush.bf16.msrb.mxu3 %v4829_v51 }
 0x260   : > { %6545 = vst [vmem:[#allocation38_spill] sm:$0xff] %v5836_v38  ;;  %v2220_v47 = vshrl.u32 %v1454_v44, 16  ;;  %v2223_v61 = vshll.u32 %v1454_v44, 16  ;;  %1819 = vmatmul.bf16.gmra.mxu1 %v5836_v38  ;;  %1903 = vmatmul.bf16.gmra.mxu2 %v5836_v38 }
 0x261   : > { %1987 = vmatmul.bf16.gmra.mxu3 %v5836_v38 }
 0x262   : > { %v2222_v62 = vrot.slane %v2220_v47, 3  ;;  %v2225_v20 = vrot.slane %v2223_v61, 4 }
 0x263   : > { %v1884_v28 = vpop.f32.mrf.mxu2 }
 0x264   : > { %v1885_v63 = vadd.f32 %v1884_v28, %v1795_v60  ;;  %v1968_v27 = vpop.f32.mrf.mxu3  ;;  %v2226_v44 = vor.u32 %v2225_v20, %v2222_v62  ;;  %v5850_v62 = vpop.f32.mrf.mxu1 }
 0x265   : > { %v5842_v50 = vadd.f32 %v1968_v27, %v1880_v17  ;;  %v1030_v29 = vpop.f32.mrf.mxu0  ;;  %6546 = vst [vmem:[#allocation39_spill] sm:$0xff] %v5850_v62 }
 0x266   : > { %v5845_v38 = vsel %vm2023_vm0, %v2218_v25, %v2226_v44 }
 0x268   : > { %1069 = vmatmul.bf16.gmra.mxu0 %v4796_v46 }
 0x26b   : > { %v5852_v29 = vpop.f32.mrf.mxu2 }
 0x26c   : > { %6547 = vst [vmem:[#allocation40_spill] sm:$0xff] %v5852_v29  ;;  %v5854_v20 = vpop.f32.mrf.mxu3  ;;  %v4888_v29 = vld [vmem:[#allocation11 + $0x30] sm:$0xff] }
 0x26d   : > { %v1032_v47 = vpop.f32.mrf.mxu0  ;;  %3837 = vmatpush.bf16.msrb.mxu0 %v4888_v29 }
 0x26e   : > { %v1033_v61 = vadd.f32 %v5655_v49, %v1032_v47 }
 0x270   : > { %v1139_v21 = vmax.f32 %v1033_v61, 0.0 }
 0x272   : > { %v1312_v31 = vpack.c.bf16 %v1139_v21, %v1139_v21 }
 0x274   : > { %v1420_v60 = vunpack.c.l.b16 %v1312_v31 }
 0x275   : > { %v1035_v28 = vpop.f32.mrf.mxu0 }
 0x276   : > { %v1036_v8 = vadd.f32 %v5655_v49, %v1035_v28  ;;  %v1455_v42 = vpack.c.b16 %v1420_v60, %v5642_v33 }
 0x278   : > { %v1140_v45 = vmax.f32 %v1036_v8, 0.0  ;;  %v2229_v53 = vshrl.u32 %v1455_v42, 16  ;;  %v2232_v57 = vshll.u32 %v1455_v42, 16  ;;  %v4813_v42 = vld [vmem:[#allocation10 + $0x18] sm:$0xff] }
 0x279   : > { %2496 = vmatpush.bf16.msra.mxu1 %v4813_v42 }
 0x27a   : > { %v1313_v17 = vpack.c.bf16 %v1140_v45, %v1140_v45  ;;  %v2231_v31 = vrot.slane %v2229_v53, 3  ;;  %v2234_v44 = vrot.slane %v2232_v57, 4  ;;  %v4821_v45 = vld [vmem:[#allocation10 + $0x58] sm:$0xff] }
 0x27b   : > { %2585 = vmatpush.bf16.msra.mxu2 %v4821_v45 }
 0x27c   : > { %v1421_v27 = vunpack.c.l.b16 %v1313_v17  ;;  %v1800_v17 = vpop.f32.mrf.mxu1  ;;  %v2235_v53 = vor.u32 %v2234_v44, %v2231_v31 }
 0x27d   : > { %v1037_v46 = vpop.f32.mrf.mxu0 }
 0x27e   : > { %v1456_v25 = vpack.c.b16 %v1421_v27, %v1421_v27  ;;  %v5856_v21 = vpack.c.b16 %v1421_v27, %v1420_v60 }
 0x280   : > { %6548 = vst [vmem:[#allocation41_spill] sm:$0xff] %v5856_v21  ;;  %v2237_v47 = vshrl.u32 %v1456_v25, 16  ;;  %v2240_v61 = vshll.u32 %v1456_v25, 16  ;;  %1824 = vmatmul.bf16.gmra.mxu1 %v5856_v21  ;;  %1908 = vmatmul.bf16.gmra.mxu2 %v5856_v21 }
 0x281   : > { %1992 = vmatmul.bf16.gmra.mxu3 %v5856_v21 }
 0x282   : > { %v2239_v28 = vrot.slane %v2237_v47, 3  ;;  %v2242_v8 = vrot.slane %v2240_v61, 4 }
 0x283   : > { %v1889_v46 = vpop.f32.mrf.mxu2 }
 0x284   : > { %v1890_v60 = vadd.f32 %v1889_v46, %v1800_v17  ;;  %v1973_v27 = vpop.f32.mrf.mxu3  ;;  %v2243_v57 = vor.u32 %v2242_v8, %v2239_v28  ;;  %v5869_v44 = vpop.f32.mrf.mxu1 }
 0x285   : > { %v5861_v25 = vadd.f32 %v1973_v27, %v1885_v63  ;;  %v1040_v41 = vpop.f32.mrf.mxu0  ;;  %6549 = vst [vmem:[#allocation42_spill] sm:$0xff] %v5869_v44 }
 0x286   : > { %v5864_v47 = vsel %vm2023_vm0, %v2235_v53, %v2243_v57 }
 0x28b   : > { %v5871_v41 = vpop.f32.mrf.mxu2 }
 0x28c   : > { %6550 = vst [vmem:[#allocation43_spill] sm:$0xff] %v5871_v41  ;;  %v5873_v10 = vpop.f32.mrf.mxu3 }
 0x28d   : > { %v1042_v61 = vpop.f32.mrf.mxu0  ;;  %6551 = vst [vmem:[#allocation44_spill] sm:$0xff] %v5873_v10 }
 0x28e   : > { %v1043_v21 = vadd.f32 %v5655_v49, %v1042_v61 }
 0x290   : > { %v1143_v4 = vmax.f32 %v1043_v21, 0.0 }
 0x292   : > { %v1316_v37 = vpack.c.bf16 %v1143_v4, %v1143_v4 }
 0x294   : > { %v1423_v7 = vunpack.c.l.b16 %v1316_v37 }
 0x295   : > { %v1045_v17 = vpop.f32.mrf.mxu0 }
 0x296   : > { %v1046_v45 = vadd.f32 %v5655_v49, %v1045_v17  ;;  %v1457_v51 = vpack.c.b16 %v1423_v7, %v5642_v33  ;;  %v4820_v17 = vld [vmem:[#allocation10 + $0x50] sm:$0xff] }
 0x297   : > { %2586 = vmatpush.bf16.msra.mxu2 %v4820_v17 }
 0x298   : > { %v1144_v31 = vmax.f32 %v1046_v45, 0.0  ;;  %v2246_v28 = vshrl.u32 %v1457_v51, 16  ;;  %v2249_v8 = vshll.u32 %v1457_v51, 16  ;;  %v4828_v45 = vld [vmem:[#allocation10 + $0x90] sm:$0xff] }
 0x299   : > { %v4812_v51 = vld [vmem:[#allocation10 + $0x10] sm:$0xff]  ;;  %2675 = vmatpush.bf16.msrb.mxu3 %v4828_v45 }
 0x29a   : > { %v1317_v63 = vpack.c.bf16 %v1144_v31, %v1144_v31  ;;  %v2248_v37 = vrot.slane %v2246_v28, 3  ;;  %v2251_v27 = vrot.slane %v2249_v8, 4  ;;  %v1805_v31 = vpop.f32.mrf.mxu1  ;;  %2497 = vmatpush.bf16.msra.mxu1 %v4812_v51 }
 0x29c   : > { %v1424_v42 = vunpack.c.l.b16 %v1317_v63  ;;  %v2252_v28 = vor.u32 %v2251_v27, %v2248_v37 }
 0x29d   : > { %v1047_v46 = vpop.f32.mrf.mxu0 }
 0x29e   : > { %v1458_v21 = vpack.c.b16 %v1424_v42, %v1424_v42  ;;  %v5875_v4 = vpack.c.b16 %v1424_v42, %v1423_v7 }
 0x2a0   : > { %6552 = vst [vmem:[#allocation45_spill] sm:$0xff] %v5875_v4  ;;  %v2254_v49 = vshrl.u32 %v1458_v21, 16  ;;  %v2257_v53 = vshll.u32 %v1458_v21, 16  ;;  %1829 = vmatmul.bf16.gmra.mxu1 %v5875_v4  ;;  %1913 = vmatmul.bf16.gmra.mxu2 %v5875_v4 }
 0x2a1   : > { %1997 = vmatmul.bf16.gmra.mxu3 %v5875_v4 }
 0x2a2   : > { %v2256_v57 = vrot.slane %v2254_v49, 3  ;;  %v2259_v61 = vrot.slane %v2257_v53, 4  ;;  %v5888_v53 = vld [vmem:[%s6460_s6] ss:$0 sm:$0xff]  ;;  %v5893_v51 = vpop.f32.mrf.mxu1 }
 0x2a3   : > { %v1894_v63 = vpop.f32.mrf.mxu2  ;;  %6553 = vst [vmem:[#allocation46_spill] sm:$0xff] %v5893_v51  ;;  %v4827_v51 = vld [vmem:[#allocation10 + $0x88] sm:$0xff] }
 0x2a4   : > { %v1895_v46 = vadd.f32 %v1894_v63, %v1805_v31  ;;  %v1978_v7 = vpop.f32.mrf.mxu3  ;;  %v2260_v8 = vor.u32 %v2259_v61, %v2256_v57  ;;  %2676 = vmatpush.bf16.msrb.mxu3 %v4827_v51 }
 0x2a5   : > { %v5880_v42 = vadd.f32 %v1978_v7, %v1890_v60  ;;  %v1050_v21 = vpop.f32.mrf.mxu0 }
 0x2a6   : > { %v5883_v41 = vsel %vm2023_vm0, %v2252_v28, %v2260_v8 }
 0x2ab   : > { %v5895_v7 = vpop.f32.mrf.mxu2 }
 0x2ac   : > { %6554 = vst [vmem:[#allocation47_spill] sm:$0xff] %v5895_v7  ;;  %v5897_v28 = vpop.f32.mrf.mxu3  ;;  %v4819_v7 = vld [vmem:[#allocation10 + $0x48] sm:$0xff] }
 0x2ad   : > { %v1052_v49 = vpop.f32.mrf.mxu0  ;;  %6555 = vst [vmem:[#allocation48_spill] sm:$0xff] %v5897_v28  ;;  %2587 = vmatpush.bf16.msra.mxu2 %v4819_v7 }
 0x2ae   : > { %v1053_v31 = vadd.f32 %v5888_v53, %v1052_v49 }
 0x2b0   : > { %v1147_v63 = vmax.f32 %v1053_v31, 0.0 }
 0x2b2   : > { %v1320_v17 = vpack.c.bf16 %v1147_v63, %v1147_v63 }
 0x2b4   : > { %v1426_v45 = vunpack.c.l.b16 %v1320_v17 }
 0x2b5   : > { %v1055_v37 = vpop.f32.mrf.mxu0 }
 0x2b6   : > { %v1056_v60 = vadd.f32 %v5888_v53, %v1055_v37  ;;  %v1459_v27 = vpack.c.b16 %v1426_v45, %v5642_v33 }
 0x2b8   : > { %v1148_v57 = vmax.f32 %v1056_v60, 0.0  ;;  %v2263_v8 = vshrl.u32 %v1459_v27, 16  ;;  %v2266_v21 = vshll.u32 %v1459_v27, 16  ;;  %v4811_v27 = vld [vmem:[#allocation10 + $0x8] sm:$0xff] }
 0x2b9   : > { %2498 = vmatpush.bf16.msra.mxu1 %v4811_v27  ;;  %v4826_v27 = vld [vmem:[#allocation10 + $0x80] sm:$0xff] }
 0x2ba   : > { %v1321_v61 = vpack.c.bf16 %v1148_v57, %v1148_v57  ;;  %v2265_v17 = vrot.slane %v2263_v8, 3  ;;  %v2268_v44 = vrot.slane %v2266_v21, 4  ;;  %2677 = vmatpush.bf16.msrb.mxu3 %v4826_v27 }
 0x2bc   : > { %v1427_v4 = vunpack.c.l.b16 %v1321_v61  ;;  %v1810_v61 = vpop.f32.mrf.mxu1 }
 0x2bd   : > { %v1057_v49 = vpop.f32.mrf.mxu0 }
 0x2be   : > { %v1460_v31 = vpack.c.b16 %v1427_v4, %v1427_v4  ;;  %v5899_v63 = vpack.c.b16 %v1427_v4, %v1426_v45  ;;  %v2269_v45 = vor.u32 %v2268_v44, %v2265_v17 }
 0x2c0   : > { %6556 = vst [vmem:[#allocation49_spill] sm:$0xff] %v5899_v63  ;;  %v2271_v37 = vshrl.u32 %v1460_v31, 16  ;;  %v2274_v10 = vshll.u32 %v1460_v31, 16  ;;  %1834 = vmatmul.bf16.gmra.mxu1 %v5899_v63  ;;  %1918 = vmatmul.bf16.gmra.mxu2 %v5899_v63 }
 0x2c1   : > { %2002 = vmatmul.bf16.gmra.mxu3 %v5899_v63 }
 0x2c2   : > { %v2273_v60 = vrot.slane %v2271_v37, 3  ;;  %v2276_v57 = vrot.slane %v2274_v10, 4  ;;  %v4810_v10 = vld [vmem:[#allocation10] sm:$0xff] }
 0x2c3   : > { %v1899_v49 = vpop.f32.mrf.mxu2  ;;  %2499 = vmatpush.bf16.msra.mxu1 %v4810_v10 }
 0x2c4   : > { %v1900_v28 = vadd.f32 %v1899_v49, %v1810_v61  ;;  %v1983_v4 = vpop.f32.mrf.mxu3  ;;  %v2277_v8 = vor.u32 %v2276_v57, %v2273_v60  ;;  %v4818_v57 = vld [vmem:[#allocation10 + $0x40] sm:$0xff] }
 0x2c5   : > { %v5904_v21 = vadd.f32 %v1983_v4, %v1895_v46  ;;  %v1060_v31 = vpop.f32.mrf.mxu0  ;;  %v5912_v4 = vpop.f32.mrf.mxu1  ;;  %2588 = vmatpush.bf16.msra.mxu2 %v4818_v57  ;;  %v6506_v57 = vshrl.u32 %v5647_v36, 16 }
 0x2c6   : > { %v5907_v63 = vsel %vm2023_vm0, %v2269_v45, %v2277_v8  ;;  %6557 = vst [vmem:[#allocation50_spill] sm:$0xff] %v5912_v4 }
 0x2cb   : > { %v5914_v29 = vpop.f32.mrf.mxu2 }
 0x2cc   : > { %6558 = vst [vmem:[#allocation51_spill] sm:$0xff] %v5914_v29  ;;  %v5916_v45 = vpop.f32.mrf.mxu3 }
 0x2cd   : > { %v1062_v37 = vpop.f32.mrf.mxu0  ;;  %6559 = vst [vmem:[#allocation52_spill] sm:$0xff] %v5916_v45 }
 0x2ce   : > { %v1063_v62 = vadd.f32 %v5888_v53, %v1062_v37 }
 0x2d0   : > { %v1151_v61 = vmax.f32 %v1063_v62, 0.0 }
 0x2d2   : > { %v1324_v49 = vpack.c.bf16 %v1151_v61, %v1151_v61 }
 0x2d4   : > { %v1429_v7 = vunpack.c.l.b16 %v1324_v49 }
 0x2d5   : > { %v1065_v51 = vpop.f32.mrf.mxu0 }
 0x2d6   : > { %v1066_v44 = vadd.f32 %v5888_v53, %v1065_v51  ;;  %v1461_v46 = vpack.c.b16 %v1429_v7, %v5642_v33 }
 0x2d8   : > { %v1152_v17 = vmax.f32 %v1066_v44, 0.0  ;;  %v2280_v8 = vshrl.u32 %v1461_v46, 16  ;;  %v2283_v31 = vshll.u32 %v1461_v46, 16  ;;  %v1815_v46 = vpop.f32.mrf.mxu1 }
 0x2da   : > { %v1325_v60 = vpack.c.bf16 %v1152_v17, %v1152_v17  ;;  %v2282_v49 = vrot.slane %v2280_v8, 3  ;;  %v2285_v51 = vrot.slane %v2283_v31, 4 }
 0x2dc   : > { %v1430_v62 = vunpack.c.l.b16 %v1325_v60 }
 0x2dd   : > { %v1067_v10 = vpop.f32.mrf.mxu0 }
 0x2de   : > { %v1462_v37 = vpack.c.b16 %v1430_v62, %v1430_v62  ;;  %v5918_v61 = vpack.c.b16 %v1430_v62, %v1429_v7  ;;  %v2286_v7 = vor.u32 %v2285_v51, %v2282_v49 }
 0x2e0   : > { %6560 = vst [vmem:[#allocation53_spill] sm:$0xff] %v5918_v61  ;;  %v2288_v44 = vshrl.u32 %v1462_v37, 16  ;;  %v2291_v17 = vshll.u32 %v1462_v37, 16  ;;  %1839 = vmatmul.bf16.gmra.mxu1 %v5918_v61  ;;  %1923 = vmatmul.bf16.gmra.mxu2 %v5918_v61  ;;  %v6508_v37 = vshll.u32 %v5647_v36, 16 }
 0x2e1   : > { %2007 = vmatmul.bf16.gmra.mxu3 %v5918_v61 }
 0x2e2   : > { %v2290_v29 = vrot.slane %v2288_v44, 3  ;;  %v2293_v4 = vrot.slane %v2291_v17, 4  ;;  %v1076_v44 = vadd.f32 %v5888_v53, %v5683_v52  ;;  %v2027_v17 = vrot.slane %v6506_v57, 3  ;;  %v4887_v57 = vld [vmem:[#allocation11 + $0x28] sm:$0xff] }
 0x2e3   : > { %v1904_v60 = vpop.f32.mrf.mxu2  ;;  %3838 = vmatpush.bf16.msrb.mxu0 %v4887_v57 }
 0x2e4   : > { %v1905_v27 = vadd.f32 %v1904_v60, %v1815_v46  ;;  %v1988_v10 = vpop.f32.mrf.mxu3  ;;  %v2294_v62 = vor.u32 %v2293_v4, %v2290_v29  ;;  %v2030_v46 = vrot.slane %v6508_v37, 4  ;;  %v1156_v60 = vmax.f32 %v1076_v44, 0.0  ;;  %v4865_v44 = vld [vmem:[#allocation10 + $0x1b8] sm:$0xff] }
 0x2e5   : > { %v5924_v8 = vadd.f32 %v1988_v10, %v1900_v28  ;;  %v1070_v31 = vpop.f32.mrf.mxu0  ;;  %v4873_v10 = vld [vmem:[#allocation10 + $0x1f8] sm:$0xff]  ;;  %3241 = vmatpush.bf16.msrb.mxu1 %v4865_v44  ;;  %v4880_v44 = vld [vmem:[#allocation10 + $0x230] sm:$0xff] }
 0x2e6   : > { %v5928_v45 = vsel %vm2023_vm0, %v2286_v7, %v2294_v62  ;;  %v5936_v49 = vor.u32 %v2030_v46, %v2027_v17  ;;  %v1329_v29 = vpack.c.bf16 %v1156_v60, %v1156_v60  ;;  %3330 = vmatpush.bf16.msrb.mxu2 %v4873_v10  ;;  %v5952_v17 = vpop.f32.mrf.mxu1 }
 0x2e8   : > { %v5942_v52 = vunpack.c.l.b16 %v1329_v29 }
 0x2eb   : > { %v5954_v46 = vpop.f32.mrf.mxu2 }
 0x2ec   : > { %v5956_v60 = vpop.f32.mrf.mxu3 }
 0x2ed   : > { %v1072_v28 = vpop.f32.mrf.mxu0 }
 0x2ee   : > { %v1073_v4 = vadd.f32 %v5888_v53, %v1072_v28  ;;  %v4881_v53 = vld [vmem:[#allocation10 + $0x238] sm:$0xff]  ;;  %v1820_v28 = vpop.f32.mrf.mxu1 }
 0x2ef   : > { %3419 = vmatpush.bf16.msra.mxu3 %v4881_v53  ;;  %v4872_v53 = vld [vmem:[#allocation10 + $0x1f0] sm:$0xff] }
 0x2f0   : > { %v1155_v51 = vmax.f32 %v1073_v4, 0.0  ;;  %2500 = vmatmul.bf16.vlgmr.msra.gmra.mxu1 %v5936_v49  ;;  %3331 = vmatpush.bf16.msrb.mxu2 %v4872_v53 }
 0x2f2   : > { %v5940_v7 = vpack.c.bf16 %v1155_v51, %v1155_v51 }
 0x2f3   : > { %3420 = vmatpush.bf16.msra.mxu3 %v4880_v44  ;;  %v4879_v44 = vld [vmem:[#allocation10 + $0x228] sm:$0xff] }
 0x2f4   : > { %v6507_v62 = vunpack.c.l.b16 %v5940_v7 }
 0x2f6   : > { %v5948_v31 = vpack.c.b16 %v5942_v52, %v6507_v62  ;;  %v4864_v62 = vld [vmem:[#allocation10 + $0x1b0] sm:$0xff] }
 0x2f7   : > { %3242 = vmatpush.bf16.msrb.mxu1 %v4864_v62  ;;  %3421 = vmatpush.bf16.msra.mxu3 %v4879_v44 }
 0x2f8   : > { %6561 = vst [vmem:[#allocation54_spill] sm:$0xff] %v5948_v31  ;;  %1928 = vmatmul.bf16.gmra.mxu2 %v5948_v31  ;;  %2012 = vmatmul.bf16.gmra.mxu3 %v5948_v31  ;;  %v4863_v31 = vld [vmem:[#allocation10 + $0x1a8] sm:$0xff] }
 0x2fb   : > { %3243 = vmatpush.bf16.msrb.mxu1 %v4863_v31 }
 0x300   : > { %2505 = vmatmul.bf16.gmra.mxu1 %v5667_v18 }
 0x303   : > { %v1909_v4 = vpop.f32.mrf.mxu2 }
 0x304   : > { %v1910_v29 = vadd.f32 %v1909_v4, %v1820_v28  ;;  %v1993_v51 = vpop.f32.mrf.mxu3 }
 0x305   : > { %v5959_v10 = vadd.f32 %v1993_v51, %v1905_v27  ;;  %v5966_v27 = vpop.f32.mrf.mxu1 }
 0x306   : > { %6562 = vst [vmem:[#allocation55_spill] sm:$0xff] %v5966_v27 }
 0x308   : > { %2017 = vmatmul.bf16.gmra.mxu3 %v5647_v36  ;;  %2589 = vmatmul.bf16.vlgmr.msra.gmra.mxu2 %v5667_v18 }
 0x30b   : > { %v5968_v28 = vpop.f32.mrf.mxu2 }
 0x30c   : > { %6563 = vst [vmem:[#allocation56_spill] sm:$0xff] %v5968_v28  ;;  %v5970_v57 = vpop.f32.mrf.mxu3 }
 0x30d   : > { %6564 = vst [vmem:[#allocation57_spill] sm:$0xff] %v5970_v57  ;;  %v1825_v18 = vpop.f32.mrf.mxu1  ;;  %v4869_v57 = vld [vmem:[#allocation10 + $0x1d8] sm:$0xff] }
 0x310   : > { %2510 = vmatmul.bf16.gmra.mxu1 %v5680_v48 }
 0x315   : > { %v5978_v62 = vpop.f32.mrf.mxu1 }
 0x316   : > { %6565 = vst [vmem:[#allocation58_spill] sm:$0xff] %v5978_v62 }
 0x318   : > { %2594 = vmatmul.bf16.gmra.mxu2 %v5680_v48  ;;  %2678 = vmatmul.bf16.vlgmr.msrb.gmra.mxu3 %v5680_v48  ;;  %v4871_v48 = vld [vmem:[#allocation10 + $0x1e8] sm:$0xff] }
 0x319   : > { %3332 = vmatpush.bf16.msrb.mxu2 %v4871_v48 }
 0x320   : > { %2515 = vmatmul.bf16.gmra.mxu1 %v5695_v19 }
 0x323   : > { %v1914_v4 = vpop.f32.mrf.mxu2 }
 0x324   : > { %v1915_v51 = vadd.f32 %v1914_v4, %v1825_v18  ;;  %v1998_v53 = vpop.f32.mrf.mxu3  ;;  %v1830_v18 = vpop.f32.mrf.mxu1 }
 0x325   : > { %v5973_v37 = vadd.f32 %v1998_v53, %v1910_v29 }
 0x328   : > { %2599 = vmatmul.bf16.gmra.mxu2 %v5695_v19  ;;  %2683 = vmatmul.bf16.gmra.mxu3 %v5695_v19 }
 0x32b   : > { %v5982_v29 = vpop.f32.mrf.mxu2 }
 0x32c   : > { %6566 = vst [vmem:[#allocation59_spill] sm:$0xff] %v5982_v29  ;;  %v5984_v4 = vpop.f32.mrf.mxu3  ;;  %v5987_v19 = vpop.f32.mrf.mxu1  ;;  %v4870_v29 = vld [vmem:[#allocation10 + $0x1e0] sm:$0xff] }
 0x32d   : > { %6567 = vst [vmem:[#allocation60_spill] sm:$0xff] %v5984_v4  ;;  %3333 = vmatpush.bf16.msrb.mxu2 %v4870_v29 }
 0x32e   : > { %6568 = vst [vmem:[#allocation61_spill] sm:$0xff] %v5987_v19  ;;  %v4878_v19 = vld [vmem:[#allocation10 + $0x220] sm:$0xff] }
 0x32f   : > { %3422 = vmatpush.bf16.msra.mxu3 %v4878_v19 }
 0x330   : > { %2520 = vmatmul.bf16.gmra.mxu1 %v5708_v55 }
 0x331   : > { %3334 = vmatpush.bf16.msrb.mxu2 %v4869_v57  ;;  %v4885_v57 = vld [vmem:[#allocation11 + $0x18] sm:$0xff] }
 0x338   : > { %2604 = vmatmul.bf16.gmra.mxu2 %v5708_v55  ;;  %2688 = vmatmul.bf16.gmra.mxu3 %v5708_v55  ;;  %v4886_v55 = vld [vmem:[#allocation11 + $0x20] sm:$0xff] }
 0x339   : > { %3839 = vmatpush.bf16.msrb.mxu0 %v4886_v55 }
 0x33d   : > { %v1835_v31 = vpop.f32.mrf.mxu1  ;;  %3840 = vmatpush.bf16.msrb.mxu0 %v4885_v57 }
 0x340   : > { %2525 = vmatmul.bf16.gmra.mxu1 %v5721_v26 }
 0x343   : > { %v1919_v53 = vpop.f32.mrf.mxu2 }
 0x344   : > { %v1920_v61 = vadd.f32 %v1919_v53, %v1830_v18  ;;  %v2003_v48 = vpop.f32.mrf.mxu3  ;;  %v4862_v53 = vld [vmem:[#allocation10 + $0x1a0] sm:$0xff] }
 0x345   : > { %v5989_v62 = vadd.f32 %v2003_v48, %v1915_v51  ;;  %v1837_v44 = vpop.f32.mrf.mxu1  ;;  %3244 = vmatpush.bf16.msrb.mxu1 %v4862_v53 }
 0x347   : > { %6569 = vst [vmem:[#allocation62_spill] sm:$0xff] %v5989_v62 }
 0x348   : > { %2609 = vmatmul.bf16.gmra.mxu2 %v5721_v26  ;;  %2693 = vmatmul.bf16.gmra.mxu3 %v5721_v26 }
 0x34b   : > { %v5996_v51 = vpop.f32.mrf.mxu2 }
 0x34c   : > { %6570 = vst [vmem:[#allocation63_spill] sm:$0xff] %v5996_v51  ;;  %v5998_v18 = vpop.f32.mrf.mxu3 }
 0x34d   : > { %6571 = vst [vmem:[#allocation64_spill] sm:$0xff] %v5998_v18 }
 0x350   : > { %2530 = vmatmul.bf16.gmra.mxu1 %v5740_v6 }
 0x358   : > { %2614 = vmatmul.bf16.gmra.mxu2 %v5740_v6  ;;  %2698 = vmatmul.bf16.gmra.mxu3 %v5740_v6 }
 0x35d   : > { %v1840_v26 = vpop.f32.mrf.mxu1 }
 0x360   : > { %2535 = vmatmul.bf16.gmra.mxu1 %v5761_v58 }
 0x363   : > { %v1924_v48 = vpop.f32.mrf.mxu2 }
 0x364   : > { %v1925_v55 = vadd.f32 %v1924_v48, %v1835_v31  ;;  %v2008_v4 = vpop.f32.mrf.mxu3  ;;  %v4861_v48 = vld [vmem:[#allocation10 + $0x198] sm:$0xff] }
 0x365   : > { %v6001_v28 = vadd.f32 %v2008_v4, %v1920_v61  ;;  %v1842_v27 = vpop.f32.mrf.mxu1  ;;  %v4877_v61 = vld [vmem:[#allocation10 + $0x218] sm:$0xff]  ;;  %3245 = vmatpush.bf16.msrb.mxu1 %v4861_v48 }
 0x366   : > { %3423 = vmatpush.bf16.msra.mxu3 %v4877_v61 }
 0x367   : > { %6572 = vst [vmem:[#allocation65_spill] sm:$0xff] %v6001_v28 }
 0x368   : > { %2619 = vmatmul.bf16.gmra.mxu2 %v5761_v58  ;;  %2703 = vmatmul.bf16.gmra.mxu3 %v5761_v58 }
 0x36b   : > { %v1926_v6 = vpop.f32.mrf.mxu2 }
 0x36c   : > { %v1927_v29 = vadd.f32 %v1926_v6, %v1837_v44  ;;  %v6007_v53 = vpop.f32.mrf.mxu3 }
 0x36d   : > { %v2501_v19 = vpop.f32.mrf.mxu1  ;;  %6573 = vst [vmem:[#allocation66_spill] sm:$0xff] %v6007_v53 }
 0x36e   : > { %v2502_v18 = vadd.f32 %v2501_v19, %v5737_v3 }
 0x370   : > { %2540 = vmatmul.bf16.gmra.mxu1 %v5782_v59 }
 0x375   : > { %v2503_v51 = vpop.f32.mrf.mxu1 }
 0x378   : > { %2624 = vmatmul.bf16.gmra.mxu2 %v5782_v59  ;;  %2708 = vmatmul.bf16.gmra.mxu3 %v5782_v59 }
 0x37b   : > { %v1929_v4 = vpop.f32.mrf.mxu2  ;;  %v2013_v58 = vpop.f32.mrf.mxu3 }
 0x37c   : > { %v1930_v31 = vadd.f32 %v1929_v4, %v1840_v26  ;;  %v6011_v44 = vadd.f32 %v2013_v58, %v1925_v55  ;;  %v1857_v58 = vadd.f32 %v5729_v43, %v5727_v40 }
 0x37d   : > { %v2506_v3 = vpop.f32.mrf.mxu1 }
 0x37e   : > { %v2507_v6 = vadd.f32 %v2506_v3, %v5758_v56 }
 0x380   : > { %2545 = vmatmul.bf16.gmra.mxu1 %v5803_v5 }
 0x383   : > { %v1931_v19 = vpop.f32.mrf.mxu2  ;;  %v2015_v53 = vpop.f32.mrf.mxu3 }
 0x384   : > { %v1932_v28 = vadd.f32 %v1931_v19, %v1842_v27  ;;  %v6015_v62 = vadd.f32 %v2015_v53, %v1927_v29  ;;  %v1946_v29 = vadd.f32 %v5750_v24, %v1857_v58 }
 0x385   : > { %v2508_v59 = vpop.f32.mrf.mxu1 }
 0x386   : > { %v2504_v53 = vadd.f32 %v2503_v51, %v1946_v29  ;;  %v4860_v51 = vld [vmem:[#allocation10 + $0x190] sm:$0xff] }
 0x387   : > { %3246 = vmatpush.bf16.msrb.mxu1 %v4860_v51 }
 0x388   : > { %2629 = vmatmul.bf16.gmra.mxu2 %v5803_v5  ;;  %2713 = vmatmul.bf16.gmra.mxu3 %v5803_v5 }
 0x38b   : > { %v2018_v26 = vpop.f32.mrf.mxu3  ;;  %v2590_v55 = vpop.f32.mrf.mxu2 }
 0x38c   : > { %v6019_v61 = vadd.f32 %v2018_v26, %v1930_v31  ;;  %v2591_v56 = vadd.f32 %v2590_v55, %v2502_v18  ;;  %v4868_v31 = vld [vmem:[#allocation10 + $0x1d0] sm:$0xff] }
 0x38d   : > { %v2511_v4 = vpop.f32.mrf.mxu1  ;;  %v4876_v18 = vld [vmem:[#allocation10 + $0x210] sm:$0xff]  ;;  %3335 = vmatpush.bf16.msrb.mxu2 %v4868_v31 }
 0x38e   : > { %v2512_v27 = vadd.f32 %v2511_v4, %v5779_v54  ;;  %3424 = vmatpush.bf16.msra.mxu3 %v4876_v18 }
 0x390   : > { %2550 = vmatmul.bf16.gmra.mxu1 %v5824_v39 }
 0x393   : > { %v2020_v48 = vpop.f32.mrf.mxu3  ;;  %v2592_v5 = vpop.f32.mrf.mxu2 }
 0x394   : > { %v6026_v3 = vadd.f32 %v2020_v48, %v1932_v28  ;;  %v2593_v19 = vadd.f32 %v2592_v5, %v2504_v53  ;;  %v1862_v28 = vadd.f32 %v5748_v23, %v5746_v22 }
 0x395   : > { %v2513_v57 = vpop.f32.mrf.mxu1 }
 0x396   : > { %v1951_v4 = vadd.f32 %v5771_v13, %v1862_v28  ;;  %v1867_v13 = vadd.f32 %v5769_v12, %v5767_v11  ;;  %v1872_v28 = vadd.f32 %v5790_v15, %v5788_v14 }
 0x398   : > { %2634 = vmatmul.bf16.gmra.mxu2 %v5824_v39  ;;  %2718 = vmatmul.bf16.gmra.mxu3 %v5824_v39  ;;  %v2509_v39 = vadd.f32 %v2508_v59, %v1951_v4  ;;  %v1956_v31 = vadd.f32 %v5792_v16, %v1867_v13 }
 0x39b   : > { %v2595_v40 = vpop.f32.mrf.mxu2  ;;  %v2679_v43 = vpop.f32.mrf.mxu3 }
 0x39c   : > { %v2596_v24 = vadd.f32 %v2595_v40, %v2507_v6  ;;  %v6030_v54 = vadd.f32 %v2679_v43, %v2591_v56 }
 0x39d   : > { %v2516_v26 = vpop.f32.mrf.mxu1 }
 0x39e   : > { %v2517_v55 = vadd.f32 %v2516_v26, %v5800_v1 }
 0x3a0   : > { %2555 = vmatmul.bf16.gmra.mxu1 %v5845_v38 }
 0x3a3   : > { %v2597_v58 = vpop.f32.mrf.mxu2  ;;  %v2681_v29 = vpop.f32.mrf.mxu3 }
 0x3a4   : > { %v2598_v53 = vadd.f32 %v2597_v58, %v2509_v39  ;;  %v6037_v48 = vadd.f32 %v2681_v29, %v2593_v19  ;;  %v2514_v19 = vadd.f32 %v2513_v57, %v1956_v31  ;;  %v4859_v57 = vld [vmem:[#allocation10 + $0x188] sm:$0xff]  ;;  %v1961_v39 = vadd.f32 %v5813_v35, %v1872_v28  ;;  %v4858_v35 = vld [vmem:[#allocation10 + $0x180] sm:$0xff] }
 0x3a5   : > { %v2518_v6 = vpop.f32.mrf.mxu1  ;;  %3247 = vmatpush.bf16.msrb.mxu1 %v4859_v57 }
 0x3a8   : > { %2639 = vmatmul.bf16.gmra.mxu2 %v5845_v38  ;;  %2723 = vmatmul.bf16.gmra.mxu3 %v5845_v38 }
 0x3a9   : > { %3248 = vmatpush.bf16.msrb.mxu1 %v4858_v35 }
 0x3ab   : > { %v2600_v56 = vpop.f32.mrf.mxu2  ;;  %v2684_v22 = vpop.f32.mrf.mxu3 }
 0x3ac   : > { %v2601_v23 = vadd.f32 %v2600_v56, %v2512_v27  ;;  %v6041_v1 = vadd.f32 %v2684_v22, %v2596_v24  ;;  %v4867_v27 = vld [vmem:[#allocation10 + $0x1c8] sm:$0xff] }
 0x3ad   : > { %v2521_v5 = vpop.f32.mrf.mxu1  ;;  %v4875_v24 = vld [vmem:[#allocation10 + $0x208] sm:$0xff]  ;;  %3336 = vmatpush.bf16.msrb.mxu2 %v4867_v27  ;;  %v4866_v27 = vld [vmem:[#allocation10 + $0x1c0] sm:$0xff] }
 0x3ae   : > { %v2522_v59 = vadd.f32 %v2521_v5, %v5821_v30  ;;  %3425 = vmatpush.bf16.msra.mxu3 %v4875_v24 }
 0x3b0   : > { %2560 = vmatmul.bf16.gmra.mxu1 %v5864_v47 }
 0x3b1   : > { %3337 = vmatpush.bf16.msrb.mxu2 %v4866_v27 }
 0x3b3   : > { %v2602_v18 = vpop.f32.mrf.mxu2  ;;  %v2686_v40 = vpop.f32.mrf.mxu3 }
 0x3b4   : > { %v2603_v43 = vadd.f32 %v2602_v18, %v2514_v19  ;;  %v6048_v38 = vadd.f32 %v2686_v40, %v2598_v53 }
 0x3b5   : > { %v2523_v51 = vpop.f32.mrf.mxu1 }
 0x3b8   : > { %2644 = vmatmul.bf16.gmra.mxu2 %v5864_v47  ;;  %2728 = vmatmul.bf16.gmra.mxu3 %v5864_v47  ;;  %v2519_v47 = vadd.f32 %v2518_v6, %v1961_v39  ;;  %v1877_v6 = vadd.f32 %v5811_v34, %v5809_v32  ;;  %v4874_v32 = vld [vmem:[#allocation10 + $0x200] sm:$0xff] }
 0x3b9   : > { %3426 = vmatpush.bf16.msra.mxu3 %v4874_v32 }
 0x3ba   : > { %v1966_v31 = vadd.f32 %v5834_v9, %v1877_v6 }
 0x3bb   : > { %v2605_v11 = vpop.f32.mrf.mxu2  ;;  %v2689_v12 = vpop.f32.mrf.mxu3 }
 0x3bc   : > { %v2606_v16 = vadd.f32 %v2605_v11, %v2517_v55  ;;  %v6052_v30 = vadd.f32 %v2689_v12, %v2601_v23  ;;  %v4884_v23 = vld [vmem:[#allocation11 + $0x10] sm:$0xff]  ;;  %v1882_v11 = vadd.f32 %v5832_v2, %v5830_v0  ;;  %v6575_v0 = vunpack.c.l.b16 %v5940_v7 }
 0x3bd   : > { %v2526_v26 = vpop.f32.mrf.mxu1  ;;  %3841 = vmatpush.bf16.msrb.mxu0 %v4884_v23 }
 0x3be   : > { %v2527_v4 = vadd.f32 %v2526_v26, %v5842_v50  ;;  %v1469_v2 = vpack.c.b16 %v6575_v0, %v5642_v33 }
 0x3c0   : > { %2565 = vmatmul.bf16.gmra.mxu1 %v5883_v41 }
 0x3c3   : > { %v2607_v58 = vpop.f32.mrf.mxu2  ;;  %v2691_v29 = vpop.f32.mrf.mxu3 }
 0x3c4   : > { %v2608_v53 = vadd.f32 %v2607_v58, %v2519_v47  ;;  %v6059_v56 = vadd.f32 %v2691_v29, %v2603_v43 }
 0x3c5   : > { %v2528_v55 = vpop.f32.mrf.mxu1 }
 0x3c8   : > { %2649 = vmatmul.bf16.gmra.mxu2 %v5883_v41  ;;  %2733 = vmatmul.bf16.gmra.mxu3 %v5883_v41  ;;  %v2524_v41 = vadd.f32 %v2523_v51, %v1966_v31 }
 0x3cb   : > { %v2610_v22 = vpop.f32.mrf.mxu2  ;;  %v2694_v14 = vpop.f32.mrf.mxu3 }
 0x3cc   : > { %v2611_v15 = vadd.f32 %v2610_v22, %v2522_v59  ;;  %v6063_v50 = vadd.f32 %v2694_v14, %v2606_v16  ;;  %v1971_v16 = vadd.f32 %v5854_v20, %v1882_v11  ;;  %v1470_v20 = vpack.c.b16 %v5942_v52, %v5942_v52  ;;  %v6577_v52 = vld [vmem:[#allocation39_spill] sm:$0xff] }
 0x3cd   : > { %v2531_v5 = vpop.f32.mrf.mxu1 }
 0x3ce   : > { %v2532_v13 = vadd.f32 %v2531_v5, %v5861_v25  ;;  %v2529_v57 = vadd.f32 %v2528_v55, %v1971_v16  ;;  %v2300_v55 = vshll.u32 %v1469_v2, 16  ;;  %v2305_v33 = vshrl.u32 %v1470_v20, 16  ;;  %v6578_v5 = vld [vmem:[#allocation40_spill] sm:$0xff] }
 0x3cf   : > { %v2308_v7 = vshll.u32 %v1470_v20, 16 }
 0x3d0   : > { %2570 = vmatmul.bf16.gmra.mxu1 %v5907_v63 }
 0x3d3   : > { %v2612_v19 = vpop.f32.mrf.mxu2  ;;  %v2696_v18 = vpop.f32.mrf.mxu3 }
 0x3d4   : > { %v2613_v59 = vadd.f32 %v2612_v19, %v2524_v41  ;;  %v6070_v40 = vadd.f32 %v2696_v18, %v2608_v53  ;;  %v2297_v53 = vshrl.u32 %v1469_v2, 16  ;;  %v2302_v41 = vrot.slane %v2300_v55, 4  ;;  %v6579_v19 = vld [vmem:[#allocation44_spill] sm:$0xff]  ;;  %v6582_v55 = vld [vmem:[#allocation43_spill] sm:$0xff] }
 0x3d5   : > { %v2533_v43 = vpop.f32.mrf.mxu1 }
 0x3d6   : > { %v2299_v31 = vrot.slane %v2297_v53, 3  ;;  %v6581_v53 = vld [vmem:[#allocation42_spill] sm:$0xff] }
 0x3d8   : > { %2654 = vmatmul.bf16.gmra.mxu2 %v5907_v63  ;;  %2738 = vmatmul.bf16.gmra.mxu3 %v5907_v63 }
 0x3db   : > { %v2615_v34 = vpop.f32.mrf.mxu2  ;;  %v2699_v25 = vpop.f32.mrf.mxu3 }
 0x3dc   : > { %v2616_v9 = vadd.f32 %v2615_v34, %v2527_v4  ;;  %v6074_v24 = vadd.f32 %v2699_v25, %v2611_v15  ;;  %v6574_v4 = vshll.u32 %v5647_v36, 16  ;;  %v2303_v25 = vor.u32 %v2302_v41, %v2299_v31 }
 0x3dd   : > { %v2536_v51 = vpop.f32.mrf.mxu1 }
 0x3de   : > { %v2537_v12 = vadd.f32 %v2536_v51, %v5880_v42  ;;  %v6085_v58 = vrot.slane %v6574_v4, 1  ;;  %v6576_v42 = vshrl.u32 %v5647_v36, 16  ;;  %v1887_v36 = vadd.f32 %v6578_v5, %v6577_v52 }
 0x3e0   : > { %2575 = vmatmul.bf16.gmra.mxu1 %v5928_v45  ;;  %v2869_v29 = vor.u32 %v6085_v58, %v6576_v42  ;;  %v1976_v18 = vadd.f32 %v6579_v19, %v1887_v36  ;;  %v6584_v36 = vld [vmem:[#allocation29_spill] sm:$0xff] }
 0x3e1   : > { %v2890_v31 = vshll.u32 %v6584_v36, 16 }
 0x3e2   : > { %v2534_v27 = vadd.f32 %v2533_v43, %v1976_v18 }
 0x3e3   : > { %v2617_v63 = vpop.f32.mrf.mxu2  ;;  %v2701_v26 = vpop.f32.mrf.mxu3  ;;  %v2892_v19 = vrot.slane %v2890_v31, 1 }
 0x3e4   : > { %v2618_v28 = vadd.f32 %v2617_v63, %v2529_v57  ;;  %v6081_v39 = vadd.f32 %v2701_v26, %v2613_v59  ;;  %v2310_v59 = vrot.slane %v2308_v7, 4 }
 0x3e5   : > { %v2538_v47 = vpop.f32.mrf.mxu1 }
 0x3e8   : > { %2659 = vmatmul.bf16.gmra.mxu2 %v5928_v45  ;;  %2743 = vmatmul.bf16.gmra.mxu3 %v5928_v45  ;;  %v6101_v45 = vsel %vm2862_vm1, %v2869_v29, %v6085_v58 }
 0x3eb   : > { %v2620_v22 = vpop.f32.mrf.mxu2  ;;  %v2704_v14 = vpop.f32.mrf.mxu3 }
 0x3ec   : > { %v2621_v15 = vadd.f32 %v2620_v22, %v2532_v13  ;;  %v6097_v23 = vadd.f32 %v2704_v14, %v2616_v9  ;;  %v2307_v13 = vrot.slane %v2305_v33, 3  ;;  %v6580_v9 = vld [vmem:[#allocation28_spill] sm:$0xff] }
 0x3ed   : > { %v2541_v35 = vpop.f32.mrf.mxu1  ;;  %v2878_v51 = vshll.u32 %v6580_v9, 16  ;;  %v2876_v4 = vshrl.u32 %v6580_v9, 16  ;;  %v6583_v33 = vld [vmem:[#allocation48_spill] sm:$0xff] }
 0x3ee   : > { %v2542_v6 = vadd.f32 %v2541_v35, %v5904_v21  ;;  %v2311_v63 = vor.u32 %v2310_v59, %v2307_v13 }
 0x3ef   : > { %v2880_v26 = vrot.slane %v2878_v51, 1 }
 0x3f0   : > { %3249 = vmatmul.bf16.vlgmr.msrb.gmra.mxu1 %v6101_v45  ;;  %v2312_v21 = vsel %vm2023_vm0, %v2303_v25, %v2311_v63  ;;  %v6586_v25 = vld [vmem:[#allocation47_spill] sm:$0xff] }
 0x3f1   : > { %v2881_v43 = vor.u32 %v2880_v26, %v2876_v4 }
 0x3f3   : > { %v2622_v32 = vpop.f32.mrf.mxu2  ;;  %v2706_v34 = vpop.f32.mrf.mxu3  ;;  %v2886_v14 = vsel %vm2862_vm1, %v2881_v43, %v6085_v58 }
 0x3f4   : > { %v2623_v11 = vadd.f32 %v2622_v32, %v2534_v27  ;;  %v6109_v16 = vadd.f32 %v2706_v34, %v2618_v28  ;;  %v1892_v28 = vadd.f32 %v6582_v55, %v6581_v53  ;;  %v6585_v34 = vld [vmem:[#allocation46_spill] sm:$0xff] }
 0x3f5   : > { %v2543_v57 = vpop.f32.mrf.mxu1  ;;  %v1897_v9 = vadd.f32 %v6586_v25, %v6585_v34 }
 0x3f6   : > { %v1981_v7 = vadd.f32 %v6583_v33, %v1892_v28 }
 0x3f8   : > { %2664 = vmatmul.bf16.gmra.mxu2 %v2312_v21  ;;  %2748 = vmatmul.bf16.gmra.mxu3 %v2312_v21  ;;  %v2539_v35 = vadd.f32 %v2538_v47, %v1981_v7 }
 0x3fb   : > { %v2625_v0 = vpop.f32.mrf.mxu2  ;;  %v2709_v2 = vpop.f32.mrf.mxu3 }
 0x3fc   : > { %v2626_v20 = vadd.f32 %v2625_v0, %v2537_v12  ;;  %v6113_v42 = vadd.f32 %v2709_v2, %v2621_v15 }
 0x3fd   : > { %v2546_v29 = vpop.f32.mrf.mxu1 }
 0x3fe   : > { %v2547_v22 = vadd.f32 %v2546_v29, %v5924_v8  ;;  %v2888_v8 = vshrl.u32 %v6584_v36, 16 }
 0x400   : > { %3254 = vmatmul.bf16.gmra.mxu1 %v2886_v14  ;;  %v2893_v59 = vor.u32 %v2892_v19, %v2888_v8 }
 0x402   : > { %v2898_v63 = vsel %vm2862_vm1, %v2893_v59, %v6085_v58 }
 0x403   : > { %v2627_v52 = vpop.f32.mrf.mxu2  ;;  %v2711_v5 = vpop.f32.mrf.mxu3 }
 0x404   : > { %v2628_v12 = vadd.f32 %v2627_v52, %v2539_v35  ;;  %v6122_v15 = vadd.f32 %v2711_v5, %v2623_v11  ;;  %v4883_v11 = vld [vmem:[#allocation11 + $0x8] sm:$0xff]  ;;  %v6589_v35 = vld [vmem:[#allocation50_spill] sm:$0xff]  ;;  %v6590_v52 = vld [vmem:[#allocation51_spill] sm:$0xff] }
 0x405   : > { %v2548_v41 = vpop.f32.mrf.mxu1  ;;  %3842 = vmatpush.bf16.msrb.mxu0 %v4883_v11  ;;  %v1902_v5 = vadd.f32 %v6590_v52, %v6589_v35 }
 0x408   : > { %2753 = vmatmul.bf16.gmra.mxu3 %v5936_v49  ;;  %3338 = vmatmul.bf16.vlgmr.msrb.gmra.mxu2 %v2886_v14  ;;  %v6587_v49 = vld [vmem:[#allocation52_spill] sm:$0xff] }
 0x409   : > { %v1986_v21 = vadd.f32 %v6587_v49, %v1897_v9  ;;  %v1907_v49 = vadd.f32 %v5954_v46, %v5952_v17 }
 0x40b   : > { %v2630_v18 = vpop.f32.mrf.mxu2  ;;  %v2714_v13 = vpop.f32.mrf.mxu3  ;;  %v2544_v26 = vadd.f32 %v2543_v57, %v1986_v21  ;;  %v6592_v21 = vld [vmem:[#allocation62_spill] sm:$0xff] }
 0x40c   : > { %v2631_v27 = vadd.f32 %v2630_v18, %v2542_v6  ;;  %v6126_v32 = vadd.f32 %v2714_v13, %v2626_v20  ;;  %v6588_v6 = vld [vmem:[#allocation30_spill] sm:$0xff]  ;;  %v6591_v13 = vld [vmem:[#allocation31_spill] sm:$0xff] }
 0x40d   : > { %v2551_v47 = vpop.f32.mrf.mxu1  ;;  %v2902_v2 = vshll.u32 %v6588_v6, 16  ;;  %v2914_v59 = vshll.u32 %v6591_v13, 16 }
 0x40e   : > { %v2552_v51 = vadd.f32 %v2551_v47, %v5959_v10  ;;  %v2900_v10 = vshrl.u32 %v6588_v6, 16 }
 0x40f   : > { %v2904_v53 = vrot.slane %v2902_v2, 1  ;;  %v2916_v34 = vrot.slane %v2914_v59, 1  ;;  %v6598_v59 = vld [vmem:[#allocation60_spill] sm:$0xff] }
 0x410   : > { %3259 = vmatmul.bf16.gmra.mxu1 %v2898_v63 }
 0x411   : > { %v2905_v14 = vor.u32 %v2904_v53, %v2900_v10  ;;  %v6594_v10 = vld [vmem:[#allocation32_spill] sm:$0xff] }
 0x412   : > { %v2924_v17 = vshrl.u32 %v6594_v10, 16 }
 0x413   : > { %v2632_v4 = vpop.f32.mrf.mxu2  ;;  %v2716_v0 = vpop.f32.mrf.mxu3  ;;  %v2910_v31 = vsel %vm2862_vm1, %v2905_v14, %v6085_v58 }
 0x414   : > { %v2633_v43 = vadd.f32 %v2632_v4, %v2544_v26  ;;  %v6135_v20 = vadd.f32 %v2716_v0, %v2628_v12  ;;  %v1991_v12 = vadd.f32 %v5956_v60, %v1902_v5  ;;  %v6593_v0 = vld [vmem:[#allocation57_spill] sm:$0xff] }
 0x415   : > { %v2553_v29 = vpop.f32.mrf.mxu1  ;;  %v1996_v6 = vadd.f32 %v6593_v0, %v1907_v49  ;;  %v6602_v49 = vld [vmem:[#allocation66_spill] sm:$0xff] }
 0x416   : > { %v2549_v19 = vadd.f32 %v2548_v41, %v1991_v12  ;;  %v6596_v12 = vld [vmem:[#allocation56_spill] sm:$0xff] }
 0x417   : > { %v2554_v2 = vadd.f32 %v2553_v29, %v1996_v6 }
 0x418   : > { %3343 = vmatmul.bf16.gmra.mxu2 %v2898_v63  ;;  %3427 = vmatmul.bf16.vlgmr.msra.gmra.mxu3 %v2898_v63 }
 0x41b   : > { %v2635_v55 = vpop.f32.mrf.mxu2  ;;  %v2719_v28 = vpop.f32.mrf.mxu3 }
 0x41c   : > { %v2636_v33 = vadd.f32 %v2635_v55, %v2547_v22  ;;  %v6138_v7 = vadd.f32 %v2719_v28, %v2631_v27  ;;  %v2926_v55 = vshll.u32 %v6594_v10, 16 }
 0x41d   : > { %v2556_v57 = vpop.f32.mrf.mxu1 }
 0x41e   : > { %v2557_v36 = vadd.f32 %v2556_v57, %v5973_v37  ;;  %v2912_v37 = vshrl.u32 %v6591_v13, 16 }
 0x420   : > { %3264 = vmatmul.bf16.gmra.mxu1 %v2910_v31  ;;  %v2917_v11 = vor.u32 %v2916_v34, %v2912_v37  ;;  %v6599_v34 = vld [vmem:[#allocation61_spill] sm:$0xff]  ;;  %v6600_v37 = vld [vmem:[#allocation63_spill] sm:$0xff] }
 0x422   : > { %v2922_v4 = vsel %vm2862_vm1, %v2917_v11, %v6085_v58 }
 0x423   : > { %v2637_v8 = vpop.f32.mrf.mxu2  ;;  %v2721_v18 = vpop.f32.mrf.mxu3 }
 0x424   : > { %v2638_v22 = vadd.f32 %v2637_v8, %v2549_v19  ;;  %v6147_v27 = vadd.f32 %v2721_v18, %v2633_v43  ;;  %v6597_v8 = vld [vmem:[#allocation65_spill] sm:$0xff] }
 0x425   : > { %v2558_v47 = vpop.f32.mrf.mxu1 }
 0x428   : > { %3348 = vmatmul.bf16.gmra.mxu2 %v2910_v31  ;;  %3432 = vmatmul.bf16.gmra.mxu3 %v2910_v31  ;;  %v6595_v31 = vld [vmem:[#allocation55_spill] sm:$0xff] }
 0x429   : > { %v1912_v19 = vadd.f32 %v6596_v12, %v6595_v31  ;;  %v6605_v12 = vld [vmem:[#allocation64_spill] sm:$0xff] }
 0x42b   : > { %v2640_v25 = vpop.f32.mrf.mxu2  ;;  %v2724_v9 = vpop.f32.mrf.mxu3 }
 0x42c   : > { %v2641_v63 = vadd.f32 %v2640_v25, %v2552_v51  ;;  %v6150_v60 = vadd.f32 %v2724_v9, %v2636_v33  ;;  %v2928_v33 = vrot.slane %v2926_v55, 1  ;;  %v1922_v25 = vadd.f32 %v6600_v37, %v6599_v34 }
 0x42d   : > { %v2561_v41 = vpop.f32.mrf.mxu1 }
 0x42e   : > { %v2562_v26 = vadd.f32 %v2561_v41, %v6592_v21  ;;  %v2929_v35 = vor.u32 %v2928_v33, %v2924_v17  ;;  %v2011_v21 = vadd.f32 %v6602_v49, %v1922_v25 }
 0x430   : > { %3269 = vmatmul.bf16.gmra.mxu1 %v2922_v4  ;;  %v2934_v13 = vsel %vm2862_vm1, %v2929_v35, %v6085_v58  ;;  %v6604_v35 = vld [vmem:[#allocation59_spill] sm:$0xff] }
 0x433   : > { %v2642_v43 = vpop.f32.mrf.mxu2  ;;  %v2726_v53 = vpop.f32.mrf.mxu3 }
 0x434   : > { %v2643_v51 = vadd.f32 %v2642_v43, %v2554_v2  ;;  %v6159_v28 = vadd.f32 %v2726_v53, %v2638_v22  ;;  %v2001_v22 = vadd.f32 %v6598_v59, %v1912_v19 }
 0x435   : > { %v2563_v14 = vpop.f32.mrf.mxu1 }
 0x436   : > { %v2559_v9 = vadd.f32 %v2558_v47, %v2001_v22 }
 0x438   : > { %3353 = vmatmul.bf16.gmra.mxu2 %v2922_v4  ;;  %3437 = vmatmul.bf16.gmra.mxu3 %v2922_v4 }
 0x43b   : > { %v2645_v46 = vpop.f32.mrf.mxu2  ;;  %v2729_v57 = vpop.f32.mrf.mxu3 }
 0x43c   : > { %v2646_v52 = vadd.f32 %v2645_v46, %v2557_v36  ;;  %v6162_v5 = vadd.f32 %v2729_v57, %v2641_v63  ;;  %v6601_v63 = vld [vmem:[#allocation33_spill] sm:$0xff]  ;;  %v6603_v57 = vld [vmem:[#allocation58_spill] sm:$0xff] }
 0x43d   : > { %v2566_v29 = vpop.f32.mrf.mxu1  ;;  %v2938_v41 = vshll.u32 %v6601_v63, 16  ;;  %v2936_v53 = vshrl.u32 %v6601_v63, 16 }
 0x43e   : > { %v2567_v18 = vadd.f32 %v2566_v29, %v6597_v8  ;;  %v1917_v29 = vadd.f32 %v6604_v35, %v6603_v57  ;;  %v4882_v8 = vld [vmem:[#allocation11] sm:$0xff] }
 0x43f   : > { %v2940_v43 = vrot.slane %v2938_v41, 1  ;;  %3843 = vmatpush.bf16.msrb.mxu0 %v4882_v8 }
 0x440   : > { %3274 = vmatmul.bf16.gmra.mxu1 %v2934_v13  ;;  %v2006_v19 = vadd.f32 %v6605_v12, %v1917_v29 }
 0x441   : > { %v2941_v33 = vor.u32 %v2940_v43, %v2936_v53  ;;  %v6607_v53 = vld [vmem:[#allocation35_spill] sm:$0xff] }
 0x443   : > { %v2647_v11 = vpop.f32.mrf.mxu2  ;;  %v2731_v36 = vpop.f32.mrf.mxu3  ;;  %v2946_v31 = vsel %vm2862_vm1, %v2941_v33, %v6085_v58 }
 0x444   : > { %v2648_v4 = vadd.f32 %v2647_v11, %v2559_v9  ;;  %v6174_v0 = vadd.f32 %v2731_v36, %v2643_v51 }
 0x445   : > { %v2568_v6 = vpop.f32.mrf.mxu1 }
 0x446   : > { %v2569_v2 = vadd.f32 %v2568_v6, %v2011_v21 }
 0x448   : > { %3358 = vmatmul.bf16.gmra.mxu2 %v2934_v13  ;;  %3442 = vmatmul.bf16.gmra.mxu3 %v2934_v13  ;;  %v2564_v13 = vadd.f32 %v2563_v14, %v2006_v19 }
 0x44b   : > { %v2650_v10 = vpop.f32.mrf.mxu2  ;;  %v2734_v55 = vpop.f32.mrf.mxu3 }
 0x44c   : > { %v2651_v47 = vadd.f32 %v2650_v10, %v2562_v26  ;;  %v6177_v17 = vadd.f32 %v2734_v55, %v2646_v52  ;;  %v6606_v26 = vld [vmem:[#allocation34_spill] sm:$0xff]  ;;  %v2962_v10 = vshll.u32 %v6607_v53, 16 }
 0x44d   : > { %v2571_v46 = vpop.f32.mrf.mxu1  ;;  %v2950_v52 = vshll.u32 %v6606_v26, 16  ;;  %v2948_v11 = vshrl.u32 %v6606_v26, 16 }
 0x44e   : > { %v2572_v51 = vadd.f32 %v2571_v46, %v6011_v44 }
 0x44f   : > { %v2952_v44 = vrot.slane %v2950_v52, 1 }
 0x450   : > { %3279 = vmatmul.bf16.gmra.mxu1 %v2946_v31 }
 0x451   : > { %v2953_v41 = vor.u32 %v2952_v44, %v2948_v11 }
 0x453   : > { %v2652_v59 = vpop.f32.mrf.mxu2  ;;  %v2736_v22 = vpop.f32.mrf.mxu3 }
 0x454   : > { %v2653_v34 = vadd.f32 %v2652_v59, %v2564_v13  ;;  %v6186_v37 = vadd.f32 %v2736_v22, %v2648_v4  ;;  %v2958_v4 = vsel %vm2862_vm1, %v2953_v41, %v6085_v58  ;;  %v6608_v59 = vld [vmem:[#allocation36_spill] sm:$0xff] }
 0x455   : > { %v2573_v25 = vpop.f32.mrf.mxu1 }
 0x456   : > { %v2574_v9 = vadd.f32 %v2573_v25, %v6015_v62 }
 0x458   : > { %3363 = vmatmul.bf16.gmra.mxu2 %v2946_v31  ;;  %3447 = vmatmul.bf16.gmra.mxu3 %v2946_v31 }
 0x45b   : > { %v2655_v36 = vpop.f32.mrf.mxu2  ;;  %v2739_v63 = vpop.f32.mrf.mxu3 }
 0x45c   : > { %v2656_v14 = vadd.f32 %v2655_v36, %v2567_v18  ;;  %v6190_v49 = vadd.f32 %v2739_v63, %v2651_v47  ;;  %v2964_v18 = vrot.slane %v2962_v10, 1  ;;  %v2960_v47 = vshrl.u32 %v6607_v53, 16 }
 0x45d   : > { %v2576_v21 = vpop.f32.mrf.mxu1 }
 0x45e   : > { %v2577_v6 = vadd.f32 %v2576_v21, %v6019_v61  ;;  %v2965_v29 = vor.u32 %v2964_v18, %v2960_v47 }
 0x460   : > { %3284 = vmatmul.bf16.gmra.mxu1 %v2958_v4 }
 0x463   : > { %v2657_v43 = vpop.f32.mrf.mxu2  ;;  %v2741_v62 = vpop.f32.mrf.mxu3 }
 0x464   : > { %v2658_v55 = vadd.f32 %v2657_v43, %v2569_v2  ;;  %v6196_v33 = vadd.f32 %v2741_v62, %v2653_v34  ;;  %v2970_v2 = vsel %vm2862_vm1, %v2965_v29, %v6085_v58 }
 0x465   : > { %v2578_v46 = vpop.f32.mrf.mxu1 }
 0x466   : > { %v2579_v57 = vadd.f32 %v2578_v46, %v6026_v3  ;;  %v2974_v3 = vshll.u32 %v6608_v59, 16 }
 0x468   : > { %3368 = vmatmul.bf16.gmra.mxu2 %v2958_v4  ;;  %3452 = vmatmul.bf16.gmra.mxu3 %v2958_v4  ;;  %v2976_v34 = vrot.slane %v2974_v3, 1  ;;  %v6609_v4 = vld [vmem:[#allocation37_spill] sm:$0xff] }
 0x469   : > { %v2986_v43 = vshll.u32 %v6609_v4, 16 }
 0x46b   : > { %v2660_v61 = vpop.f32.mrf.mxu2  ;;  %v2744_v35 = vpop.f32.mrf.mxu3 }
 0x46c   : > { %v2661_v31 = vadd.f32 %v2660_v61, %v2572_v51  ;;  %v6200_v12 = vadd.f32 %v2744_v35, %v2656_v14  ;;  %v2972_v51 = vshrl.u32 %v6608_v59, 16 }
 0x46d   : > { %v3250_v19 = vpop.f32.mrf.mxu1 }
 0x46e   : > { %v2977_v11 = vor.u32 %v2976_v34, %v2972_v51 }
 0x470   : > { %3289 = vmatmul.bf16.gmra.mxu1 %v2970_v2  ;;  %v2982_v14 = vsel %vm2862_vm1, %v2977_v11, %v6085_v58 }
 0x473   : > { %v2662_v8 = vpop.f32.mrf.mxu2  ;;  %v2746_v13 = vpop.f32.mrf.mxu3 }
 0x474   : > { %v2663_v22 = vadd.f32 %v2662_v8, %v2574_v9  ;;  %v6205_v26 = vadd.f32 %v2746_v13, %v2658_v55  ;;  %v2988_v55 = vrot.slane %v2986_v43, 1 }
 0x475   : > { %v3252_v52 = vpop.f32.mrf.mxu1 }
 0x478   : > { %3373 = vmatmul.bf16.gmra.mxu2 %v2970_v2  ;;  %3457 = vmatmul.bf16.gmra.mxu3 %v2970_v2  ;;  %v6610_v2 = vld [vmem:[#allocation38_spill] sm:$0xff] }
 0x479   : > { %v2998_v8 = vshll.u32 %v6610_v2, 16 }
 0x47b   : > { %v2665_v25 = vpop.f32.mrf.mxu2  ;;  %v2749_v44 = vpop.f32.mrf.mxu3  ;;  %v3000_v3 = vrot.slane %v2998_v8, 1 }
 0x47c   : > { %v2666_v36 = vadd.f32 %v2665_v25, %v2577_v6  ;;  %v6208_v63 = vadd.f32 %v2749_v44, %v2661_v31  ;;  %v2984_v6 = vshrl.u32 %v6609_v4, 16 }
 0x47d   : > { %v3255_v41 = vpop.f32.mrf.mxu1 }
 0x47e   : > { %v2989_v47 = vor.u32 %v2988_v55, %v2984_v6  ;;  %v6611_v55 = vld [vmem:[#allocation41_spill] sm:$0xff] }
 0x47f   : > { %v3010_v6 = vshll.u32 %v6611_v55, 16 }
 0x480   : > { %3294 = vmatmul.bf16.gmra.mxu1 %v2982_v14  ;;  %v2994_v29 = vsel %vm2862_vm1, %v2989_v47, %v6085_v58 }
 0x483   : > { %v2667_v9 = vpop.f32.mrf.mxu2  ;;  %v2751_v21 = vpop.f32.mrf.mxu3 }
 0x484   : > { %v2668_v62 = vadd.f32 %v2667_v9, %v2579_v57  ;;  %v6213_v53 = vadd.f32 %v2751_v21, %v2663_v22  ;;  %v2996_v22 = vshrl.u32 %v6610_v2, 16  ;;  %v6234_v9 = vld [vmem:[%s6461_s7] ss:$0 sm:$0xff]  ;;  %v3008_v2 = vshrl.u32 %v6611_v55, 16 }
 0x485   : > { %v3257_v10 = vpop.f32.mrf.mxu1 }
 0x486   : > { %v3001_v44 = vor.u32 %v3000_v3, %v2996_v22 }
 0x488   : > { %3378 = vmatmul.bf16.gmra.mxu2 %v2982_v14  ;;  %3462 = vmatmul.bf16.gmra.mxu3 %v2982_v14  ;;  %v3006_v21 = vsel %vm2862_vm1, %v3001_v44, %v6085_v58 }
 0x48b   : > { %v2754_v46 = vpop.f32.mrf.mxu3  ;;  %v3339_v18 = vpop.f32.mrf.mxu2 }
 0x48c   : > { %v6216_v61 = vadd.f32 %v2754_v46, %v2666_v36  ;;  %v3340_v34 = vadd.f32 %v3339_v18, %v3250_v19 }
 0x48d   : > { %v6218_v35 = vpop.f32.mrf.mxu1 }
 0x490   : > { %3299 = vmatmul.bf16.gmra.mxu1 %v2994_v29 }
 0x493   : > { %v2756_v57 = vpop.f32.mrf.mxu3  ;;  %v3341_v31 = vpop.f32.mrf.mxu2 }
 0x494   : > { %v6223_v13 = vadd.f32 %v2756_v57, %v2668_v62  ;;  %v3342_v4 = vadd.f32 %v3341_v31, %v3252_v52 }
 0x495   : > { %v6225_v59 = vpop.f32.mrf.mxu1 }
 0x498   : > { %3383 = vmatmul.bf16.gmra.mxu2 %v2994_v29  ;;  %3467 = vmatmul.bf16.gmra.mxu3 %v2994_v29  ;;  %v3012_v29 = vrot.slane %v3010_v6, 1  ;;  %v6612_v6 = vld [vmem:[#allocation45_spill] sm:$0xff] }
 0x49b   : > { %v3344_v51 = vpop.f32.mrf.mxu2  ;;  %v3428_v25 = vpop.f32.mrf.mxu3 }
 0x49c   : > { %v3429_v11 = vadd.f32 %v3428_v25, %v3340_v34  ;;  %v3345_v52 = vadd.f32 %v3344_v51, %v3255_v41  ;;  %v3013_v34 = vor.u32 %v3012_v29, %v3008_v2 }
 0x49d   : > { %v6228_v36 = vpop.f32.mrf.mxu1 }
 0x49e   : > { %v3508_v14 = vadd.f32 %v3429_v11, %v6030_v54 }
 0x4a0   : > { %3304 = vmatmul.bf16.gmra.mxu1 %v3006_v21  ;;  %v3544_v19 = vadd.f32 %v6234_v9, %v3508_v14 }
 0x4a2   : > { %v3576_v54 = vmax.f32 %v3544_v19, 0.0  ;;  %v3018_v19 = vsel %vm2862_vm1, %v3013_v34, %v6085_v58 }
 0x4a3   : > { %v3346_v43 = vpop.f32.mrf.mxu2  ;;  %v3430_v62 = vpop.f32.mrf.mxu3 }
 0x4a4   : > { %v3431_v46 = vadd.f32 %v3430_v62, %v3342_v4  ;;  %v3608_v31 = vpack.c.bf16 %v3576_v54, %v3576_v54  ;;  %v3347_v62 = vadd.f32 %v3346_v43, %v3257_v10  ;;  %v3020_v10 = vshrl.u32 %v6612_v6, 16 }
 0x4a5   : > { %v6240_v18 = vpop.f32.mrf.mxu1 }
 0x4a6   : > { %v3509_v47 = vadd.f32 %v3431_v46, %v6037_v48  ;;  %v3724_v14 = vunpack.c.l.b16 %v3608_v31  ;;  %v3022_v46 = vshll.u32 %v6612_v6, 16 }
 0x4a8   : > { %v3545_v57 = vadd.f32 %v6234_v9, %v3509_v47  ;;  %3388 = vmatmul.bf16.gmra.mxu2 %v3006_v21  ;;  %3472 = vmatmul.bf16.gmra.mxu3 %v3006_v21 }
 0x4aa   : > { %v3577_v8 = vmax.f32 %v3545_v57, 0.0 }
 0x4ab   : > { %v3349_v3 = vpop.f32.mrf.mxu2  ;;  %v3433_v22 = vpop.f32.mrf.mxu3 }
 0x4ac   : > { %v3609_v25 = vpack.c.bf16 %v3577_v8, %v3577_v8  ;;  %v3434_v44 = vadd.f32 %v3433_v22, %v3345_v52  ;;  %v3350_v43 = vadd.f32 %v3349_v3, %v6218_v35 }
 0x4ad   : > { %v6245_v11 = vpop.f32.mrf.mxu1 }
 0x4ae   : > { %v3725_v4 = vunpack.c.l.b16 %v3609_v25  ;;  %v3510_v48 = vadd.f32 %v3434_v44, %v6041_v1  ;;  %v3024_v1 = vrot.slane %v3022_v46, 1 }
 0x4b0   : > { %3309 = vmatmul.bf16.gmra.mxu1 %v3018_v19  ;;  %v3756_v21 = vpack.c.b16 %v3725_v4, %v3724_v14  ;;  %v3546_v41 = vadd.f32 %v6234_v9, %v3510_v48  ;;  %v3025_v34 = vor.u32 %v3024_v1, %v3020_v10 }
 0x4b2   : > { %3844 = vmatmul.bf16.vlgmr.msrb.gmra.mxu0 %v3756_v21  ;;  %v3578_v29 = vmax.f32 %v3546_v41, 0.0 }
 0x4b3   : > { %v3351_v51 = vpop.f32.mrf.mxu2  ;;  %v3435_v55 = vpop.f32.mrf.mxu3 }
 0x4b4   : > { %v3436_v54 = vadd.f32 %v3435_v55, %v3347_v62  ;;  %v3610_v52 = vpack.c.bf16 %v3578_v29, %v3578_v29  ;;  %v3352_v35 = vadd.f32 %v3351_v51, %v6225_v59  ;;  %v6613_v55 = vld [vmem:[#allocation49_spill] sm:$0xff] }
 0x4b5   : > { %v6252_v47 = vpop.f32.mrf.mxu1  ;;  %v3034_v6 = vshll.u32 %v6613_v55, 16  ;;  %v3032_v59 = vshrl.u32 %v6613_v55, 16 }
 0x4b6   : > { %v3511_v57 = vadd.f32 %v3436_v54, %v6048_v38  ;;  %v3726_v38 = vunpack.c.l.b16 %v3610_v52 }
 0x4b7   : > { %v3036_v29 = vrot.slane %v3034_v6, 1 }
 0x4b8   : > { %v3547_v2 = vadd.f32 %v6234_v9, %v3511_v57  ;;  %3393 = vmatmul.bf16.gmra.mxu2 %v3018_v19  ;;  %3477 = vmatmul.bf16.gmra.mxu3 %v3018_v19  ;;  %v3030_v19 = vsel %vm2862_vm1, %v3025_v34, %v6085_v58 }
 0x4ba   : > { %v3579_v31 = vmax.f32 %v3547_v2, 0.0 }
 0x4bb   : > { %v3354_v8 = vpop.f32.mrf.mxu2  ;;  %v3438_v22 = vpop.f32.mrf.mxu3 }
 0x4bc   : > { %v3439_v25 = vadd.f32 %v3438_v22, %v3350_v43  ;;  %v3611_v44 = vpack.c.bf16 %v3579_v31, %v3579_v31  ;;  %v3355_v51 = vadd.f32 %v3354_v8, %v6228_v36  ;;  %v3037_v31 = vor.u32 %v3036_v29, %v3032_v59 }
 0x4bd   : > { %v6259_v4 = vpop.f32.mrf.mxu1 }
 0x4be   : > { %v3512_v14 = vadd.f32 %v3439_v25, %v6052_v30  ;;  %v3727_v48 = vunpack.c.l.b16 %v3611_v44 }
 0x4c0   : > { %3314 = vmatmul.bf16.gmra.mxu1 %v3030_v19  ;;  %v3757_v21 = vpack.c.b16 %v3727_v48, %v3726_v38  ;;  %v3548_v3 = vadd.f32 %v6234_v9, %v3512_v14  ;;  %v3042_v14 = vsel %vm2862_vm1, %v3037_v31, %v6085_v58 }
 0x4c2   : > { %3849 = vmatmul.bf16.gmra.mxu0 %v3757_v21  ;;  %v3580_v30 = vmax.f32 %v3548_v3, 0.0 }
 0x4c3   : > { %v3356_v62 = vpop.f32.mrf.mxu2  ;;  %v3440_v41 = vpop.f32.mrf.mxu3 }
 0x4c4   : > { %v3441_v46 = vadd.f32 %v3440_v41, %v3352_v35  ;;  %v3612_v2 = vpack.c.bf16 %v3580_v30, %v3580_v30  ;;  %v3357_v48 = vadd.f32 %v3356_v62, %v6240_v18  ;;  %v6614_v35 = vld [vmem:[#allocation53_spill] sm:$0xff] }
 0x4c5   : > { %v6268_v1 = vpop.f32.mrf.mxu1  ;;  %v3046_v3 = vshll.u32 %v6614_v35, 16  ;;  %v3044_v18 = vshrl.u32 %v6614_v35, 16 }
 0x4c6   : > { %v3513_v54 = vadd.f32 %v3441_v46, %v6059_v56  ;;  %v3728_v25 = vunpack.c.l.b16 %v3612_v2 }
 0x4c7   : > { %v3048_v6 = vrot.slane %v3046_v3, 1 }
 0x4c8   : > { %v3549_v57 = vadd.f32 %v6234_v9, %v3513_v54  ;;  %3398 = vmatmul.bf16.gmra.mxu2 %v3030_v19  ;;  %3482 = vmatmul.bf16.gmra.mxu3 %v3030_v19 }
 0x4c9   : > { %v3049_v59 = vor.u32 %v3048_v6, %v3044_v18 }
 0x4ca   : > { %v3581_v10 = vmax.f32 %v3549_v57, 0.0 }
 0x4cb   : > { %v3359_v43 = vpop.f32.mrf.mxu2  ;;  %v3443_v52 = vpop.f32.mrf.mxu3 }
 0x4cc   : > { %v3444_v22 = vadd.f32 %v3443_v52, %v3355_v51  ;;  %v3613_v34 = vpack.c.bf16 %v3581_v10, %v3581_v10  ;;  %v3360_v62 = vadd.f32 %v3359_v43, %v6245_v11 }
 0x4cd   : > { %v6277_v8 = vpop.f32.mrf.mxu1 }
 0x4ce   : > { %v3514_v56 = vadd.f32 %v3444_v22, %v6063_v50  ;;  %v3729_v44 = vunpack.c.l.b16 %v3613_v34  ;;  %v3054_v22 = vsel %vm2862_vm1, %v3049_v59, %v6085_v58 }
 0x4d0   : > { %3319 = vmatmul.bf16.gmra.mxu1 %v3042_v14  ;;  %v3758_v38 = vpack.c.b16 %v3729_v44, %v3728_v25  ;;  %v3550_v36 = vadd.f32 %v6234_v9, %v3514_v56 }
 0x4d2   : > { %3854 = vmatmul.bf16.gmra.mxu0 %v3758_v38  ;;  %v3582_v50 = vmax.f32 %v3550_v36, 0.0 }
 0x4d3   : > { %v3361_v19 = vpop.f32.mrf.mxu2  ;;  %v3445_v21 = vpop.f32.mrf.mxu3 }
 0x4d4   : > { %v3446_v41 = vadd.f32 %v3445_v21, %v3357_v48  ;;  %v3614_v30 = vpack.c.bf16 %v3582_v50, %v3582_v50  ;;  %v3362_v56 = vadd.f32 %v3361_v19, %v6252_v47  ;;  %v6615_v19 = vld [vmem:[#allocation54_spill] sm:$0xff] }
 0x4d5   : > { %v3282_v51 = vpop.f32.mrf.mxu1 }
 0x4d6   : > { %v3515_v55 = vadd.f32 %v3446_v41, %v6070_v40  ;;  %v3730_v40 = vunpack.c.l.b16 %v3614_v30  ;;  %v3058_v41 = vshll.u32 %v6615_v19, 16 }
 0x4d8   : > { %v3551_v46 = vadd.f32 %v6234_v9, %v3515_v55  ;;  %3403 = vmatmul.bf16.gmra.mxu2 %v3042_v14  ;;  %3487 = vmatmul.bf16.gmra.mxu3 %v3042_v14 }
 0x4da   : > { %v3583_v54 = vmax.f32 %v3551_v46, 0.0 }
 0x4db   : > { %v3364_v29 = vpop.f32.mrf.mxu2  ;;  %v3448_v57 = vpop.f32.mrf.mxu3 }
 0x4dc   : > { %v3449_v2 = vadd.f32 %v3448_v57, %v3360_v62  ;;  %v3615_v10 = vpack.c.bf16 %v3583_v54, %v3583_v54  ;;  %v3365_v36 = vadd.f32 %v3364_v29, %v6259_v4  ;;  %v3060_v62 = vrot.slane %v3058_v41, 1 }
 0x4dd   : > { %v3285_v38 = vpop.f32.mrf.mxu1  ;;  %v3056_v54 = vshrl.u32 %v6615_v19, 16 }
 0x4de   : > { %v3516_v52 = vadd.f32 %v3449_v2, %v6074_v24  ;;  %v3731_v31 = vunpack.c.l.b16 %v3615_v10 }
 0x4df   : > { %v3061_v2 = vor.u32 %v3060_v62, %v3056_v54 }
 0x4e0   : > { %3324 = vmatmul.bf16.gmra.mxu1 %v3054_v22  ;;  %v3759_v34 = vpack.c.b16 %v3731_v31, %v3730_v40  ;;  %v3552_v11 = vadd.f32 %v6234_v9, %v3516_v52 }
 0x4e2   : > { %3859 = vmatmul.bf16.gmra.mxu0 %v3759_v34  ;;  %v3584_v14 = vmax.f32 %v3552_v11, 0.0 }
 0x4e3   : > { %v3366_v43 = vpop.f32.mrf.mxu2  ;;  %v3450_v25 = vpop.f32.mrf.mxu3 }
 0x4e4   : > { %v3451_v44 = vadd.f32 %v3450_v25, %v3362_v56  ;;  %v3616_v21 = vpack.c.bf16 %v3584_v14, %v3584_v14  ;;  %v3367_v57 = vadd.f32 %v3366_v43, %v6268_v1 }
 0x4e6   : > { %v3517_v48 = vadd.f32 %v3451_v44, %v6081_v39  ;;  %v3732_v46 = vunpack.c.l.b16 %v3616_v21  ;;  %v3287_v39 = vpop.f32.mrf.mxu1 }
 0x4e8   : > { %v3553_v24 = vadd.f32 %v6234_v9, %v3517_v48  ;;  %3408 = vmatmul.bf16.gmra.mxu2 %v3054_v22  ;;  %3492 = vmatmul.bf16.gmra.mxu3 %v3054_v22 }
 0x4ea   : > { %v3585_v35 = vmax.f32 %v3553_v24, 0.0 }
 0x4eb   : > { %v3369_v3 = vpop.f32.mrf.mxu2  ;;  %v3453_v47 = vpop.f32.mrf.mxu3 }
 0x4ec   : > { %v3617_v50 = vpack.c.bf16 %v3585_v35, %v3585_v35  ;;  %v3454_v55 = vadd.f32 %v3453_v47, %v3365_v36  ;;  %v3370_v22 = vadd.f32 %v3369_v3, %v6277_v8 }
 0x4ee   : > { %v3518_v6 = vadd.f32 %v3454_v55, %v6097_v23  ;;  %v3733_v18 = vunpack.c.l.b16 %v3617_v50  ;;  %v3066_v23 = vsel %vm2862_vm1, %v3061_v2, %v6085_v58  ;;  %v3290_v34 = vpop.f32.mrf.mxu1 }
 0x4f0   : > { %v3760_v30 = vpack.c.b16 %v3733_v18, %v3732_v46  ;;  %v3554_v4 = vadd.f32 %v6234_v9, %v3518_v6 }
 0x4f2   : > { %3864 = vmatmul.bf16.gmra.mxu0 %v3760_v30  ;;  %v3586_v52 = vmax.f32 %v3554_v4, 0.0 }
 0x4f3   : > { %v3371_v29 = vpop.f32.mrf.mxu2  ;;  %v3455_v59 = vpop.f32.mrf.mxu3 }
 0x4f4   : > { %v3456_v10 = vadd.f32 %v3455_v59, %v3367_v57  ;;  %v3618_v1 = vpack.c.bf16 %v3586_v52, %v3586_v52  ;;  %v3372_v36 = vadd.f32 %v3371_v29, %v3282_v51 }
 0x4f6   : > { %v3519_v40 = vadd.f32 %v3456_v10, %v6109_v16  ;;  %v3734_v48 = vunpack.c.l.b16 %v3618_v1  ;;  %v3292_v47 = vpop.f32.mrf.mxu1 }
 0x4f8   : > { %v3555_v31 = vadd.f32 %v6234_v9, %v3519_v40  ;;  %3413 = vmatmul.bf16.gmra.mxu2 %v3066_v23  ;;  %3497 = vmatmul.bf16.gmra.mxu3 %v3066_v23 }
 0x4fa   : > { %v3587_v56 = vmax.f32 %v3555_v31, 0.0 }
 0x4fb   : > { %v3374_v11 = vpop.f32.mrf.mxu2  ;;  %v3458_v43 = vpop.f32.mrf.mxu3 }
 0x4fc   : > { %v3619_v25 = vpack.c.bf16 %v3587_v56, %v3587_v56  ;;  %v3459_v44 = vadd.f32 %v3458_v43, %v3370_v22  ;;  %v3375_v50 = vadd.f32 %v3374_v11, %v3285_v38 }
 0x4fe   : > { %v3520_v14 = vadd.f32 %v3459_v44, %v6113_v42  ;;  %v3735_v16 = vunpack.c.l.b16 %v3619_v25  ;;  %v3295_v62 = vpop.f32.mrf.mxu1 }
 0x500   : > { %v3761_v24 = vpack.c.b16 %v3735_v16, %v3734_v48  ;;  %v3556_v58 = vadd.f32 %v6234_v9, %v3520_v14 }
 0x502   : > { %3869 = vmatmul.bf16.gmra.mxu0 %v3761_v24  ;;  %v3588_v3 = vmax.f32 %v3556_v58, 0.0 }
 0x503   : > { %v3376_v21 = vpop.f32.mrf.mxu2  ;;  %v3460_v35 = vpop.f32.mrf.mxu3 }
 0x504   : > { %v3461_v8 = vadd.f32 %v3460_v35, %v3372_v36  ;;  %v3620_v42 = vpack.c.bf16 %v3588_v3, %v3588_v3  ;;  %v3377_v29 = vadd.f32 %v3376_v21, %v3287_v39 }
 0x506   : > { %v3521_v19 = vadd.f32 %v3461_v8, %v6122_v15  ;;  %v3736_v54 = vunpack.c.l.b16 %v3620_v42  ;;  %v3297_v52 = vpop.f32.mrf.mxu1 }
 0x508   : > { %v3557_v41 = vadd.f32 %v6234_v9, %v3521_v19  ;;  %3502 = vmatmul.bf16.gmra.mxu3 %v6101_v45 }
 0x50a   : > { %v3589_v55 = vmax.f32 %v3557_v41, 0.0 }
 0x50b   : > { %v3379_v6 = vpop.f32.mrf.mxu2  ;;  %v3463_v46 = vpop.f32.mrf.mxu3 }
 0x50c   : > { %v3621_v51 = vpack.c.bf16 %v3589_v55, %v3589_v55  ;;  %v3464_v18 = vadd.f32 %v3463_v46, %v3375_v50  ;;  %v3380_v23 = vadd.f32 %v3379_v6, %v3290_v34 }
 0x50e   : > { %v3522_v30 = vadd.f32 %v3464_v18, %v6126_v32  ;;  %v3737_v57 = vunpack.c.l.b16 %v3621_v51  ;;  %v3300_v14 = vpop.f32.mrf.mxu1  ;;  %v546_v18 = vld [vmem:[%s5607_s11 + $0x4] sm:$0xff]  }
 0x510   : > { %v3762_v4 = vpack.c.b16 %v3737_v57, %v3736_v54  ;;  %v3558_v15 = vadd.f32 %v6234_v9, %v3522_v30 }
 0x512   : > { %3874 = vmatmul.bf16.gmra.mxu0 %v3762_v4  ;;  %v3590_v38 = vmax.f32 %v3558_v15, 0.0  ;;  %v3656_v4 = vunpack.c.l.bf16 %v546_v18 }
 0x513   : > { %v3381_v59 = vpop.f32.mrf.mxu2  ;;  %v3465_v2 = vpop.f32.mrf.mxu3 }
 0x514   : > { %v3466_v45 = vadd.f32 %v3465_v2, %v3377_v29  ;;  %v3622_v31 = vpack.c.bf16 %v3590_v38, %v3590_v38  ;;  %v3382_v48 = vadd.f32 %v3381_v59, %v3292_v47 }
 0x516   : > { %v3523_v10 = vadd.f32 %v3466_v45, %v6135_v20  ;;  %v3738_v43 = vunpack.c.l.b16 %v3622_v31  ;;  %v3302_v41 = vpop.f32.mrf.mxu1  ;;  %v3657_v45 = vunpack.c.h.bf16 %v546_v18 }
 0x518   : > { %v3559_v40 = vadd.f32 %v6234_v9, %v3523_v10 }
 0x51a   : > { %v3591_v22 = vmax.f32 %v3559_v40, 0.0 }
 0x51b   : > { %v3384_v32 = vpop.f32.mrf.mxu2  ;;  %v3468_v1 = vpop.f32.mrf.mxu3 }
 0x51c   : > { %v3623_v56 = vpack.c.bf16 %v3591_v22, %v3591_v22  ;;  %v3469_v11 = vadd.f32 %v3468_v1, %v3380_v23  ;;  %v3385_v35 = vadd.f32 %v3384_v32, %v3295_v62 }
 0x51e   : > { %v3524_v39 = vadd.f32 %v3469_v11, %v6138_v7  ;;  %v3739_v25 = vunpack.c.l.b16 %v3623_v56  ;;  %v3305_v15 = vpop.f32.mrf.mxu1 }
 0x520   : > { %v3763_v44 = vpack.c.b16 %v3739_v25, %v3738_v43  ;;  %v3560_v16 = vadd.f32 %v6234_v9, %v3524_v39 }
 0x522   : > { %3879 = vmatmul.bf16.gmra.mxu0 %v3763_v44  ;;  %v3592_v34 = vmax.f32 %v3560_v16, 0.0 }
 0x523   : > { %v3386_v20 = vpop.f32.mrf.mxu2  ;;  %v3470_v24 = vpop.f32.mrf.mxu3 }
 0x524   : > { %v3471_v36 = vadd.f32 %v3470_v24, %v3382_v48  ;;  %v3624_v8 = vpack.c.bf16 %v3592_v34, %v3592_v34  ;;  %v3387_v62 = vadd.f32 %v3386_v20, %v3297_v52 }
 0x526   : > { %v3525_v58 = vadd.f32 %v3471_v36, %v6147_v27  ;;  %v3740_v55 = vunpack.c.l.b16 %v3624_v8  ;;  %v6319_v27 = vld [vmem:[%s6462_s8] ss:$0 sm:$0xff]  ;;  %v3307_v24 = vpop.f32.mrf.mxu1  ;;  %v550_v36 = vld [vmem:[%s5607_s11 + $0x14] sm:$0xff]  }
 0x527   : > { %v3658_v8 = vunpack.c.l.bf16 %v550_v36 }
 0x528   : > { %v3561_v21 = vadd.f32 %v6234_v9, %v3525_v58 }
 0x52a   : > { %v3593_v7 = vmax.f32 %v3561_v21, 0.0 }
 0x52b   : > { %v3389_v3 = vpop.f32.mrf.mxu2  ;;  %v3473_v19 = vpop.f32.mrf.mxu3 }
 0x52c   : > { %v3625_v50 = vpack.c.bf16 %v3593_v7, %v3593_v7  ;;  %v3474_v47 = vadd.f32 %v3473_v19, %v3385_v35  ;;  %v3390_v23 = vadd.f32 %v3389_v3, %v3300_v14 }
 0x52e   : > { %v3526_v42 = vadd.f32 %v3474_v47, %v6150_v60  ;;  %v3741_v6 = vunpack.c.l.b16 %v3625_v50  ;;  %v3659_v50 = vunpack.c.h.bf16 %v550_v36 }
 0x52f   : > { %v3845_v46 = vpop.f32.mrf.mxu0 }
 0x530   : > { %v3764_v51 = vpack.c.b16 %v3741_v6, %v3740_v55  ;;  %v3562_v30 = vadd.f32 %v6234_v9, %v3526_v42  ;;  %v3846_v60 = vadd.f32 %v6319_v27, %v3845_v46 }
 0x532   : > { %3884 = vmatmul.bf16.gmra.mxu0 %v3764_v51  ;;  %v3594_v59 = vmax.f32 %v3562_v30, 0.0  ;;  %v3925_v10 = vadd.f32 %v3846_v60, %v3656_v4 }
 0x533   : > { %v3391_v54 = vpop.f32.mrf.mxu2  ;;  %v3475_v57 = vpop.f32.mrf.mxu3 }
 0x534   : > { %v3476_v29 = vadd.f32 %v3475_v57, %v3387_v62  ;;  %v3626_v31 = vpack.c.bf16 %v3594_v59, %v3594_v59  ;;  %v3957_v11 = vmax.f32 %v3925_v10, 0.0  ;;  %v3392_v34 = vadd.f32 %v3391_v54, %v3302_v41  ;;  %v3310_v41 = vpop.f32.mrf.mxu1 }
 0x536   : > { %v3527_v2 = vadd.f32 %v3476_v29, %v6159_v28  ;;  %v3742_v48 = vunpack.c.l.b16 %v3626_v31 }
 0x537   : > { %v3847_v38 = vpop.f32.mrf.mxu0 }
 0x538   : > { %v3563_v40 = vadd.f32 %v6234_v9, %v3527_v2  ;;  %v3848_v52 = vadd.f32 %v6319_v27, %v3847_v38 }
 0x53a   : > { %v3595_v22 = vmax.f32 %v3563_v40, 0.0  ;;  %v3926_v32 = vadd.f32 %v3848_v52, %v3657_v45  ;;  %v554_v40 = vld [vmem:[%s5607_s11 + $0x24] sm:$0xff]  }
 0x53b   : > { %v3394_v1 = vpop.f32.mrf.mxu2  ;;  %v3478_v56 = vpop.f32.mrf.mxu3 }
 0x53c   : > { %v3627_v39 = vpack.c.bf16 %v3595_v22, %v3595_v22  ;;  %v3958_v43 = vmax.f32 %v3926_v32, 0.0  ;;  %v3479_v25 = vadd.f32 %v3478_v56, %v3390_v23  ;;  %v3395_v46 = vadd.f32 %v3394_v1, %v3305_v15  ;;  %v3312_v56 = vpop.f32.mrf.mxu1 }
 0x53d   : > { %v3660_v22 = vunpack.c.l.bf16 %v554_v40 }
 0x53e   : > { %v4894_v28 = vpack.c.bf16 %v3958_v43, %v3957_v11  ;;  %v3528_v44 = vadd.f32 %v3479_v25, %v6162_v5  ;;  %v3743_v16 = vunpack.c.l.b16 %v3627_v39  ;;  %v3661_v39 = vunpack.c.h.bf16 %v554_v40 }
 0x53f   : > { %v3850_v20 = vpop.f32.mrf.mxu0 }
 0x540   : > { %4895 = vst [vmem:[%s6329_s3] sm:$0xff] %v4894_v28   ;;  %v3765_v14 = vpack.c.b16 %v3743_v16, %v3742_v48  ;;  %v3564_v58 = vadd.f32 %v6234_v9, %v3528_v44  ;;  %v3851_v7 = vadd.f32 %v6319_v27, %v3850_v20 }
 0x542   : > { %3889 = vmatmul.bf16.gmra.mxu0 %v3765_v14  ;;  %v3596_v3 = vmax.f32 %v3564_v58, 0.0  ;;  %v3927_v42 = vadd.f32 %v3851_v7, %v3658_v8 }
 0x543   : > { %v3396_v21 = vpop.f32.mrf.mxu2  ;;  %v3480_v35 = vpop.f32.mrf.mxu3 }
 0x544   : > { %v3481_v5 = vadd.f32 %v3480_v35, %v3392_v34  ;;  %v3628_v51 = vpack.c.bf16 %v3596_v3, %v3596_v3  ;;  %v3959_v57 = vmax.f32 %v3927_v42, 0.0  ;;  %v3397_v15 = vadd.f32 %v3396_v21, %v3307_v24  ;;  %v3315_v3 = vpop.f32.mrf.mxu1 }
 0x546   : > { %v3529_v19 = vadd.f32 %v3481_v5, %v6174_v0  ;;  %v3744_v2 = vunpack.c.l.b16 %v3628_v51 }
 0x547   : > { %v3852_v47 = vpop.f32.mrf.mxu0 }
 0x548   : > { %v3565_v55 = vadd.f32 %v6234_v9, %v3529_v19  ;;  %v3853_v6 = vadd.f32 %v6319_v27, %v3852_v47  ;;  %v558_v47 = vld [vmem:[%s5607_s11 + $0x34] sm:$0xff]  }
 0x54a   : > { %v3597_v18 = vmax.f32 %v3565_v55, 0.0  ;;  %v3928_v62 = vadd.f32 %v3853_v6, %v3659_v50 }
 0x54b   : > { %v3399_v30 = vpop.f32.mrf.mxu2  ;;  %v3483_v54 = vpop.f32.mrf.mxu3 }
 0x54c   : > { %v3629_v4 = vpack.c.bf16 %v3597_v18, %v3597_v18  ;;  %v3960_v60 = vmax.f32 %v3928_v62, 0.0  ;;  %v3484_v0 = vadd.f32 %v3483_v54, %v3395_v46  ;;  %v3400_v48 = vadd.f32 %v3399_v30, %v3310_v41 }
 0x54d   : > { %v3662_v41 = vunpack.c.l.bf16 %v558_v47 }
 0x54e   : > { %v4899_v29 = vpack.c.bf16 %v3960_v60, %v3959_v57  ;;  %v3530_v59 = vadd.f32 %v3484_v0, %v6177_v17  ;;  %v3745_v45 = vunpack.c.l.b16 %v3629_v4  ;;  %v3317_v0 = vpop.f32.mrf.mxu1 }
 0x54f   : > { %v3855_v38 = vpop.f32.mrf.mxu0 }
 0x550   : > { %4972 = vst [vmem:[%s6329_s3 + $0x8] sm:$0xff] %v4899_v29   ;;  %v3766_v10 = vpack.c.b16 %v3745_v45, %v3744_v2  ;;  %v3566_v52 = vadd.f32 %v6234_v9, %v3530_v59  ;;  %v3856_v32 = vadd.f32 %v6319_v27, %v3855_v38 }
 0x552   : > { %3894 = vmatmul.bf16.gmra.mxu0 %v3766_v10  ;;  %v3598_v11 = vmax.f32 %v3566_v52, 0.0  ;;  %v3929_v25 = vadd.f32 %v3856_v32, %v3660_v22 }
 0x553   : > { %v3401_v23 = vpop.f32.mrf.mxu2  ;;  %v3485_v31 = vpop.f32.mrf.mxu3 }
 0x554   : > { %v3486_v1 = vadd.f32 %v3485_v31, %v3397_v15  ;;  %v3630_v16 = vpack.c.bf16 %v3598_v11, %v3598_v11  ;;  %v3961_v36 = vmax.f32 %v3929_v25, 0.0  ;;  %v3402_v42 = vadd.f32 %v3401_v23, %v3312_v56  ;;  %v562_v11 = vld [vmem:[%s5607_s11 + $0x44] sm:$0xff]  }
 0x556   : > { %v3531_v17 = vadd.f32 %v3486_v1, %v6186_v37  ;;  %v3746_v7 = vunpack.c.l.b16 %v3630_v16 }
 0x557   : > { %v3857_v43 = vpop.f32.mrf.mxu0 }
 0x558   : > { %v3567_v28 = vadd.f32 %v6234_v9, %v3531_v17  ;;  %v3858_v44 = vadd.f32 %v6319_v27, %v3857_v43  ;;  %v3320_v43 = vpop.f32.mrf.mxu1 }
 0x55a   : > { %v3599_v20 = vmax.f32 %v3567_v28, 0.0  ;;  %v3930_v24 = vadd.f32 %v3858_v44, %v3661_v39  ;;  %v3664_v28 = vunpack.c.l.bf16 %v562_v11 }
 0x55b   : > { %v3488_v14 = vpop.f32.mrf.mxu3  ;;  %v3404_v35 = vpop.f32.mrf.mxu2 }
 0x55c   : > { %v3631_v34 = vpack.c.bf16 %v3599_v20, %v3599_v20  ;;  %v3962_v58 = vmax.f32 %v3930_v24, 0.0  ;;  %v3489_v21 = vadd.f32 %v3488_v14, %v3400_v48  ;;  %v3405_v29 = vadd.f32 %v3404_v35, %v3315_v3 }
 0x55d   : > { %v3665_v20 = vunpack.c.h.bf16 %v562_v11 }
 0x55e   : > { %v4904_v37 = vpack.c.bf16 %v3962_v58, %v3961_v36  ;;  %v3532_v8 = vadd.f32 %v3489_v21, %v6190_v49  ;;  %v3747_v5 = vunpack.c.l.b16 %v3631_v34  ;;  %v3663_v49 = vunpack.c.h.bf16 %v558_v47 }
 0x55f   : > { %v3860_v19 = vpop.f32.mrf.mxu0 }
 0x560   : > { %4973 = vst [vmem:[%s6329_s3 + $0x10] sm:$0xff] %v4904_v37   ;;  %v3767_v50 = vpack.c.b16 %v3747_v5, %v3746_v7  ;;  %v3568_v55 = vadd.f32 %v6234_v9, %v3532_v8  ;;  %v3861_v46 = vadd.f32 %v6319_v27, %v3860_v19 }
 0x562   : > { %3899 = vmatmul.bf16.gmra.mxu0 %v3767_v50  ;;  %v3600_v18 = vmax.f32 %v3568_v55, 0.0  ;;  %v3931_v57 = vadd.f32 %v3861_v46, %v3662_v41 }
 0x563   : > { %v3490_v6 = vpop.f32.mrf.mxu3  ;;  %v3406_v30 = vpop.f32.mrf.mxu2 }
 0x564   : > { %v3491_v51 = vadd.f32 %v3490_v6, %v3402_v42  ;;  %v3632_v59 = vpack.c.bf16 %v3600_v18, %v3600_v18  ;;  %v3963_v10 = vmax.f32 %v3931_v57, 0.0  ;;  %v3407_v17 = vadd.f32 %v3406_v30, %v3317_v0 }
 0x566   : > { %v3533_v62 = vadd.f32 %v3491_v51, %v6196_v33  ;;  %v3748_v31 = vunpack.c.l.b16 %v3632_v59  ;;  %v566_v51 = vld [vmem:[%s5607_s11 + $0x54] sm:$0xff]  }
 0x567   : > { %v3862_v54 = vpop.f32.mrf.mxu0  ;;  %v3666_v30 = vunpack.c.l.bf16 %v566_v51 }
 0x568   : > { %v3569_v4 = vadd.f32 %v6234_v9, %v3533_v62  ;;  %v3863_v60 = vadd.f32 %v6319_v27, %v3862_v54 }
 0x56a   : > { %v3601_v2 = vmax.f32 %v3569_v4, 0.0  ;;  %v3932_v45 = vadd.f32 %v3863_v60, %v3663_v49 }
 0x56b   : > { %v3493_v38 = vpop.f32.mrf.mxu3  ;;  %v3409_v56 = vpop.f32.mrf.mxu2 }
 0x56c   : > { %v3633_v40 = vpack.c.bf16 %v3601_v2, %v3601_v2  ;;  %v3964_v15 = vmax.f32 %v3932_v45, 0.0  ;;  %v3494_v33 = vadd.f32 %v3493_v38, %v3405_v29  ;;  %v3410_v58 = vadd.f32 %v3409_v56, %v3320_v43 }
 0x56e   : > { %v4909_v52 = vpack.c.bf16 %v3964_v15, %v3963_v10  ;;  %v3534_v23 = vadd.f32 %v3494_v33, %v6200_v12  ;;  %v3749_v22 = vunpack.c.l.b16 %v3633_v40 }
 0x56f   : > { %v3865_v32 = vpop.f32.mrf.mxu0 }
 0x570   : > { %4974 = vst [vmem:[%s6329_s3 + $0x18] sm:$0xff] %v4909_v52   ;;  %v3768_v1 = vpack.c.b16 %v3749_v22, %v3748_v31  ;;  %v3570_v39 = vadd.f32 %v6234_v9, %v3534_v23  ;;  %v3866_v44 = vadd.f32 %v6319_v27, %v3865_v32 }
 0x572   : > { %3904 = vmatmul.bf16.gmra.mxu0 %v3768_v1  ;;  %v3602_v16 = vmax.f32 %v3570_v39, 0.0  ;;  %v3933_v14 = vadd.f32 %v3866_v44, %v3664_v28  ;;  %v570_v28 = vld [vmem:[%s5607_s11 + $0x64] sm:$0xff]  }
 0x573   : > { %v3495_v25 = vpop.f32.mrf.mxu3  ;;  %v3411_v8 = vpop.f32.mrf.mxu2 }
 0x574   : > { %v3496_v48 = vadd.f32 %v3495_v25, %v3407_v17  ;;  %v3634_v21 = vpack.c.bf16 %v3602_v16, %v3602_v16  ;;  %v3965_v5 = vmax.f32 %v3933_v14, 0.0 }
 0x576   : > { %v3535_v12 = vadd.f32 %v3496_v48, %v6205_v26  ;;  %v3322_v26 = vpop.f32.mrf.mxu1  ;;  %v3750_v55 = vunpack.c.l.b16 %v3634_v21 }
 0x577   : > { %v3867_v24 = vpop.f32.mrf.mxu0  ;;  %v3412_v18 = vadd.f32 %v3411_v8, %v3322_v26 }
 0x578   : > { %v3571_v36 = vadd.f32 %v6234_v9, %v3535_v12  ;;  %v3868_v34 = vadd.f32 %v6319_v27, %v3867_v24  ;;  %v3668_v12 = vunpack.c.l.bf16 %v570_v28 }
 0x57a   : > { %v3603_v35 = vmax.f32 %v3571_v36, 0.0  ;;  %v3934_v37 = vadd.f32 %v3868_v34, %v3665_v20  ;;  %v3669_v36 = vunpack.c.h.bf16 %v570_v28 }
 0x57b   : > { %v3498_v7 = vpop.f32.mrf.mxu3  ;;  %v3414_v4 = vpop.f32.mrf.mxu2 }
 0x57c   : > { %v3635_v3 = vpack.c.bf16 %v3603_v35, %v3603_v35  ;;  %v3966_v19 = vmax.f32 %v3934_v37, 0.0  ;;  %v3499_v50 = vadd.f32 %v3498_v7, %v3410_v58 }
 0x57e   : > { %v4914_v47 = vpack.c.bf16 %v3966_v19, %v3965_v5  ;;  %v3536_v42 = vadd.f32 %v3499_v50, %v6208_v63  ;;  %v3751_v6 = vunpack.c.l.b16 %v3635_v3  ;;  %v3667_v63 = vunpack.c.h.bf16 %v566_v51  ;;  %v3325_v29 = vpop.f32.mrf.mxu1 }
 0x57f   : > { %v3870_v41 = vpop.f32.mrf.mxu0  ;;  %v3415_v10 = vadd.f32 %v3414_v4, %v3325_v29  ;;  %v578_v4 = vld [vmem:[%s5607_s11 + $0x84] sm:$0xff]  }
 0x580   : > { %4975 = vst [vmem:[%s6329_s3 + $0x20] sm:$0xff] %v4914_v47   ;;  %v3769_v46 = vpack.c.b16 %v3751_v6, %v3750_v55  ;;  %v3572_v62 = vadd.f32 %v6234_v9, %v3536_v42  ;;  %v3871_v54 = vadd.f32 %v6319_v27, %v3870_v41  ;;  %v574_v55 = vld [vmem:[%s5607_s11 + $0x74] sm:$0xff]  }
 0x581   : > { %v3670_v6 = vunpack.c.l.bf16 %v574_v55  ;;  %v3671_v41 = vunpack.c.h.bf16 %v574_v55 }
 0x582   : > { %3909 = vmatmul.bf16.gmra.mxu0 %v3769_v46  ;;  %v3604_v60 = vmax.f32 %v3572_v62, 0.0  ;;  %v3935_v2 = vadd.f32 %v3871_v54, %v3666_v30 }
 0x583   : > { %v3500_v49 = vpop.f32.mrf.mxu3  ;;  %v3416_v17 = vpop.f32.mrf.mxu2 }
 0x584   : > { %v3501_v57 = vadd.f32 %v3500_v49, %v3412_v18  ;;  %v3636_v40 = vpack.c.bf16 %v3604_v60, %v3604_v60  ;;  %v3967_v23 = vmax.f32 %v3935_v2, 0.0  ;;  %v3672_v60 = vunpack.c.l.bf16 %v578_v4 }
 0x586   : > { %v3537_v0 = vadd.f32 %v3501_v57, %v6213_v53  ;;  %v3752_v56 = vunpack.c.l.b16 %v3636_v40  ;;  %v3327_v25 = vpop.f32.mrf.mxu1 }
 0x587   : > { %v3872_v59 = vpop.f32.mrf.mxu0  ;;  %v3417_v44 = vadd.f32 %v3416_v17, %v3327_v25 }
 0x588   : > { %v3573_v45 = vadd.f32 %v6234_v9, %v3537_v0  ;;  %v3873_v38 = vadd.f32 %v6319_v27, %v3872_v59 }
 0x58a   : > { %v3605_v15 = vmax.f32 %v3573_v45, 0.0  ;;  %v3936_v33 = vadd.f32 %v3873_v38, %v3667_v63  ;;  %v3673_v63 = vunpack.c.h.bf16 %v578_v4 }
 0x58b   : > { %v3503_v52 = vpop.f32.mrf.mxu3 }
 0x58c   : > { %v3637_v31 = vpack.c.bf16 %v3605_v15, %v3605_v15  ;;  %v3968_v22 = vmax.f32 %v3936_v33, 0.0  ;;  %v3504_v32 = vadd.f32 %v3503_v52, %v3415_v10  ;;  %v582_v33 = vld [vmem:[%s5607_s11 + $0x94] sm:$0xff]  }
 0x58d   : > { %v3674_v52 = vunpack.c.l.bf16 %v582_v33 }
 0x58e   : > { %v4919_v53 = vpack.c.bf16 %v3968_v22, %v3967_v23  ;;  %v3538_v1 = vadd.f32 %v3504_v32, %v6216_v61  ;;  %v3753_v11 = vunpack.c.l.b16 %v3637_v31  ;;  %v3675_v31 = vunpack.c.h.bf16 %v582_v33 }
 0x58f   : > { %v3875_v39 = vpop.f32.mrf.mxu0 }
 0x590   : > { %4976 = vst [vmem:[%s6329_s3 + $0x28] sm:$0xff] %v4919_v53   ;;  %v3770_v43 = vpack.c.b16 %v3753_v11, %v3752_v56  ;;  %v3574_v48 = vadd.f32 %v6234_v9, %v3538_v1  ;;  %v3876_v20 = vadd.f32 %v6319_v27, %v3875_v39 }
 0x592   : > { %3914 = vmatmul.bf16.gmra.mxu0 %v3770_v43  ;;  %v3606_v14 = vmax.f32 %v3574_v48, 0.0  ;;  %v3937_v58 = vadd.f32 %v3876_v20, %v3668_v12  ;;  %v586_v43 = vld [vmem:[%s5607_s11 + $0xa4] sm:$0xff]  }
 0x593   : > { %v3505_v16 = vpop.f32.mrf.mxu3  ;;  %v3676_v25 = vunpack.c.l.bf16 %v586_v43 }
 0x594   : > { %v3506_v24 = vadd.f32 %v3505_v16, %v3417_v44  ;;  %v3638_v37 = vpack.c.bf16 %v3606_v14, %v3606_v14  ;;  %v3969_v5 = vmax.f32 %v3937_v58, 0.0  ;;  %v3677_v44 = vunpack.c.h.bf16 %v586_v43 }
 0x596   : > { %v3539_v61 = vadd.f32 %v3506_v24, %v6223_v13  ;;  %v3754_v26 = vunpack.c.l.b16 %v3638_v37 }
 0x597   : > { %v3877_v34 = vpop.f32.mrf.mxu0 }
 0x598   : > { %v3575_v21 = vadd.f32 %v6234_v9, %v3539_v61  ;;  %v3878_v35 = vadd.f32 %v6319_v27, %v3877_v34  ;;  %v590_v34 = vld [vmem:[%s5607_s11 + $0xb4] sm:$0xff]  }
 0x599   : > { %v3678_v58 = vunpack.c.l.bf16 %v590_v34 }
 0x59a   : > { %v3607_v8 = vmax.f32 %v3575_v21, 0.0  ;;  %v3938_v7 = vadd.f32 %v3878_v35, %v3669_v36  ;;  %v3679_v35 = vunpack.c.h.bf16 %v590_v34 }
 0x59c   : > { %v3639_v3 = vpack.c.bf16 %v3607_v8, %v3607_v8  ;;  %v3970_v19 = vmax.f32 %v3938_v7, 0.0 }
 0x59e   : > { %v4924_v50 = vpack.c.bf16 %v3970_v19, %v3969_v5  ;;  %v3755_v47 = vunpack.c.l.b16 %v3639_v3 }
 0x59f   : > { %v3880_v42 = vpop.f32.mrf.mxu0 }
 0x5a0   : > { %4977 = vst [vmem:[%s6329_s3 + $0x30] sm:$0xff] %v4924_v50   ;;  %v3771_v13 = vpack.c.b16 %v3755_v47, %v3754_v26  ;;  %v3881_v9 = vadd.f32 %v6319_v27, %v3880_v42  ;;  %v594_v47 = vld [vmem:[%s5607_s11 + $0xc4] sm:$0xff]  }
 0x5a1   : > { %v3680_v42 = vunpack.c.l.bf16 %v594_v47  ;;  %v3681_v55 = vunpack.c.h.bf16 %v594_v47 }
 0x5a2   : > { %3919 = vmatmul.bf16.gmra.mxu0 %v3771_v13  ;;  %v3939_v51 = vadd.f32 %v3881_v9, %v3670_v6 }
 0x5a4   : > { %v3971_v49 = vmax.f32 %v3939_v51, 0.0 }
 0x5a7   : > { %v3882_v46 = vpop.f32.mrf.mxu0 }
 0x5a8   : > { %v3883_v18 = vadd.f32 %v6319_v27, %v3882_v46 }
 0x5aa   : > { %v3940_v62 = vadd.f32 %v3883_v18, %v3671_v41 }
 0x5ac   : > { %v3972_v30 = vmax.f32 %v3940_v62, 0.0 }
 0x5ae   : > { %v4929_v54 = vpack.c.bf16 %v3972_v30, %v3971_v49  ;;  %v598_v30 = vld [vmem:[%s5607_s11 + $0xd4] sm:$0xff]  }
 0x5af   : > { %v3885_v57 = vpop.f32.mrf.mxu0  ;;  %v3683_v4 = vunpack.c.h.bf16 %v598_v30 }
 0x5b0   : > { %4978 = vst [vmem:[%s6329_s3 + $0x38] sm:$0xff] %v4929_v54   ;;  %v3886_v0 = vadd.f32 %v6319_v27, %v3885_v57  ;;  %v3682_v54 = vunpack.c.l.bf16 %v598_v30 }
 0x5b2   : > { %v3941_v59 = vadd.f32 %v3886_v0, %v3672_v60 }
 0x5b4   : > { %v3973_v38 = vmax.f32 %v3941_v59, 0.0 }
 0x5b7   : > { %v3887_v29 = vpop.f32.mrf.mxu0 }
 0x5b8   : > { %v3888_v2 = vadd.f32 %v6319_v27, %v3887_v29 }
 0x5ba   : > { %v3942_v45 = vadd.f32 %v3888_v2, %v3673_v63 }
 0x5bc   : > { %v3974_v10 = vmax.f32 %v3942_v45, 0.0 }
 0x5be   : > { %v4934_v40 = vpack.c.bf16 %v3974_v10, %v3973_v38  ;;  %v602_v10 = vld [vmem:[%s5607_s11 + $0xe4] sm:$0xff]  }
 0x5bf   : > { %v3890_v15 = vpop.f32.mrf.mxu0  ;;  %v3685_v33 = vunpack.c.h.bf16 %v602_v10 }
 0x5c0   : > { %4979 = vst [vmem:[%s6329_s3 + $0x40] sm:$0xff] %v4934_v40   ;;  %v3891_v23 = vadd.f32 %v6319_v27, %v3890_v15  ;;  %v3684_v40 = vunpack.c.l.bf16 %v602_v10 }
 0x5c2   : > { %v3943_v32 = vadd.f32 %v3891_v23, %v3674_v52 }
 0x5c4   : > { %v3975_v56 = vmax.f32 %v3943_v32, 0.0 }
 0x5c7   : > { %v3892_v22 = vpop.f32.mrf.mxu0 }
 0x5c8   : > { %v3893_v53 = vadd.f32 %v6319_v27, %v3892_v22 }
 0x5ca   : > { %v3944_v1 = vadd.f32 %v3893_v53, %v3675_v31 }
 0x5cc   : > { %v3976_v11 = vmax.f32 %v3944_v1, 0.0 }
 0x5ce   : > { %v4939_v17 = vpack.c.bf16 %v3976_v11, %v3975_v56  ;;  %v606_v11 = vld [vmem:[%s5607_s11 + $0xf4] sm:$0xff]   ;;  %s4054_s11 = scalar_lea.sflag [#allocation4], %s5603_s20 }
 0x5cf   : > { %v3895_v39 = vpop.f32.mrf.mxu0  ;;  %v3687_v43 = vunpack.c.h.bf16 %v606_v11 }
 0x5d0   : > { %4980 = vst [vmem:[%s6329_s3 + $0x48] sm:$0xff] %v4939_v17   ;;  %v3896_v28 = vadd.f32 %v6319_v27, %v3895_v39  ;;  %v3686_v17 = vunpack.c.l.bf16 %v606_v11 }
 0x5d2   : > { %v3945_v16 = vadd.f32 %v3896_v28, %v3676_v25 }
 0x5d4   : > { %v3977_v24 = vmax.f32 %v3945_v16, 0.0 }
 0x5d7   : > { %v3897_v48 = vpop.f32.mrf.mxu0 }
 0x5d8   : > { %v3898_v12 = vadd.f32 %v6319_v27, %v3897_v48 }
 0x5da   : > { %v3946_v20 = vadd.f32 %v3898_v12, %v3677_v44 }
 0x5dc   : > { %v3978_v14 = vmax.f32 %v3946_v20, 0.0 }
 0x5de   : > { %v4944_v61 = vpack.c.bf16 %v3978_v14, %v3977_v24 }
 0x5df   : > { %v3900_v36 = vpop.f32.mrf.mxu0 }
 0x5e0   : > { %4981 = vst [vmem:[%s6329_s3 + $0x50] sm:$0xff] %v4944_v61   ;;  %v3901_v21 = vadd.f32 %v6319_v27, %v3900_v36 }
 0x5e2   : > { %v3947_v8 = vadd.f32 %v3901_v21, %v3678_v58 }
 0x5e4   : > { %v3979_v3 = vmax.f32 %v3947_v8, 0.0 }
 0x5e7   : > { %v3902_v37 = vpop.f32.mrf.mxu0 }
 0x5e8   : > { %v3903_v7 = vadd.f32 %v6319_v27, %v3902_v37 }
 0x5ea   : > { %v3948_v5 = vadd.f32 %v3903_v7, %v3679_v35 }
 0x5ec   : > { %v3980_v19 = vmax.f32 %v3948_v5, 0.0 }
 0x5ee   : > { %v4949_v50 = vpack.c.bf16 %v3980_v19, %v3979_v3 }
 0x5ef   : > { %v3905_v26 = vpop.f32.mrf.mxu0 }
 0x5f0   : > { %4982 = vst [vmem:[%s6329_s3 + $0x58] sm:$0xff] %v4949_v50   ;;  %v3906_v13 = vadd.f32 %v6319_v27, %v3905_v26 }
 0x5f2   : > { %v3949_v9 = vadd.f32 %v3906_v13, %v3680_v42 }
 0x5f4   : > { %v3981_v51 = vmax.f32 %v3949_v9, 0.0 }
 0x5f7   : > { %v3907_v6 = vpop.f32.mrf.mxu0 }
 0x5f8   : > { %v3908_v41 = vadd.f32 %v6319_v27, %v3907_v6 }
 0x5fa   : > { %v3950_v46 = vadd.f32 %v3908_v41, %v3681_v55 }
 0x5fc   : > { %v3982_v18 = vmax.f32 %v3950_v46, 0.0 }
 0x5fe   : > { %v4954_v62 = vpack.c.bf16 %v3982_v18, %v3981_v51 }
 0x5ff   : > { %v3910_v49 = vpop.f32.mrf.mxu0 }
 0x600   : > { %4983 = vst [vmem:[%s6329_s3 + $0x60] sm:$0xff] %v4954_v62   ;;  %v3911_v57 = vadd.f32 %v6319_v27, %v3910_v49 }
 0x602   : > { %v3951_v0 = vadd.f32 %v3911_v57, %v3682_v54 }
 0x604   : > { %v3983_v59 = vmax.f32 %v3951_v0, 0.0 }
 0x607   : > { %v3912_v60 = vpop.f32.mrf.mxu0 }
 0x608   : > { %v3913_v63 = vadd.f32 %v6319_v27, %v3912_v60 }
 0x60a   : > { %v3952_v29 = vadd.f32 %v3913_v63, %v3683_v4 }
 0x60c   : > { %v3984_v2 = vmax.f32 %v3952_v29, 0.0 }
 0x60e   : > { %v4959_v45 = vpack.c.bf16 %v3984_v2, %v3983_v59 }
 0x60f   : > { %v3915_v38 = vpop.f32.mrf.mxu0 }
 0x610   : > { %4984 = vst [vmem:[%s6329_s3 + $0x68] sm:$0xff] %v4959_v45   ;;  %v3916_v15 = vadd.f32 %v6319_v27, %v3915_v38 }
 0x612   : > { %v3953_v23 = vadd.f32 %v3916_v15, %v3684_v40 }
 0x614   : > { %v3985_v32 = vmax.f32 %v3953_v23, 0.0 }
 0x617   : > { %v3917_v52 = vpop.f32.mrf.mxu0 }
 0x618   : > { %v3918_v31 = vadd.f32 %v6319_v27, %v3917_v52 }
 0x61a   : > { %v3954_v22 = vadd.f32 %v3918_v31, %v3685_v33 }
 0x61c   : > { %v3986_v53 = vmax.f32 %v3954_v22, 0.0 }
 0x61e   : > { %v4964_v1 = vpack.c.bf16 %v3986_v53, %v3985_v32 }
 0x61f   : > { %v3920_v56 = vpop.f32.mrf.mxu0 }
 0x620   : > { %4985 = vst [vmem:[%s6329_s3 + $0x70] sm:$0xff] %v4964_v1   ;;  %v3921_v39 = vadd.f32 %v6319_v27, %v3920_v56 }
 0x622   : > { %v3955_v28 = vadd.f32 %v3921_v39, %v3686_v17 }
 0x624   : > { %v3987_v16 = vmax.f32 %v3955_v28, 0.0 }
 0x627   : > { %v3922_v25 = vpop.f32.mrf.mxu0 }
 0x628   : > { %v3923_v44 = vadd.f32 %v6319_v27, %v3922_v25 }
 0x62a   : > { %v3956_v48 = vadd.f32 %v3923_v44, %v3687_v43 }
 0x62c   : > { %v3988_v12 = vmax.f32 %v3956_v48, 0.0 }
 0x62e   : > { %v4969_v20 = vpack.c.bf16 %v3988_v12, %v3987_v16 }
 0x630   : > { %4986 = vst [vmem:[%s6329_s3 + $0x78] sm:$0xff] %v4969_v20  }
 0x631   : > { %5322 = shalt.err (!%p5319_p12)
}
 0x632   : > { %s5397_s20 = smov 64   ;;  %s5398_s18 = smov 4  }
 0x633   : > { %5021 = dma.vmem_to_hbm [thread:$0]  (%p5529_p5), %s4070_s12, 2048, %s4072_s13, %s4054_s11, %s5397_s20, %s5397_s20, %s5398_s18  }
 0x634 PF: > { %s6619_s30 = sld [smem:[#allocation19_spill]] }
 0x635   : > { %s6621_s1 = sld [smem:[#allocation23_spill]] }
 0x63a   : > { %s4086_s3 = sand.u32 1, %s6619_s30  }
 0x63b   : > { %p6622_p13 = scmp.ge.s32.totalorder %s6621_s1, 2  ;;  %s4087_s25 = scalar_lea.sflag [#allocation4], %s4086_s3 }
 0x63d   : > { %p5044_p0 = pnand %p6622_p13, %p5494_p6 }
 0x63f   : > { %p5045_p3 = pneg %p5044_p0 }
 0x641   : > { %5364 = dma.done.wait (%p5045_p3), %s4087_s25, 2048  }
 0x642   : > { %5366 = vsyncadd (%p5045_p3), %s4087_s25, 4294965248  ;;  %s30_s14 = sadd.s32 1, %s6621_s1   ;;  %s6623_s16 = sld [smem:[#allocation20_spill]] }
 0x643   : > { %p27_p7 = scmp.ge.s32.totalorder %s30_s14, 4   ;;  %s6624_s11 = sld [smem:[#allocation27_spill]] }
 0x644   : > { %s6625_s12 = sld [smem:[#allocation22_spill]]  ;;  %s6627_s30 = smov %s5373_s10 }
 0x645   : > { %s6626_s13 = sld [smem:[#allocation25_spill]]  ;;  %29 = sbr.rel (!%p27_p7) target bundleno = 14 (0xe), region = 139 }
 0x648   : > { %s6628_s10 = smov %s6623_s16 }
 0x64a   :  { %4093 = vsyncpa [#allocation3], 1 }
 0x64b   :  { %4095 = vsyncpa [#allocation3 + $0x1], 1 }
 0x64c   :  { %4096 = vsyncpa [#allocation6], 1 }
 0x64d   :  { %4098 = vsyncpa [#allocation6 + $0x1], 1 }
 0x64e   :  { %4099 = vsyncpa [#allocation9], 1 }
 0x64f   :  { %4100 = vsyncpa [#allocation12], 1 }
 0x650   :  { %4101 = vsyncpa [#allocation4], 1 }
 0x651   :  { %4103 = vsyncpa [#allocation4 + $0x1], 1 }

</bundles_post_ra>
